<compile_context>
chip_gen: v5e
topology: v5e:2x2
jax: 0.10.0
libtpu: 0.0.40
codegen_flags: <defaults>
</compile_context>

<pallas_src>
import jax
import jax.numpy as jnp
from jax import lax
from jax.experimental import pallas as pl
from jax.experimental.pallas import tpu as pltpu

# ----------------------------- model dimensions -----------------------------
B, S, H = 2, 128, 128          # batch, sequence, hidden
FF = 4 * H                     # transformer FFN inner dim
VOCAB = 512                    # word vocab (synthetic)
N_SEG = 2                      # token_type (segment) vocab
N_ANS_TYPES = 4                # q_type classes (span / yes / no / unk)
N_PARA, N_SENT, N_ENT = 4, 8, 8
NEG = 1e30                     # additive mask value (matches HGN convention)

# fused prediction-head column layout (lane-padded to 128)
HEAD_W = 128
SPAN_OFF = 0                                     # 2 cols: start / end
TYPE_OFF = SPAN_OFF + 2                          # 4 cols
PARA_OFF = TYPE_OFF + N_ANS_TYPES                # 2 cols
SENT_OFF = PARA_OFF + 2                          # 2 cols
ENT_OFF = SENT_OFF + 2                           # 1 col
HEAD_COLS = ENT_OFF + 1                          # = 11 used columns

# small f32 operands packed into one lane-padded slab (one BlockSpec / one DMA)
SLAB_ROWS, SLAB_COLS = 16, FF          # [16, 512] f32 = 32 KiB
ROW_EMB_G, ROW_EMB_B = 0, 1            # embedding LayerNorm gamma / beta   [H]
ROW_BQKV = 2                           # fused QKV bias                     [3H]
ROW_BO = 3                             # attention output bias              [H]
ROW_LN1_G, ROW_LN1_B = 4, 5            # post-attention LayerNorm           [H]
ROW_BF1 = 6                            # FFN inner bias                     [FF]
ROW_BF2 = 7                            # FFN output bias                    [H]
ROW_LN2_G, ROW_LN2_B = 8, 9            # post-FFN LayerNorm                 [H]
ROW_BHEADS = 10                        # fused prediction-head bias         [HEAD_W]


# --------------------- generation-aware kernel configuration -----------------
def _chip_config():
    """Returns (batch_per_grid_step, ff_chunk_width, gelu_compute_dtype)."""
    bb, ff_chunk, gelu_dtype = 1, FF // 2, jnp.bfloat16   # safe default (multi-TC friendly)
    try:
        kind = jax.devices()[0].device_kind.lower()
    except Exception:
        return bb, ff_chunk, gelu_dtype
    if "v7" in kind:
        # 2 TensorCores/chip: keep grid=(B,) parallel so each TC takes one batch element.
        return 1, FF // 2, jnp.bfloat16
    if "v5e" in kind or "v5 lite" in kind or "v5lite" in kind:
        # single TC, 128-wide MXU, no bf16 VPU/EUP: merge batch (M=B*S) for per-step
        # overhead, 128-wide FF chunks for vreg pressure, f32 GELU.
        return B, FF // 4, jnp.float32
    if "v6" in kind:
        # single TC, 256-wide MXU: merge batch to fill the MXU M dimension; bf16 GELU.
        return B, FF // 2, jnp.bfloat16
    return bb, ff_chunk, gelu_dtype


# ------------- Pallas kernel: encoder layer + fused prediction heads ---------
def _make_encoder_heads_kernel(BB, ff_chunk, gelu_dtype):
    """One BERT-style encoder layer + all five HGN heads for BB batch elements.

    x_ref:    [BB, S, H]   embedding sums (pre-LayerNorm, f32)
    mask_ref: [BB, 1, S]   attention mask (1 = keep, 0 = pad, f32)
    out_ref:  [BB, S, 128] fused head logits (f32, lane-dense)
    Matmul weights arrive in bf16; biases / LN params live in the f32 slab.
    """
    M = BB * S
    n_chunks = FF // ff_chunk

    def kernel(x_ref, mask_ref, wqkv_ref, wo_ref, w1_ref, w2_ref, wh_ref,
               slab_ref, out_ref):
        def row(r, n):
            return slab_ref[r:r + 1, 0:n]                 # [1, n] f32

        def layernorm(h, g, b):
            mu = jnp.mean(h, axis=-1, keepdims=True)
            var = jnp.mean((h - mu) ** 2, axis=-1, keepdims=True)
            return (h - mu) * lax.rsqrt(var + 1e-12) * g + b

        # --- embedding LayerNorm (prologue, moved in from the XLA wrapper) ---
        if BB == 1:
            x = x_ref[0]                                  # [S, H]
        else:
            x = jnp.concatenate([x_ref[b] for b in range(BB)], axis=0)   # [M, H]
        x = layernorm(x, row(ROW_EMB_G, H), row(ROW_EMB_B, H))

        # --- fused QKV projection: one [M,H] x [H,3H] bf16 MXU pass ---
        xb = x.astype(jnp.bfloat16)
        qkv = jnp.dot(xb, wqkv_ref[...], preferred_element_type=jnp.float32)
        qkv = qkv + row(ROW_BQKV, 3 * H)                  # [M, 3H] f32

        # --- single-head self-attention (per batch element: [S,S] block) ---
        # Contract the last dims of q and k so the MXU consumes K in transposed
        # layout without an explicit XLU transpose / VMEM round-trip.
        scale = jnp.float32(1.0 / (H ** 0.5))
        attn_blocks = []
        for b in range(BB):                               # static, fully unrolled
            lo = b * S
            q = qkv[lo:lo + S, 0 * H:1 * H].astype(jnp.bfloat16)
            k = qkv[lo:lo + S, 1 * H:2 * H].astype(jnp.bfloat16)
            v = qkv[lo:lo + S, 2 * H:3 * H].astype(jnp.bfloat16)
            s = lax.dot_general(
                q, k, dimension_numbers=(((1,), (1,)), ((), ())),
                preferred_element_type=jnp.float32) * scale      # [S, S]
            s = s + (mask_ref[b] - 1.0) * NEG                    # mask pad keys
            s = s - jnp.max(s, axis=-1, keepdims=True)
            p = jnp.exp(s)
            p = p * pl.reciprocal(jnp.sum(p, axis=-1, keepdims=True), approx=True)
            attn_blocks.append(
                jnp.dot(p.astype(jnp.bfloat16), v,
                        preferred_element_type=jnp.float32))     # [S, H]
        attn = attn_blocks[0] if BB == 1 else jnp.concatenate(attn_blocks, axis=0)

        attn_out = jnp.dot(attn.astype(jnp.bfloat16), wo_ref[...],
                           preferred_element_type=jnp.float32) + row(ROW_BO, H)
        h1 = layernorm(x + attn_out, row(ROW_LN1_G, H), row(ROW_LN1_B, H))

        # --- feed-forward (tanh GELU), chunked along FF so the [M, FF]
        #     intermediate never fully materializes; GELU runs in gelu_dtype
        #     (bf16 on v6e/v7x, f32 on v5e) ---
        h1b = h1.astype(jnp.bfloat16)
        ff_out = None
        for c in range(n_chunks):                         # static unrolled loop
            lo = c * ff_chunk
            f = jnp.dot(h1b, w1_ref[:, lo:lo + ff_chunk],
                        preferred_element_type=jnp.float32)
            f = f + slab_ref[ROW_BF1:ROW_BF1 + 1, lo:lo + ff_chunk]
            g = f.astype(gelu_dtype)
            g = 0.5 * g * (1.0 + jnp.tanh(0.7978845608028654 *
                                          (g + 0.044715 * (g * g * g))))
            contrib = jnp.dot(g.astype(jnp.bfloat16), w2_ref[lo:lo + ff_chunk, :],
                              preferred_element_type=jnp.float32)
            ff_out = contrib if ff_out is None else ff_out + contrib
        ff_out = ff_out + row(ROW_BF2, H)

        h2 = layernorm(h1 + ff_out, row(ROW_LN2_G, H), row(ROW_LN2_B, H))

        # --- fused prediction heads: one lane-dense [M,H] x [H,128] matmul ---
        heads = jnp.dot(h2.astype(jnp.bfloat16), wh_ref[...],
                        preferred_element_type=jnp.float32) + row(ROW_BHEADS, HEAD_W)
        for b in range(BB):
            out_ref[b] = heads[b * S:(b + 1) * S, :]

    return kernel


def encoder_and_heads(x, mask, p):
    """x: [B, S, H] f32 (embedding sums), mask: [B, 1, S] f32 -> [B, S, 128] f32."""
    BB, ff_chunk, gelu_dtype = _chip_config()
    kernel = _make_encoder_heads_kernel(BB, ff_chunk, gelu_dtype)

    def wfull(shape):
        return pl.BlockSpec(shape, lambda i: (0,) * len(shape))

    in_specs = [
        pl.BlockSpec((BB, S, H), lambda i: (i, 0, 0)),     # x
        pl.BlockSpec((BB, 1, S), lambda i: (i, 0, 0)),     # mask
        wfull((H, 3 * H)),                                 # wqkv (bf16)
        wfull((H, H)),                                     # wo   (bf16)
        wfull((H, FF)),                                    # w1   (bf16)
        wfull((FF, H)),                                    # w2   (bf16)
        wfull((H, HEAD_W)),                                # w_heads (bf16)
        wfull((SLAB_ROWS, SLAB_COLS)),                     # f32 bias/LN slab
    ]
    return pl.pallas_call(
        kernel,
        out_shape=jax.ShapeDtypeStruct((B, S, HEAD_W), jnp.float32),
        grid_spec=pltpu.PrefetchScalarGridSpec(
            num_scalar_prefetch=0,
            grid=(B // BB,),
            in_specs=in_specs,
            out_specs=pl.BlockSpec((BB, S, HEAD_W), lambda i: (i, 0, 0))),
        compiler_params=pltpu.CompilerParams(dimension_semantics=("parallel",)),
    )(x, mask, p['wqkv'], p['wo'], p['w1'], p['w2'], p['w_heads'], p['slab'])


# ------------------------------ parameter init ------------------------------
def init_params(key):
    keys = jax.random.split(key, 16)
    w = lambda i, shape, s=0.02: s * jax.random.normal(keys[i], shape, jnp.float32)

    # fused QKV weight (bf16 for the MXU)
    wq, wk, wv = w(3, (H, H)), w(4, (H, H)), w(5, (H, H))
    wqkv = jnp.concatenate([wq, wk, wv], axis=1).astype(jnp.bfloat16)   # [H, 3H]

    # fused prediction heads, lane-padded to 128 columns
    w_span = w(9, (H, 2))
    w_type = w(10, (H, N_ANS_TYPES))
    w_para = w(11, (H, 2))
    w_sent = w(12, (H, 2))
    w_ent = w(13, (H, 1))
    w_heads = jnp.concatenate(
        [w_span, w_type, w_para, w_sent, w_ent,
         jnp.zeros((H, HEAD_W - HEAD_COLS), jnp.float32)],
        axis=1).astype(jnp.bfloat16)                                    # [H, 128]

    # packed f32 slab: LN gammas = 1, all biases / betas = 0 at init
    slab = jnp.zeros((SLAB_ROWS, SLAB_COLS), jnp.float32)
    slab = slab.at[ROW_EMB_G, :H].set(1.0)
    slab = slab.at[ROW_LN1_G, :H].set(1.0)
    slab = slab.at[ROW_LN2_G, :H].set(1.0)

    return {
        # encoder embeddings (gather stays in XLA)
        'word_emb': w(0, (VOCAB, H)),
        'pos_emb': w(1, (S, H)),
        'type_emb': w(2, (N_SEG, H)),
        # encoder layer + heads (matmul weights bf16, everything else in the slab)
        'wqkv': wqkv,
        'wo': w(6, (H, H)).astype(jnp.bfloat16),
        'w1': w(7, (H, FF)).astype(jnp.bfloat16),
        'w2': w(8, (FF, H)).astype(jnp.bfloat16),
        'w_heads': w_heads,
        'slab': slab,
    }


# ------------------------------- forward pass -------------------------------
def embed(params, input_ids, segment_ids):
    """Embedding sums [B, S, H]; LayerNorm happens inside the Pallas kernel."""
    # TODO(synk): the table gather itself stays in XLA; an in-kernel gather would
    # need a data-dependent DMA / dynamic-gather path (scalar-prefetched ids).
    return (params['word_emb'][input_ids]
            + params['pos_emb'][jnp.arange(S)][None, :, :]
            + params['type_emb'][segment_ids]).astype(jnp.float32)


def hgn_outputs(head_out, ctx_mask, para_pos, sent_pos, ent_pos, return_yp=True):
    """Slice / gather the fused head logits into HGN's output tuple."""
    start = head_out[..., SPAN_OFF + 0] + (ctx_mask - 1.0) * NEG
    end = head_out[..., SPAN_OFF + 1] + (ctx_mask - 1.0) * NEG
    q_type = head_out[:, 0, TYPE_OFF:TYPE_OFF + N_ANS_TYPES]            # [B, 4]

    # heads are linear, so dense-then-gather == gather-then-dense
    paras = jnp.take_along_axis(head_out[..., PARA_OFF:PARA_OFF + 2],
                                para_pos[..., None], axis=1)            # [B, P, 2]
    sents = jnp.take_along_axis(head_out[..., SENT_OFF:SENT_OFF + 2],
                                sent_pos[..., None], axis=1)            # [B, Sn, 2]
    ents = jnp.take_along_axis(head_out[..., ENT_OFF:ENT_OFF + 1],
                               ent_pos[..., None], axis=1)              # [B, E, 1]

    if not return_yp:
        return start, end, q_type, paras, sents, ents

    # TODO(synk): HGN uses graph-attention fusion layers and a max-answer-length
    # constrained span decoder; here y1/y2 are the unconstrained joint argmax.
    span_scores = start[:, :, None] + end[:, None, :]                   # [B, S, S]
    tri = jnp.triu(jnp.ones((S, S), jnp.float32))
    span_scores = jnp.where(tri > 0, span_scores, -jnp.inf)
    idx = jnp.argmax(span_scores.reshape(B, -1), axis=-1)
    y1 = idx // S
    y2 = idx % S
    return start, end, q_type, paras, sents, ents, y1, y2


@jax.jit
def unified_hgn_forward(params, input_ids, segment_ids, ctx_mask,
                        para_pos, sent_pos, ent_pos):
    """Eval-mode UnifiedHGNModel.forward(batch, return_yp=True)."""
    x = embed(params, input_ids, segment_ids)
    head_out = encoder_and_heads(x, ctx_mask[:, None, :], params)       # [B, S, 128]
    return hgn_outputs(head_out, ctx_mask.astype(jnp.float32),
                       para_pos, sent_pos, ent_pos, return_yp=True)


# ----------------------------------- main ------------------------------------
if __name__ == "__main__":
    key = jax.random.PRNGKey(0)
    params = init_params(key)

    k1, k2 = jax.random.split(jax.random.PRNGKey(1))
    input_ids = jax.random.randint(k1, (B, S), 0, VOCAB, dtype=jnp.int32)
    segment_ids = jnp.concatenate(
        [jnp.zeros((B, S // 4), jnp.int32), jnp.ones((B, 3 * S // 4), jnp.int32)],
        axis=1)
    lengths = jnp.array([S, S - 16], jnp.int32)
    ctx_mask = (jnp.arange(S)[None, :] < lengths[:, None]).astype(jnp.float32)

    para_pos = jnp.tile(jnp.arange(N_PARA, dtype=jnp.int32) * (S // N_PARA), (B, 1))
    sent_pos = jnp.tile(jnp.arange(N_SENT, dtype=jnp.int32) * (S // N_SENT), (B, 1))
    ent_pos = jnp.tile(jnp.arange(N_ENT, dtype=jnp.int32) * (S // N_ENT) + 1, (B, 1))

    outs = unified_hgn_forward(params, input_ids, segment_ids, ctx_mask,
                               para_pos, sent_pos, ent_pos)
    outs = jax.block_until_ready(outs)

    start, end, q_type, paras, sents, ents, y1, y2 = outs
    assert start.shape == (B, S) and end.shape == (B, S)
    assert q_type.shape == (B, N_ANS_TYPES)
    assert paras.shape == (B, N_PARA, 2)
    assert sents.shape == (B, N_SENT, 2)
    assert ents.shape == (B, N_ENT, 1)
    assert y1.shape == (B,) and y2.shape == (B,)
    assert bool(jnp.all(jnp.isfinite(start[0]))) and bool(jnp.all(jnp.isfinite(q_type)))
    print("KERNEL_OK")
</pallas_src>

<mosaic_0001>
module attributes {stable_mosaic.version = 11 : i64} {
  func.func @kernel(%arg0: i32, %arg1: memref<1x128x128xf32, #tpu.memory_space<vmem>>, %arg2: memref<1x1x128xf32, #tpu.memory_space<vmem>>, %arg3: memref<128x384xbf16, #tpu.memory_space<vmem>>, %arg4: memref<128x128xbf16, #tpu.memory_space<vmem>>, %arg5: memref<128x512xbf16, #tpu.memory_space<vmem>>, %arg6: memref<512x128xbf16, #tpu.memory_space<vmem>>, %arg7: memref<128x128xbf16, #tpu.memory_space<vmem>>, %arg8: memref<16x512xf32, #tpu.memory_space<vmem>>, %arg9: memref<1x128x128xf32, #tpu.memory_space<vmem>>) attributes {dimension_semantics = [#tpu.dimension_semantics<parallel>], iteration_bounds = array<i64: 2>, scalar_prefetch = 0 : i64, scratch_operands = 0 : i64, tpu.core_type = #tpu.core_type<tc>, window_params = [{transform_indices = @transform_0, window_bounds = array<i64: 1, 128, 128>}, {transform_indices = @transform_1, window_bounds = array<i64: 1, 1, 128>}, {pipeline_mode = #tpu.pipeline_mode<synchronous>, transform_indices = @transform_2, window_bounds = array<i64: 128, 384>}, {pipeline_mode = #tpu.pipeline_mode<synchronous>, transform_indices = @transform_3, window_bounds = array<i64: 128, 128>}, {pipeline_mode = #tpu.pipeline_mode<synchronous>, transform_indices = @transform_4, window_bounds = array<i64: 128, 512>}, {pipeline_mode = #tpu.pipeline_mode<synchronous>, transform_indices = @transform_5, window_bounds = array<i64: 512, 128>}, {pipeline_mode = #tpu.pipeline_mode<synchronous>, transform_indices = @transform_6, window_bounds = array<i64: 128, 128>}, {pipeline_mode = #tpu.pipeline_mode<synchronous>, transform_indices = @transform_7, window_bounds = array<i64: 16, 512>}, {transform_indices = @transform_8, window_bounds = array<i64: 1, 128, 128>}]} {
    %c0 = arith.constant 0 : index
    %c0_0 = arith.constant 0 : index
    %c0_1 = arith.constant 0 : index
    %0 = vector.load %arg1[%c0, %c0_0, %c0_1] : memref<1x128x128xf32, #tpu.memory_space<vmem>>, vector<1x128x128xf32>
    %1 = vector.shape_cast %0 : vector<1x128x128xf32> to vector<128x128xf32>
    %c0_2 = arith.constant 0 : index
    %c0_3 = arith.constant 0 : index
    %2 = vector.load %arg8[%c0_2, %c0_3] : memref<16x512xf32, #tpu.memory_space<vmem>>, vector<1x128xf32>
    %c1 = arith.constant 1 : index
    %c0_4 = arith.constant 0 : index
    %3 = vector.load %arg8[%c1, %c0_4] : memref<16x512xf32, #tpu.memory_space<vmem>>, vector<1x128xf32>
    %cst = arith.constant dense<0.000000e+00> : vector<128xf32>
    %4 = vector.multi_reduction <add>, %1, %cst [1] : vector<128x128xf32> to vector<128xf32>
    %5 = vector.shape_cast %4 : vector<128xf32> to vector<128x1xf32>
    %cst_5 = arith.constant 1.280000e+02 : f32
    %6 = vector.broadcast %cst_5 : f32 to vector<128x1xf32>
    %7 = arith.divf %5, %6 : vector<128x1xf32>
    %8 = vector.broadcast %7 : vector<128x1xf32> to vector<128x128xf32>
    %9 = arith.subf %1, %8 : vector<128x128xf32>
    %10 = arith.mulf %9, %9 : vector<128x128xf32>
    %cst_6 = arith.constant dense<0.000000e+00> : vector<128xf32>
    %11 = vector.multi_reduction <add>, %10, %cst_6 [1] : vector<128x128xf32> to vector<128xf32>
    %12 = vector.shape_cast %11 : vector<128xf32> to vector<128x1xf32>
    %cst_7 = arith.constant 1.280000e+02 : f32
    %13 = vector.broadcast %cst_7 : f32 to vector<128x1xf32>
    %14 = arith.divf %12, %13 : vector<128x1xf32>
    %15 = vector.broadcast %7 : vector<128x1xf32> to vector<128x128xf32>
    %16 = arith.subf %1, %15 : vector<128x128xf32>
    %cst_8 = arith.constant 9.99999996E-13 : f32
    %17 = vector.broadcast %cst_8 : f32 to vector<128x1xf32>
    %18 = arith.addf %14, %17 : vector<128x1xf32>
    %19 = math.rsqrt %18 : vector<128x1xf32>
    %20 = vector.broadcast %19 : vector<128x1xf32> to vector<128x128xf32>
    %21 = arith.mulf %16, %20 : vector<128x128xf32>
    %22 = vector.broadcast %2 : vector<1x128xf32> to vector<128x128xf32>
    %23 = arith.mulf %21, %22 : vector<128x128xf32>
    %24 = vector.broadcast %3 : vector<1x128xf32> to vector<128x128xf32>
    %25 = arith.addf %23, %24 : vector<128x128xf32>
    %26 = arith.truncf %25 : vector<128x128xf32> to vector<128x128xbf16>
    %c0_9 = arith.constant 0 : index
    %c0_10 = arith.constant 0 : index
    %27 = vector.load %arg3[%c0_9, %c0_10] : memref<128x384xbf16, #tpu.memory_space<vmem>>, vector<128x384xbf16>
    %cst_11 = arith.constant dense<0.000000e+00> : vector<128x384xf32>
    %28 = tpu.matmul %26, %27, %cst_11 {dimension_numbers = #tpu.dot_dimension_numbers<[1], [0], [0], [1], [0, 0, 1, 1], [], []>} : vector<128x128xbf16>, vector<128x384xbf16>, vector<128x384xf32> -> vector<128x384xf32>
    %c2 = arith.constant 2 : index
    %c0_12 = arith.constant 0 : index
    %29 = vector.load %arg8[%c2, %c0_12] : memref<16x512xf32, #tpu.memory_space<vmem>>, vector<1x384xf32>
    %30 = vector.broadcast %29 : vector<1x384xf32> to vector<128x384xf32>
    %31 = arith.addf %28, %30 : vector<128x384xf32>
    %32 = vector.extract_strided_slice %31 {offsets = [0, 0], sizes = [128, 128], strides = [1, 1]} : vector<128x384xf32> to vector<128x128xf32>
    %33 = arith.truncf %32 : vector<128x128xf32> to vector<128x128xbf16>
    %34 = vector.extract_strided_slice %31 {offsets = [0, 128], sizes = [128, 128], strides = [1, 1]} : vector<128x384xf32> to vector<128x128xf32>
    %35 = arith.truncf %34 : vector<128x128xf32> to vector<128x128xbf16>
    %36 = vector.extract_strided_slice %31 {offsets = [0, 256], sizes = [128, 128], strides = [1, 1]} : vector<128x384xf32> to vector<128x128xf32>
    %37 = arith.truncf %36 : vector<128x128xf32> to vector<128x128xbf16>
    %cst_13 = arith.constant dense<0.000000e+00> : vector<128x128xf32>
    %38 = tpu.matmul %33, %35, %cst_13 {dimension_numbers = #tpu.dot_dimension_numbers<[1], [1], [0], [0], [0, 0, 1, 0], [], []>} : vector<128x128xbf16>, vector<128x128xbf16>, vector<128x128xf32> -> vector<128x128xf32>
    %cst_14 = arith.constant 0.0883883461 : f32
    %39 = vector.broadcast %cst_14 : f32 to vector<128x128xf32>
    %40 = arith.mulf %38, %39 : vector<128x128xf32>
    %c0_15 = arith.constant 0 : index
    %c0_16 = arith.constant 0 : index
    %c0_17 = arith.constant 0 : index
    %41 = vector.load %arg2[%c0_15, %c0_16, %c0_17] : memref<1x1x128xf32, #tpu.memory_space<vmem>>, vector<1x1x128xf32>
    %42 = vector.shape_cast %41 : vector<1x1x128xf32> to vector<1x128xf32>
    %cst_18 = arith.constant 1.000000e+00 : f32
    %43 = vector.broadcast %cst_18 : f32 to vector<1x128xf32>
    %44 = arith.subf %42, %43 : vector<1x128xf32>
    %cst_19 = arith.constant 1.000000e+30 : f32
    %45 = vector.broadcast %cst_19 : f32 to vector<1x128xf32>
    %46 = arith.mulf %44, %45 : vector<1x128xf32>
    %47 = vector.broadcast %46 : vector<1x128xf32> to vector<128x128xf32>
    %48 = arith.addf %40, %47 : vector<128x128xf32>
    %cst_20 = arith.constant dense<0xFF800000> : vector<128xf32>
    %49 = vector.multi_reduction <maximumf>, %48, %cst_20 [1] : vector<128x128xf32> to vector<128xf32>
    %50 = vector.shape_cast %49 : vector<128xf32> to vector<128x1xf32>
    %51 = vector.broadcast %50 : vector<128x1xf32> to vector<128x128xf32>
    %52 = arith.subf %48, %51 : vector<128x128xf32>
    %53 = math.exp %52 : vector<128x128xf32>
    %cst_21 = arith.constant dense<0.000000e+00> : vector<128xf32>
    %54 = vector.multi_reduction <add>, %53, %cst_21 [1] : vector<128x128xf32> to vector<128xf32>
    %55 = vector.shape_cast %54 : vector<128xf32> to vector<128x1xf32>
    %56 = tpu.reciprocal %55 {approx = true} : vector<128x1xf32> -> vector<128x1xf32>
    %57 = vector.broadcast %56 : vector<128x1xf32> to vector<128x128xf32>
    %58 = arith.mulf %53, %57 : vector<128x128xf32>
    %59 = arith.truncf %58 : vector<128x128xf32> to vector<128x128xbf16>
    %cst_22 = arith.constant dense<0.000000e+00> : vector<128x128xf32>
    %60 = tpu.matmul %59, %37, %cst_22 {dimension_numbers = #tpu.dot_dimension_numbers<[1], [0], [0], [1], [0, 0, 1, 1], [], []>} : vector<128x128xbf16>, vector<128x128xbf16>, vector<128x128xf32> -> vector<128x128xf32>
    %61 = arith.truncf %60 : vector<128x128xf32> to vector<128x128xbf16>
    %c0_23 = arith.constant 0 : index
    %c0_24 = arith.constant 0 : index
    %62 = vector.load %arg4[%c0_23, %c0_24] : memref<128x128xbf16, #tpu.memory_space<vmem>>, vector<128x128xbf16>
    %cst_25 = arith.constant dense<0.000000e+00> : vector<128x128xf32>
    %63 = tpu.matmul %61, %62, %cst_25 {dimension_numbers = #tpu.dot_dimension_numbers<[1], [0], [0], [1], [0, 0, 1, 1], [], []>} : vector<128x128xbf16>, vector<128x128xbf16>, vector<128x128xf32> -> vector<128x128xf32>
    %c3 = arith.constant 3 : index
    %c0_26 = arith.constant 0 : index
    %64 = vector.load %arg8[%c3, %c0_26] : memref<16x512xf32, #tpu.memory_space<vmem>>, vector<1x128xf32>
    %65 = vector.broadcast %64 : vector<1x128xf32> to vector<128x128xf32>
    %66 = arith.addf %63, %65 : vector<128x128xf32>
    %67 = arith.addf %25, %66 : vector<128x128xf32>
    %c4 = arith.constant 4 : index
    %c0_27 = arith.constant 0 : index
    %68 = vector.load %arg8[%c4, %c0_27] : memref<16x512xf32, #tpu.memory_space<vmem>>, vector<1x128xf32>
    %c5 = arith.constant 5 : index
    %c0_28 = arith.constant 0 : index
    %69 = vector.load %arg8[%c5, %c0_28] : memref<16x512xf32, #tpu.memory_space<vmem>>, vector<1x128xf32>
    %cst_29 = arith.constant dense<0.000000e+00> : vector<128xf32>
    %70 = vector.multi_reduction <add>, %67, %cst_29 [1] : vector<128x128xf32> to vector<128xf32>
    %71 = vector.shape_cast %70 : vector<128xf32> to vector<128x1xf32>
    %cst_30 = arith.constant 1.280000e+02 : f32
    %72 = vector.broadcast %cst_30 : f32 to vector<128x1xf32>
    %73 = arith.divf %71, %72 : vector<128x1xf32>
    %74 = vector.broadcast %73 : vector<128x1xf32> to vector<128x128xf32>
    %75 = arith.subf %67, %74 : vector<128x128xf32>
    %76 = arith.mulf %75, %75 : vector<128x128xf32>
    %cst_31 = arith.constant dense<0.000000e+00> : vector<128xf32>
    %77 = vector.multi_reduction <add>, %76, %cst_31 [1] : vector<128x128xf32> to vector<128xf32>
    %78 = vector.shape_cast %77 : vector<128xf32> to vector<128x1xf32>
    %cst_32 = arith.constant 1.280000e+02 : f32
    %79 = vector.broadcast %cst_32 : f32 to vector<128x1xf32>
    %80 = arith.divf %78, %79 : vector<128x1xf32>
    %81 = vector.broadcast %73 : vector<128x1xf32> to vector<128x128xf32>
    %82 = arith.subf %67, %81 : vector<128x128xf32>
    %cst_33 = arith.constant 9.99999996E-13 : f32
    %83 = vector.broadcast %cst_33 : f32 to vector<128x1xf32>
    %84 = arith.addf %80, %83 : vector<128x1xf32>
    %85 = math.rsqrt %84 : vector<128x1xf32>
    %86 = vector.broadcast %85 : vector<128x1xf32> to vector<128x128xf32>
    %87 = arith.mulf %82, %86 : vector<128x128xf32>
    %88 = vector.broadcast %68 : vector<1x128xf32> to vector<128x128xf32>
    %89 = arith.mulf %87, %88 : vector<128x128xf32>
    %90 = vector.broadcast %69 : vector<1x128xf32> to vector<128x128xf32>
    %91 = arith.addf %89, %90 : vector<128x128xf32>
    %92 = arith.truncf %91 : vector<128x128xf32> to vector<128x128xbf16>
    %c0_34 = arith.constant 0 : index
    %c0_35 = arith.constant 0 : index
    %93 = vector.load %arg5[%c0_34, %c0_35] : memref<128x512xbf16, #tpu.memory_space<vmem>>, vector<128x256xbf16>
    %cst_36 = arith.constant dense<0.000000e+00> : vector<128x256xf32>
    %94 = tpu.matmul %92, %93, %cst_36 {dimension_numbers = #tpu.dot_dimension_numbers<[1], [0], [0], [1], [0, 0, 1, 1], [], []>} : vector<128x128xbf16>, vector<128x256xbf16>, vector<128x256xf32> -> vector<128x256xf32>
    %c6 = arith.constant 6 : index
    %c0_37 = arith.constant 0 : index
    %95 = vector.load %arg8[%c6, %c0_37] : memref<16x512xf32, #tpu.memory_space<vmem>>, vector<1x256xf32>
    %96 = vector.broadcast %95 : vector<1x256xf32> to vector<128x256xf32>
    %97 = arith.addf %94, %96 : vector<128x256xf32>
    %98 = arith.truncf %97 : vector<128x256xf32> to vector<128x256xbf16>
    %cst_38 = arith.constant 5.000000e-01 : bf16
    %99 = vector.broadcast %cst_38 : bf16 to vector<128x256xbf16>
    %100 = arith.mulf %99, %98 : vector<128x256xbf16>
    %101 = arith.mulf %98, %98 : vector<128x256xbf16>
    %102 = arith.mulf %101, %98 : vector<128x256xbf16>
    %cst_39 = arith.constant 4.467770e-02 : bf16
    %103 = vector.broadcast %cst_39 : bf16 to vector<128x256xbf16>
    %104 = arith.mulf %103, %102 : vector<128x256xbf16>
    %105 = arith.addf %98, %104 : vector<128x256xbf16>
    %cst_40 = arith.constant 7.968750e-01 : bf16
    %106 = vector.broadcast %cst_40 : bf16 to vector<128x256xbf16>
    %107 = arith.mulf %106, %105 : vector<128x256xbf16>
    %108 = math.tanh %107 : vector<128x256xbf16>
    %cst_41 = arith.constant 1.000000e+00 : bf16
    %109 = vector.broadcast %cst_41 : bf16 to vector<128x256xbf16>
    %110 = arith.addf %109, %108 : vector<128x256xbf16>
    %111 = arith.mulf %100, %110 : vector<128x256xbf16>
    %c0_42 = arith.constant 0 : index
    %c0_43 = arith.constant 0 : index
    %112 = vector.load %arg6[%c0_42, %c0_43] : memref<512x128xbf16, #tpu.memory_space<vmem>>, vector<256x128xbf16>
    %cst_44 = arith.constant dense<0.000000e+00> : vector<128x128xf32>
    %113 = tpu.matmul %111, %112, %cst_44 {dimension_numbers = #tpu.dot_dimension_numbers<[1], [0], [0], [1], [0, 0, 1, 1], [], []>} : vector<128x256xbf16>, vector<256x128xbf16>, vector<128x128xf32> -> vector<128x128xf32>
    %c0_45 = arith.constant 0 : index
    %c256 = arith.constant 256 : index
    %114 = vector.load %arg5[%c0_45, %c256] : memref<128x512xbf16, #tpu.memory_space<vmem>>, vector<128x256xbf16>
    %cst_46 = arith.constant dense<0.000000e+00> : vector<128x256xf32>
    %115 = tpu.matmul %92, %114, %cst_46 {dimension_numbers = #tpu.dot_dimension_numbers<[1], [0], [0], [1], [0, 0, 1, 1], [], []>} : vector<128x128xbf16>, vector<128x256xbf16>, vector<128x256xf32> -> vector<128x256xf32>
    %c6_47 = arith.constant 6 : index
    %c256_48 = arith.constant 256 : index
    %116 = vector.load %arg8[%c6_47, %c256_48] : memref<16x512xf32, #tpu.memory_space<vmem>>, vector<1x256xf32>
    %117 = vector.broadcast %116 : vector<1x256xf32> to vector<128x256xf32>
    %118 = arith.addf %115, %117 : vector<128x256xf32>
    %119 = arith.truncf %118 : vector<128x256xf32> to vector<128x256xbf16>
    %cst_49 = arith.constant 5.000000e-01 : bf16
    %120 = vector.broadcast %cst_49 : bf16 to vector<128x256xbf16>
    %121 = arith.mulf %120, %119 : vector<128x256xbf16>
    %122 = arith.mulf %119, %119 : vector<128x256xbf16>
    %123 = arith.mulf %122, %119 : vector<128x256xbf16>
    %cst_50 = arith.constant 4.467770e-02 : bf16
    %124 = vector.broadcast %cst_50 : bf16 to vector<128x256xbf16>
    %125 = arith.mulf %124, %123 : vector<128x256xbf16>
    %126 = arith.addf %119, %125 : vector<128x256xbf16>
    %cst_51 = arith.constant 7.968750e-01 : bf16
    %127 = vector.broadcast %cst_51 : bf16 to vector<128x256xbf16>
    %128 = arith.mulf %127, %126 : vector<128x256xbf16>
    %129 = math.tanh %128 : vector<128x256xbf16>
    %cst_52 = arith.constant 1.000000e+00 : bf16
    %130 = vector.broadcast %cst_52 : bf16 to vector<128x256xbf16>
    %131 = arith.addf %130, %129 : vector<128x256xbf16>
    %132 = arith.mulf %121, %131 : vector<128x256xbf16>
    %c256_53 = arith.constant 256 : index
    %c0_54 = arith.constant 0 : index
    %133 = vector.load %arg6[%c256_53, %c0_54] : memref<512x128xbf16, #tpu.memory_space<vmem>>, vector<256x128xbf16>
    %cst_55 = arith.constant dense<0.000000e+00> : vector<128x128xf32>
    %134 = tpu.matmul %132, %133, %cst_55 {dimension_numbers = #tpu.dot_dimension_numbers<[1], [0], [0], [1], [0, 0, 1, 1], [], []>} : vector<128x256xbf16>, vector<256x128xbf16>, vector<128x128xf32> -> vector<128x128xf32>
    %135 = arith.addf %113, %134 : vector<128x128xf32>
    %c7 = arith.constant 7 : index
    %c0_56 = arith.constant 0 : index
    %136 = vector.load %arg8[%c7, %c0_56] : memref<16x512xf32, #tpu.memory_space<vmem>>, vector<1x128xf32>
    %137 = vector.broadcast %136 : vector<1x128xf32> to vector<128x128xf32>
    %138 = arith.addf %135, %137 : vector<128x128xf32>
    %139 = arith.addf %91, %138 : vector<128x128xf32>
    %c8 = arith.constant 8 : index
    %c0_57 = arith.constant 0 : index
    %140 = vector.load %arg8[%c8, %c0_57] : memref<16x512xf32, #tpu.memory_space<vmem>>, vector<1x128xf32>
    %c9 = arith.constant 9 : index
    %c0_58 = arith.constant 0 : index
    %141 = vector.load %arg8[%c9, %c0_58] : memref<16x512xf32, #tpu.memory_space<vmem>>, vector<1x128xf32>
    %cst_59 = arith.constant dense<0.000000e+00> : vector<128xf32>
    %142 = vector.multi_reduction <add>, %139, %cst_59 [1] : vector<128x128xf32> to vector<128xf32>
    %143 = vector.shape_cast %142 : vector<128xf32> to vector<128x1xf32>
    %cst_60 = arith.constant 1.280000e+02 : f32
    %144 = vector.broadcast %cst_60 : f32 to vector<128x1xf32>
    %145 = arith.divf %143, %144 : vector<128x1xf32>
    %146 = vector.broadcast %145 : vector<128x1xf32> to vector<128x128xf32>
    %147 = arith.subf %139, %146 : vector<128x128xf32>
    %148 = arith.mulf %147, %147 : vector<128x128xf32>
    %cst_61 = arith.constant dense<0.000000e+00> : vector<128xf32>
    %149 = vector.multi_reduction <add>, %148, %cst_61 [1] : vector<128x128xf32> to vector<128xf32>
    %150 = vector.shape_cast %149 : vector<128xf32> to vector<128x1xf32>
    %cst_62 = arith.constant 1.280000e+02 : f32
    %151 = vector.broadcast %cst_62 : f32 to vector<128x1xf32>
    %152 = arith.divf %150, %151 : vector<128x1xf32>
    %153 = vector.broadcast %145 : vector<128x1xf32> to vector<128x128xf32>
    %154 = arith.subf %139, %153 : vector<128x128xf32>
    %cst_63 = arith.constant 9.99999996E-13 : f32
    %155 = vector.broadcast %cst_63 : f32 to vector<128x1xf32>
    %156 = arith.addf %152, %155 : vector<128x1xf32>
    %157 = math.rsqrt %156 : vector<128x1xf32>
    %158 = vector.broadcast %157 : vector<128x1xf32> to vector<128x128xf32>
    %159 = arith.mulf %154, %158 : vector<128x128xf32>
    %160 = vector.broadcast %140 : vector<1x128xf32> to vector<128x128xf32>
    %161 = arith.mulf %159, %160 : vector<128x128xf32>
    %162 = vector.broadcast %141 : vector<1x128xf32> to vector<128x128xf32>
    %163 = arith.addf %161, %162 : vector<128x128xf32>
    %164 = arith.truncf %163 : vector<128x128xf32> to vector<128x128xbf16>
    %c0_64 = arith.constant 0 : index
    %c0_65 = arith.constant 0 : index
    %165 = vector.load %arg7[%c0_64, %c0_65] : memref<128x128xbf16, #tpu.memory_space<vmem>>, vector<128x128xbf16>
    %cst_66 = arith.constant dense<0.000000e+00> : vector<128x128xf32>
    %166 = tpu.matmul %164, %165, %cst_66 {dimension_numbers = #tpu.dot_dimension_numbers<[1], [0], [0], [1], [0, 0, 1, 1], [], []>} : vector<128x128xbf16>, vector<128x128xbf16>, vector<128x128xf32> -> vector<128x128xf32>
    %c10 = arith.constant 10 : index
    %c0_67 = arith.constant 0 : index
    %167 = vector.load %arg8[%c10, %c0_67] : memref<16x512xf32, #tpu.memory_space<vmem>>, vector<1x128xf32>
    %168 = vector.broadcast %167 : vector<1x128xf32> to vector<128x128xf32>
    %169 = arith.addf %166, %168 : vector<128x128xf32>
    %c0_68 = arith.constant 0 : index
    %c0_69 = arith.constant 0 : index
    %c0_70 = arith.constant 0 : index
    %170 = vector.load %arg9[%c0_68, %c0_69, %c0_70] : memref<1x128x128xf32, #tpu.memory_space<vmem>>, vector<1x128x128xf32>
    %171 = vector.shape_cast %170 : vector<1x128x128xf32> to vector<128x128xf32>
    %172 = vector.shape_cast %169 : vector<128x128xf32> to vector<1x128x128xf32>
    tpu.vector_store %arg9[%c0_68, %c0_69, %c0_70], %172 {strides = array<i32>} : memref<1x128x128xf32, #tpu.memory_space<vmem>>, vector<1x128x128xf32>,
    return
  }
  func.func @transform_0(%arg0: i32) -> (i32, i32, i32) {
    %c0_i32 = arith.constant 0 : i32
    %c0_i32_0 = arith.constant 0 : i32
    %c0_i32_1 = arith.constant 0 : i32
    return %arg0, %c0_i32, %c0_i32_0 : i32, i32, i32
  }
  func.func @transform_1(%arg0: i32) -> (i32, i32, i32) {
    %c0_i32 = arith.constant 0 : i32
    %c0_i32_0 = arith.constant 0 : i32
    %c0_i32_1 = arith.constant 0 : i32
    return %arg0, %c0_i32, %c0_i32_0 : i32, i32, i32
  }
  func.func @transform_2(%arg0: i32) -> (i32, i32) {
    %c0_i32 = arith.constant 0 : i32
    %c0_i32_0 = arith.constant 0 : i32
    %c0_i32_1 = arith.constant 0 : i32
    return %c0_i32, %c0_i32_0 : i32, i32
  }
  func.func @transform_3(%arg0: i32) -> (i32, i32) {
    %c0_i32 = arith.constant 0 : i32
    %c0_i32_0 = arith.constant 0 : i32
    %c0_i32_1 = arith.constant 0 : i32
    return %c0_i32, %c0_i32_0 : i32, i32
  }
  func.func @transform_4(%arg0: i32) -> (i32, i32) {
    %c0_i32 = arith.constant 0 : i32
    %c0_i32_0 = arith.constant 0 : i32
    %c0_i32_1 = arith.constant 0 : i32
    return %c0_i32, %c0_i32_0 : i32, i32
  }
  func.func @transform_5(%arg0: i32) -> (i32, i32) {
    %c0_i32 = arith.constant 0 : i32
    %c0_i32_0 = arith.constant 0 : i32
    %c0_i32_1 = arith.constant 0 : i32
    return %c0_i32, %c0_i32_0 : i32, i32
  }
  func.func @transform_6(%arg0: i32) -> (i32, i32) {
    %c0_i32 = arith.constant 0 : i32
    %c0_i32_0 = arith.constant 0 : i32
    %c0_i32_1 = arith.constant 0 : i32
    return %c0_i32, %c0_i32_0 : i32, i32
  }
  func.func @transform_7(%arg0: i32) -> (i32, i32) {
    %c0_i32 = arith.constant 0 : i32
    %c0_i32_0 = arith.constant 0 : i32
    %c0_i32_1 = arith.constant 0 : i32
    return %c0_i32, %c0_i32_0 : i32, i32
  }
  func.func @transform_8(%arg0: i32) -> (i32, i32, i32) {
    %c0_i32 = arith.constant 0 : i32
    %c0_i32_0 = arith.constant 0 : i32
    %c0_i32_1 = arith.constant 0 : i32
    return %arg0, %c0_i32, %c0_i32_0 : i32, i32, i32
  }
}

</mosaic_0001>

<bundles_post_ra>
// kernel: unified_hgn_forward.1
= control target key start
LH: loop header
LB: loop body
LE: loop exit
PB: predicated region body
PF: predicated region fallthrough
CT: control target
= control target key end

     0   :  { %s5664_s27 = smov 0   ;;  %s8430_s0 = inlined_call_operand.vmem [shape: f32[2,128,128], index: 0, kind: input, shape index: {}]   ;;  %s8431_s1 = inlined_call_operand.vmem [shape: f32[2,1,128], index: 1, kind: input, shape index: {}]   ;;  %s8432_s2 = inlined_call_operand.vmem [shape: bf16[128,384], index: 2, kind: input, shape index: {}]   ;;  %s8433_s3 = inlined_call_operand.vmem [shape: bf16[128,128], index: 3, kind: input, shape index: {}]   ;;  %s8434_s4 = inlined_call_operand.vmem [shape: bf16[128,512], index: 4, kind: input, shape index: {}]   ;;  %s8435_s5 = inlined_call_operand.vmem [shape: bf16[512,128], index: 5, kind: input, shape index: {}]   ;;  %s8436_s6 = inlined_call_operand.vmem [shape: bf16[128,128], index: 6, kind: input, shape index: {}]   ;;  %s8437_s7 = inlined_call_operand.vmem [shape: f32[16,512], index: 7, kind: input, shape index: {}]   ;;  %s8438_s8 = inlined_call_operand.vmem [shape: f32[2,128,128], index: 8, kind: output, shape index: {}]  }
   0x1 LB: > { %s4748_s28 = sadd.s32 4294967295, %s5616_s27   ;;  %p4752_p0 = scmp.ge.s32.totalorder %s5616_s27, 1  ;;  %s5616_s27 = sphi %s5664_s27, %s18_s27  }
   0x2   : > { %p270_p1 = scmp.lt.s32.totalorder %s5616_s27, 3 }
   0x4   : > { %p271_p2 = pnand %p4752_p0, %p270_p1 }
   0x6   : > { %274 = sbr.rel (%p271_p2) target bundleno = 2786 (0xae2), region = 52 }
   0xb   : > { %p307_p3 = scmp.lt.s32.totalorder %s4748_s28, 1  ;;  %v5618_v7 = vmov 128.0   ;;  %v4844_v51 = vld [vmem:[%s8432_s2 + $0xa8] sm:$0xf]  ;;  %v5203_v52 = vld [vmem:[%s8432_s2 + $0xb0] sm:$0xf0] }
   0xc   : > { %5318 = vrcp.f32 %v5618_v7  ;;  %v5202_v53 = vld [vmem:[%s8432_s2 + $0xac] sm:$0xf]  ;;  %v4845_v54 = vor.u32 %v5203_v52, %v4844_v51  ;;  %v4846_v55 = vld [vmem:[%s8432_s2 + $0xb4] sm:$0xf0]  ;;  %v4852_v56 = vld [vmem:[%s8432_s2 + $0xb0] sm:$0xf] }
   0xd   : > { %s8628_s28 = smov (!%p307_p3, %s4748_s28), 1  ;;  %v5204_v57 = vld [vmem:[%s8432_s2 + $0xb8] sm:$0xf0]  ;;  %v5780_v58 = vor.u32 %v5202_v53, %v4846_v55  ;;  %v4832_v60 = vld [vmem:[%s8432_s2 + $0x90] sm:$0xf] }
   0xe   : > { %s5179_s29 = sshll.u32 %s8628_s28, 7  ;;  %v5782_v59 = vor.u32 %v5204_v57, %v4852_v56  ;;  %5285 = vmatpush.bf16.msra.mxu3 %v4845_v54  ;;  %874 = vmatpush.bf16.msra.mxu0 %v4845_v54  ;;  %v5200_v61 = vld [vmem:[%s8432_s2 + $0x98] sm:$0xf0]  ;;  %v5199_v62 = vld [vmem:[%s8432_s2 + $0x94] sm:$0xf]  ;;  %s314_s20 = scalar_lea.vmem %s8431_s1, %s8628_s28 }
   0xf   : > { %s5680_s10 = scalar_lea.vmem %s8430_s0, %s5179_s29  ;;  %5293 = vmatpush.bf16.msra.mxu1 %v5780_v58  ;;  %v4833_v63 = vor.u32 %v5200_v61, %v4832_v60  ;;  %v5196_v7 = vld [vmem:[%s8432_s2 + $0x7c] sm:$0xf]  ;;  %v5187_v51 = vld [vmem:[%s8432_s2 + $0x34] sm:$0xf]  ;;  %v4786_v53 = vld [vmem:[%s8432_s2 + $0x3c] sm:$0xf0]  ;;  %s8368_s22 = scalar_lea.vmem %s8438_s8, %s5179_s29 }
  0x10   : > { %v326_v0 = vld [vmem:[%s5680_s10 + $0x30] sm:$0xff]  ;;  %v324_v1 = vld [vmem:[%s5680_s10 + $0x20] sm:$0xff]  ;;  %v327_v3 = vld [vmem:[%s5680_s10 + $0x38] sm:$0xff]  ;;  %5301 = vmatpush.bf16.msra.mxu2 %v5782_v59  ;;  %v5900_v56 = vor.u32 %v5187_v51, %v4786_v53 }
  0x11   : > { %350 = vadd.xlane.f32.xlu1 %v326_v0  ;;  %346 = vadd.xlane.f32.xlu0 %v324_v1  ;;  %v328_v2 = vld [vmem:[%s5680_s10 + $0x40] sm:$0xff]  ;;  %v325_v4 = vld [vmem:[%s5680_s10 + $0x28] sm:$0xff]  ;;  %v330_v6 = vld [vmem:[%s5680_s10 + $0x50] sm:$0xff] }
  0x12   : > { %354 = vadd.xlane.f32.xlu2 %v328_v2  ;;  %v329_v5 = vld [vmem:[%s5680_s10 + $0x48] sm:$0xff]  ;;  %v5319_v8 = vpop.eup %5318  ;;  %v5705_v28 = vld [vmem:[%s5680_s10 + $0x58] sm:$0xff]  ;;  %v5720_v36 = vld [vmem:[%s5680_s10 + $0x60] sm:$0xff]  ;;  %5286 = vmatpush.bf16.msra.mxu3 %v4833_v63 }
  0x13   : > { %v371_v9 = vmul.f32 128.0, %v5319_v8  ;;  %vm375_vm0 = vweird.f32 %v5319_v8  ;;  %v5731_v42 = vld [vmem:[%s5680_s10 + $0x8] sm:$0xff]  ;;  %v5743_v46 = vld [vmem:[%s5680_s10 + $0x70] sm:$0xff]  ;;  %v5746_v47 = vld [vmem:[%s5680_s10] sm:$0xff]  ;;  %875 = vmatpush.bf16.msra.mxu0 %v4833_v63 }
  0x14   : > { %v5734_v43 = vld [vmem:[%s5680_s10 + $0x68] sm:$0xff]  ;;  %v5751_v48 = vld [vmem:[%s5680_s10 + $0x18] sm:$0xff]  ;;  %v5759_v50 = vld [vmem:[%s5680_s10 + $0x10] sm:$0xff] }
  0x15   : > { %v372_v10 = vsub.f32 1.0, %v371_v9  ;;  %v5754_v49 = vld [vmem:[%s5680_s10 + $0x78] sm:$0xff]  ;;  %v4822_v9 = vld [vmem:[%s8432_s2 + $0x84] sm:$0xf0]  ;;  %v5189_v55 = vld [vmem:[%s8432_s2 + $0x40] sm:$0xf0] }
  0x16   : > { %v4792_v54 = vld [vmem:[%s8432_s2 + $0x38] sm:$0xf]  ;;  %v5185_v61 = vld [vmem:[%s8432_s2 + $0x20] sm:$0xf0] }
  0x17   : > { %v373_v11 = vmul.f32 %v5319_v8, %v372_v10  ;;  %v4828_v10 = vld [vmem:[%s8432_s2 + $0x80] sm:$0xf]  ;;  %v5902_v57 = vor.u32 %v5189_v55, %v4792_v54  ;;  %v4772_v60 = vld [vmem:[%s8432_s2 + $0x18] sm:$0xf] }
  0x19   : > { %352 = vadd.xlane.f32.xlu1 %v327_v3  ;;  %348 = vadd.xlane.f32.xlu0 %v325_v4  ;;  %v374_v12 = vadd.f32 %v5319_v8, %v373_v11  ;;  %v5198_v11 = vld [vmem:[%s8432_s2 + $0x88] sm:$0xf0] }
  0x1a   : > { %356 = vadd.xlane.f32.xlu2 %v329_v5 }
  0x1b   : > { %v5689_v13 = vsel %vm375_vm0, %v5319_v8, %v374_v12  ;;  %v5828_v12 = vor.u32 %v5196_v7, %v4822_v9 }
  0x1c   : > { %8487 = vst [vmem:[#allocation2_spill] sm:$0xff] %v5689_v13 }
  0x22   : > { %358 = vadd.xlane.f32.xlu2 %v330_v6 }
  0x84   : > { %v351_v14 = vpop.xlane.xlu1 %350  ;;  %v347_v15 = vpop.xlane.xlu0 %346 }
  0x85   : > { %v381_v16 = vmul.f32 %v5689_v13, %v347_v15  ;;  %v355_v18 = vpop.xlane.xlu2 %354  ;;  %v383_v27 = vmul.f32 %v5689_v13, %v351_v14  ;;  %v5830_v14 = vor.u32 %v5198_v11, %v4828_v10  ;;  %v4808_v15 = vld [vmem:[%s8432_s2 + $0x60] sm:$0xf]  ;;  %v5182_v11 = vld [vmem:[%s8432_s2 + $0x8] sm:$0xf0] }
  0x86   : > { %v385_v26 = vmul.f32 %v5689_v13, %v355_v18  ;;  %v5193_v18 = vld [vmem:[%s8432_s2 + $0x64] sm:$0xf]  ;;  %v4760_v10 = vld [vmem:[%s8432_s2] sm:$0xf] }
  0x87   : > { %v5692_v17 = vsub.f32 %v324_v1, %v381_v16  ;;  %v5714_v33 = vsub.f32 %v326_v0, %v383_v27  ;;  %v4834_v0 = vld [vmem:[%s8432_s2 + $0x9c] sm:$0xf0]  ;;  %v4840_v1 = vld [vmem:[%s8432_s2 + $0x98] sm:$0xf]  ;;  %v5194_v16 = vld [vmem:[%s8432_s2 + $0x68] sm:$0xf0] }
  0x88   : > { %v5712_v32 = vsub.f32 %v328_v2, %v385_v26  ;;  %v5201_v2 = vld [vmem:[%s8432_s2 + $0xa0] sm:$0xf0]  ;;  %v4796_v27 = vld [vmem:[%s8432_s2 + $0x48] sm:$0xf] }
  0x89   : > { %v413_v19 = vmul.f32 %v5692_v17, %v5692_v17  ;;  %v415_v37 = vmul.f32 %v5714_v33, %v5714_v33 }
  0x8a   : > { %v417_v34 = vmul.f32 %v5712_v32, %v5712_v32 }
  0x8b   : > { %433 = vadd.xlane.f32.xlu0 %v413_v19  ;;  %v4809_v19 = vor.u32 %v5194_v16, %v4808_v15  ;;  %v4761_v15 = vor.u32 %v5182_v11, %v4760_v10  ;;  %v5181_v16 = vld [vmem:[%s8432_s2 + $0x4] sm:$0xf] }
  0x8c   : > { %v353_v20 = vpop.xlane.xlu1 %352  ;;  %v349_v21 = vpop.xlane.xlu0 %348 }
  0x8d   : > { %v384_v22 = vmul.f32 %v5689_v13, %v353_v20  ;;  %v382_v23 = vmul.f32 %v5689_v13, %v349_v21  ;;  %v357_v31 = vpop.xlane.xlu2 %356  ;;  %v4810_v20 = vld [vmem:[%s8432_s2 + $0x6c] sm:$0xf0]  ;;  %v4816_v21 = vld [vmem:[%s8432_s2 + $0x68] sm:$0xf] }
  0x8e   : > { %v386_v35 = vmul.f32 %v5689_v13, %v357_v31 }
  0x8f   : > { %v5698_v24 = vsub.f32 %v327_v3, %v384_v22  ;;  %v5700_v25 = vsub.f32 %v325_v4, %v382_v23  ;;  %v5804_v3 = vor.u32 %v5199_v62, %v4834_v0  ;;  %v5806_v4 = vor.u32 %v5201_v2, %v4840_v1  ;;  %v5195_v22 = vld [vmem:[%s8432_s2 + $0x70] sm:$0xf0]  ;;  %v5184_v62 = vld [vmem:[%s8432_s2 + $0x1c] sm:$0xf]  ;;  %v4774_v1 = vld [vmem:[%s8432_s2 + $0x24] sm:$0xf0] }
  0x90   : > { %v5725_v38 = vsub.f32 %v329_v5, %v386_v35  ;;  %v4820_v5 = vld [vmem:[%s8432_s2 + $0x78] sm:$0xf]  ;;  %v5852_v23 = vor.u32 %v5193_v18, %v4810_v20  ;;  %v5854_v26 = vor.u32 %v5195_v22, %v4816_v21  ;;  %v4804_v35 = vld [vmem:[%s8432_s2 + $0x50] sm:$0xf]  ;;  %v4773_v0 = vor.u32 %v5185_v61, %v4772_v60  ;;  %v4780_v2 = vld [vmem:[%s8432_s2 + $0x20] sm:$0xf] }
  0x91   : > { %v416_v29 = vmul.f32 %v5698_v24, %v5698_v24  ;;  %v414_v30 = vmul.f32 %v5700_v25, %v5700_v25  ;;  %5294 = vmatpush.bf16.msra.mxu1 %v5804_v3  ;;  %5302 = vmatpush.bf16.msra.mxu2 %v5806_v4  ;;  %v5925_v7 = vor.u32 %v5184_v62, %v4774_v1  ;;  %v4762_v18 = vld [vmem:[%s8432_s2 + $0xc] sm:$0xf0]  ;;  %v5183_v21 = vld [vmem:[%s8432_s2 + $0x10] sm:$0xf0] }
  0x92   : > { %v418_v40 = vmul.f32 %v5725_v38, %v5725_v38  ;;  %v5946_v20 = vor.u32 %v5181_v16, %v4762_v18 }
  0x93   : > { %439 = vadd.xlane.f32.xlu2 %v416_v29  ;;  %360 = vadd.xlane.f32.xlu0 %v5705_v28  ;;  %v5191_v29 = vld [vmem:[%s8432_s2 + $0x50] sm:$0xf0] }
  0x94   : > { %435 = vadd.xlane.f32.xlu1 %v414_v30  ;;  %v5190_v30 = vld [vmem:[%s8432_s2 + $0x4c] sm:$0xf]  ;;  %v4797_v31 = vor.u32 %v5191_v29, %v4796_v27 }
  0x95   : > { %v359_v39 = vpop.xlane.xlu2 %358  ;;  %5295 = vmatpush.bf16.msra.mxu1 %v5828_v12  ;;  %5303 = vmatpush.bf16.msra.mxu2 %v5830_v14 }
  0x96   : > { %v387_v41 = vmul.f32 %v5689_v13, %v359_v39 }
  0x98   : > { %v5737_v44 = vsub.f32 %v330_v6, %v387_v41  ;;  %v5197_v6 = vld [vmem:[%s8432_s2 + $0x80] sm:$0xf0]  ;;  %v4784_v41 = vld [vmem:[%s8432_s2 + $0x30] sm:$0xf] }
  0x99   : > { %v4821_v8 = vor.u32 %v5197_v6, %v4820_v5  ;;  %5296 = vmatpush.bf16.msra.mxu1 %v5852_v23  ;;  %5304 = vmatpush.bf16.msra.mxu2 %v5854_v26  ;;  %v5186_v5 = vld [vmem:[%s8432_s2 + $0x28] sm:$0xf0] }
  0x9a   : > { %v419_v45 = vmul.f32 %v5737_v44, %v5737_v44 }
  0x9b   : > { %441 = vadd.xlane.f32.xlu2 %v417_v34  ;;  %362 = vadd.xlane.f32.xlu0 %v5720_v36  ;;  %v4798_v34 = vld [vmem:[%s8432_s2 + $0x54] sm:$0xf0] }
  0x9c   : > { %437 = vadd.xlane.f32.xlu1 %v415_v37  ;;  %5287 = vmatpush.bf16.msra.mxu3 %v4821_v8  ;;  %v5192_v37 = vld [vmem:[%s8432_s2 + $0x58] sm:$0xf0]  ;;  %v5876_v39 = vor.u32 %v5190_v30, %v4798_v34 }
  0x9d   : > { %876 = vmatpush.bf16.msra.mxu0 %v4821_v8  ;;  %v5927_v8 = vor.u32 %v5186_v5, %v4780_v2 }
  0x9e   : > { %5297 = vmatpush.bf16.msra.mxu1 %v5876_v39 }
  0xa0   : > { %5288 = vmatpush.bf16.msra.mxu3 %v4809_v19 }
  0xa1   : > { %877 = vmatpush.bf16.msra.mxu0 %v4809_v19  ;;  %v4768_v19 = vld [vmem:[%s8432_s2 + $0x8] sm:$0xf] }
  0xa2   : > { %5298 = vmatpush.bf16.msra.mxu1 %v5900_v56  ;;  %v5951_v22 = vor.u32 %v5183_v21, %v4768_v19 }
  0xa3   : > { %443 = vadd.xlane.f32.xlu0 %v418_v40  ;;  %340 = vadd.xlane.f32.xlu2 %v5731_v42  ;;  %v5878_v40 = vor.u32 %v5192_v37, %v4804_v35 }
  0xa4   : > { %364 = vadd.xlane.f32.xlu1 %v5734_v43  ;;  %5289 = vmatpush.bf16.msra.mxu3 %v4797_v31 }
  0xa5   : > { %878 = vmatpush.bf16.msra.mxu0 %v4797_v31  ;;  %5305 = vmatpush.bf16.msra.mxu2 %v5878_v40 }
  0xa6   : > { %5299 = vmatpush.bf16.msra.mxu1 %v5925_v7 }
  0xa9   : > { %5306 = vmatpush.bf16.msra.mxu2 %v5902_v57 }
  0xaa   : > { %5300 = vmatpush.bf16.msra.mxu1 %v5946_v20 }
  0xab   : > { %366 = vadd.xlane.f32.xlu0 %v5743_v46  ;;  %445 = vadd.xlane.f32.xlu2 %v419_v45  ;;  %v5188_v45 = vld [vmem:[%s8432_s2 + $0x38] sm:$0xf0] }
  0xac   : > { %338 = vadd.xlane.f32.xlu1 %v5746_v47  ;;  %v4785_v52 = vor.u32 %v5188_v45, %v4784_v41 }
  0xad   : > { %5307 = vmatpush.bf16.msra.mxu2 %v5927_v8 }
  0xae   : > { %5290 = vmatpush.bf16.msra.mxu3 %v4785_v52  ;;  %879 = vmatpush.bf16.msra.mxu0 %v4785_v52 }
  0xb1   : > { %5308 = vmatpush.bf16.msra.mxu2 %v5951_v22 }
  0xb2   : > { %5291 = vmatpush.bf16.msra.mxu3 %v4773_v0  ;;  %880 = vmatpush.bf16.msra.mxu0 %v4773_v0 }
  0xb3   : > { %344 = vadd.xlane.f32.xlu2 %v5751_v48 }
  0xb4   : > { %368 = vadd.xlane.f32.xlu1 %v5754_v49 }
  0xb6   : > { %5292 = vmatpush.bf16.msra.mxu3 %v4761_v15  ;;  %881 = vmatpush.bf16.msra.mxu0 %v4761_v15 }
  0xba   : > { %923 = vmatpush.bf16.msrb.mxu0 %v5780_v58 }
  0xbc   : > { %342 = vadd.xlane.f32.xlu1 %v5759_v50 }
  0xbe   : > { %924 = vmatpush.bf16.msrb.mxu0 %v5804_v3 }
  0xc2   : > { %925 = vmatpush.bf16.msrb.mxu0 %v5828_v12 }
  0xc6   : > { %926 = vmatpush.bf16.msrb.mxu0 %v5852_v23 }
  0xca   : > { %927 = vmatpush.bf16.msrb.mxu0 %v5876_v39 }
  0xce   : > { %928 = vmatpush.bf16.msrb.mxu0 %v5900_v56 }
  0xd2   : > { %929 = vmatpush.bf16.msrb.mxu0 %v5925_v7 }
  0xd6   : > { %930 = vmatpush.bf16.msrb.mxu0 %v5946_v20 }
  0xfe   : > { %v434_v63 = vpop.xlane.xlu0 %433 }
  0xff   : > { %v461_v6 = vmul.f32 %v434_v63, %v5689_v13 }
 0x101   : > { %v477_v9 = vadd.f32 1e-12, %v461_v6 }
 0x103   : > { %5320 = vrsqrt.f32 %v477_v9  ;;  %vm535_vm2 = vweird.f32 %v477_v9 }
 0x106   : > { %v440_v27 = vpop.xlane.xlu2 %439  ;;  %v361_v29 = vpop.xlane.xlu0 %360 }
 0x107   : > { %v464_v30 = vmul.f32 %v440_v27, %v5689_v13  ;;  %v436_v31 = vpop.xlane.xlu1 %435  ;;  %v388_v34 = vmul.f32 %v5689_v13, %v361_v29 }
 0x108   : > { %v462_v35 = vmul.f32 %v436_v31, %v5689_v13 }
 0x109   : > { %v5321_v37 = vpop.eup %5320  ;;  %v5959_v41 = vadd.f32 1e-12, %v464_v30  ;;  %v5962_v45 = vsub.f32 %v5705_v28, %v388_v34 }
 0x10a   : > { %v530_v58 = vmul.f32 %v5321_v37, %v477_v9  ;;  %v478_v51 = vadd.f32 1e-12, %v462_v35  ;;  %vm536_vm1 = vweird.f32 %v5321_v37 }
 0x10b   : > { %5322 = vrsqrt.f32 %v5959_v41  ;;  %v420_v52 = vmul.f32 %v5962_v45, %v5962_v45  ;;  %vm5988_vm3 = vmor %vm535_vm2, %vm536_vm1  ;;  %vm565_vm7 = vweird.f32 %v5959_v41 }
 0x10c   : > { %v531_v53 = vmul.f32 %v5321_v37, %v530_v58  ;;  %5324 = vrsqrt.f32 %v478_v51  ;;  %vm545_vm5 = vweird.f32 %v478_v51 }
 0x10d   : > { %447 = vadd.xlane.f32.xlu0 %v420_v52 }
 0x10e   : > { %v532_v54 = vmul.f32 0.5, %v531_v53  ;;  %v442_v55 = vpop.xlane.xlu2 %441  ;;  %v363_v60 = vpop.xlane.xlu0 %362 }
 0x10f   : > { %v438_v61 = vpop.xlane.xlu1 %437  ;;  %v389_v28 = vmul.f32 %v5689_v13, %v363_v60  ;;  %v465_v2 = vmul.f32 %v442_v55, %v5689_v13 }
 0x110   : > { %v533_v62 = vsub.f32 1.5, %v532_v54  ;;  %v463_v3 = vmul.f32 %v438_v61, %v5689_v13 }
 0x111   : > { %v5971_v63 = vpop.eup %5322  ;;  %v5974_v0 = vsub.f32 %v5720_v36, %v389_v28  ;;  %v5986_v23 = vadd.f32 1e-12, %v465_v2 }
 0x112   : > { %v5325_v1 = vpop.eup %5324  ;;  %v5978_v12 = vadd.f32 1e-12, %v463_v3  ;;  %v534_v6 = vmul.f32 %v5321_v37, %v533_v62  ;;  %v560_v10 = vmul.f32 %v5971_v63, %v5959_v41  ;;  %vm566_vm8 = vweird.f32 %v5971_v63 }
 0x113   : > { %v540_v5 = vmul.f32 %v5325_v1, %v478_v51  ;;  %v421_v36 = vmul.f32 %v5974_v0, %v5974_v0  ;;  %vm546_vm4 = vweird.f32 %v5325_v1  ;;  %v6019_v51 = vld [vmem:[%s8437_s7] ss:$0 sm:$0xff]  ;;  %vm6062_vm11 = vmor %vm565_vm7, %vm566_vm8  ;;  %vm575_vm15 = vweird.f32 %v5986_v23 }
 0x114   : > { %5326 = vrsqrt.f32 %v5978_v12  ;;  %v538_v30 = vsel %vm5988_vm3, %v5321_v37, %v534_v6  ;;  %v561_v39 = vmul.f32 %v5971_v63, %v560_v10  ;;  %vm547_vm6 = vmor %vm545_vm5, %vm546_vm4  ;;  %vm555_vm10 = vweird.f32 %v5978_v12 }
 0x115   : > { %v541_v11 = vmul.f32 %v5325_v1, %v540_v5  ;;  %449 = vadd.xlane.f32.xlu0 %v421_v36  ;;  %5328 = vrsqrt.f32 %v5986_v23  ;;  %v653_v52 = vmul.f32 %v538_v30, %v5692_v17 }
 0x116   : > { %v444_v15 = vpop.xlane.xlu0 %443  ;;  %v341_v16 = vpop.xlane.xlu2 %340 }
 0x117   : > { %v542_v19 = vmul.f32 0.5, %v541_v11  ;;  %v365_v21 = vpop.xlane.xlu1 %364  ;;  %v466_v27 = vmul.f32 %v444_v15, %v5689_v13  ;;  %v378_v29 = vmul.f32 %v5689_v13, %v341_v16 }
 0x118   : > { %v390_v9 = vmul.f32 %v5689_v13, %v365_v21 }
 0x119   : > { %v543_v31 = vsub.f32 1.5, %v542_v19  ;;  %v5998_v34 = vadd.f32 1e-12, %v466_v27  ;;  %v6001_v35 = vsub.f32 %v5731_v42, %v378_v29  ;;  %v562_v42 = vmul.f32 0.5, %v561_v39 }
 0x11a   : > { %v6004_v58 = vpop.eup %5326  ;;  %v6008_v37 = vsub.f32 %v5734_v43, %v390_v9 }
 0x11b   : > { %v544_v53 = vmul.f32 %v5325_v1, %v543_v31  ;;  %v550_v54 = vmul.f32 %v6004_v58, %v5978_v12  ;;  %5330 = vrsqrt.f32 %v5998_v34  ;;  %v410_v56 = vmul.f32 %v6001_v35, %v6001_v35  ;;  %v6030_v5 = vpop.eup %5328 }
 0x11c   : > { %v422_v17 = vmul.f32 %v6008_v37, %v6008_v37  ;;  %v563_v6 = vsub.f32 1.5, %v562_v42  ;;  %vm556_vm9 = vweird.f32 %v6004_v58  ;;  %vm585_vm13 = vweird.f32 %v5998_v34 }
 0x11d   : > { %v548_v43 = vsel %vm547_vm6, %v5325_v1, %v544_v53  ;;  %v551_v55 = vmul.f32 %v6004_v58, %v550_v54  ;;  %427 = vadd.xlane.f32.xlu0 %v410_v56  ;;  %v669_v1 = vmul.f32 %v653_v52, %v6019_v51  ;;  %vm557_vm12 = vmor %vm555_vm10, %vm556_vm9  ;;  %vm576_vm0 = vweird.f32 %v6030_v5 }
 0x11e   : > { %v654_v60 = vmul.f32 %v548_v43, %v5700_v25  ;;  %v367_v61 = vpop.xlane.xlu0 %366  ;;  %v6026_v28 = vpop.xlane.xlu2 %445  ;;  %451 = vadd.xlane.f32.xlu1 %v422_v17  ;;  %v6036_v25 = vld [vmem:[%s8437_s7 + $0x1] ss:$0 sm:$0xff]  ;;  %v564_v20 = vmul.f32 %v5971_v63, %v563_v6  ;;  %vm577_vm2 = vmor %vm575_vm15, %vm576_vm0 }
 0x11f   : > { %v552_v62 = vmul.f32 0.5, %v551_v55  ;;  %v391_v3 = vmul.f32 %v5689_v13, %v367_v61  ;;  %v339_v2 = vpop.xlane.xlu1 %338  ;;  %v6056_v41 = vadd.f32 %v669_v1, %v6036_v25 }
 0x120   : > { %v377_v10 = vmul.f32 %v5689_v13, %v339_v2  ;;  %v670_v7 = vmul.f32 %v654_v60, %v6019_v51  ;;  %v568_v53 = vsel %vm6062_vm11, %v5971_v63, %v564_v20 }
 0x121   : > { %v6039_v11 = vpop.eup %5330  ;;  %v553_v36 = vsub.f32 1.5, %v552_v62  ;;  %v6044_v15 = vsub.f32 %v5743_v46, %v391_v3  ;;  %v656_v17 = vmul.f32 %v568_v53, %v5698_v24 }
 0x122   : > { %v580_v16 = vmul.f32 %v6039_v11, %v5998_v34  ;;  %v6051_v18 = vsub.f32 %v5746_v47, %v377_v10  ;;  %v6059_v46 = vadd.f32 %v670_v7, %v6036_v25  ;;  %v570_v47 = vmul.f32 %v6030_v5, %v5986_v23 }
 0x123   : > { %v554_v19 = vmul.f32 %v6004_v58, %v553_v36  ;;  %v423_v27 = vmul.f32 %v6044_v15, %v6044_v15  ;;  %vm586_vm14 = vweird.f32 %v6039_v11 }
 0x124   : > { %v409_v12 = vmul.f32 %v6051_v18, %v6051_v18  ;;  %v699_v29 = vpack.c.bf16 %v6059_v46, %v6056_v41  ;;  %v581_v39 = vmul.f32 %v6039_v11, %v580_v16  ;;  %v571_v54 = vmul.f32 %v6030_v5, %v570_v47  ;;  %vm587_vm1 = vmor %vm585_vm13, %vm586_vm14 }
 0x125   : > { %v558_v30 = vsel %vm557_vm12, %v6004_v58, %v554_v19 }
 0x126   : > { %425 = vadd.xlane.f32.xlu2 %v409_v12  ;;  %v345_v9 = vpop.xlane.xlu2 %344  ;;  %892 = vmatmul.bf16.vlgmr.msra.gmra.mxu3 %v699_v29  ;;  %v655_v58 = vmul.f32 %v558_v30, %v5714_v33  ;;  %v582_v43 = vmul.f32 0.5, %v581_v39  ;;  %v572_v60 = vmul.f32 0.5, %v571_v54 }
 0x127   : > { %941 = vmatmul.bf16.vlgmr.msra.gmra.mxu1 %v699_v29  ;;  %v380_v31 = vmul.f32 %v5689_v13, %v345_v9  ;;  %v369_v52 = vpop.xlane.xlu1 %368  ;;  %990 = vmatmul.bf16.vlgmr.msra.gmra.mxu2 %v699_v29 }
 0x128   : > { %453 = vadd.xlane.f32.xlu1 %v423_v27  ;;  %v392_v42 = vmul.f32 %v5689_v13, %v369_v52  ;;  %v671_v62 = vmul.f32 %v655_v58, %v6019_v51  ;;  %v583_v3 = vsub.f32 1.5, %v582_v43  ;;  %v573_v2 = vsub.f32 1.5, %v572_v60 }
 0x129   : > { %v6084_v56 = vsub.f32 %v5751_v48, %v380_v31  ;;  %v672_v48 = vmul.f32 %v656_v17, %v6019_v51 }
 0x12a   : > { %v6087_v55 = vsub.f32 %v5754_v49, %v392_v42  ;;  %v6098_v24 = vadd.f32 %v671_v62, %v6036_v25  ;;  %v584_v1 = vmul.f32 %v6039_v11, %v583_v3  ;;  %v574_v7 = vmul.f32 %v6030_v5, %v573_v2 }
 0x12b   : > { %v412_v63 = vmul.f32 %v6084_v56, %v6084_v56  ;;  %v6107_v10 = vadd.f32 %v672_v48, %v6036_v25 }
 0x12c   : > { %v424_v61 = vmul.f32 %v6087_v55, %v6087_v55  ;;  %v588_v16 = vsel %vm587_vm1, %v6039_v11, %v584_v1 }
 0x12d   : > { %v700_v34 = vpack.c.bf16 %v6107_v10, %v6098_v24  ;;  %v658_v23 = vmul.f32 %v588_v16, %v5725_v38  ;;  %v467_v38 = vmul.f32 %v6026_v28, %v5689_v13 }
 0x12e   : > { %455 = vadd.xlane.f32.xlu2 %v424_v61 }
 0x12f   : > { %v343_v33 = vpop.xlane.xlu1 %342  ;;  %v674_v20 = vmul.f32 %v658_v23, %v6019_v51 }
 0x130   : > { %431 = vadd.xlane.f32.xlu1 %v412_v63  ;;  %v379_v49 = vmul.f32 %v5689_v13, %v343_v33 }
 0x131   : > { %v6123_v47 = vadd.f32 %v674_v20, %v6036_v25 }
 0x132   : > { %v6104_v6 = vsub.f32 %v5759_v50, %v379_v49  ;;  %v578_v50 = vsel %vm577_vm2, %v6030_v5, %v574_v7 }
 0x133   : > { %v657_v19 = vmul.f32 %v578_v50, %v5712_v32  ;;  %v483_v32 = vadd.f32 1e-12, %v467_v38 }
 0x134   : > { %v411_v36 = vmul.f32 %v6104_v6, %v6104_v6 }
 0x135   : > { %v673_v21 = vmul.f32 %v657_v19, %v6019_v51  ;;  %5332 = vrsqrt.f32 %v483_v32  ;;  %vm595_vm3 = vweird.f32 %v483_v32 }
 0x136   : > { %429 = vadd.xlane.f32.xlu0 %v411_v36  ;;  %897 = vmatmul.bf16.gmra.mxu3 %v700_v34 }
 0x137   : > { %946 = vmatmul.bf16.gmra.mxu1 %v700_v34  ;;  %995 = vmatmul.bf16.gmra.mxu2 %v700_v34  ;;  %v6126_v11 = vadd.f32 %v673_v21, %v6036_v25 }
 0x139   : > { %v701_v27 = vpack.c.bf16 %v6123_v47, %v6126_v11 }
 0x13b   : > { %v5333_v5 = vpop.eup %5332 }
 0x13c   : > { %v590_v12 = vmul.f32 %v5333_v5, %v483_v32  ;;  %vm596_vm4 = vweird.f32 %v5333_v5 }
 0x13d   : > { %vm597_vm5 = vmor %vm595_vm3, %vm596_vm4 }
 0x13e   : > { %v591_v29 = vmul.f32 %v5333_v5, %v590_v12 }
 0x140   : > { %v592_v31 = vmul.f32 0.5, %v591_v29 }
 0x142   : > { %v593_v52 = vsub.f32 1.5, %v592_v31 }
 0x144   : > { %v594_v58 = vmul.f32 %v5333_v5, %v593_v52 }
 0x146   : > { %902 = vmatmul.bf16.gmra.mxu3 %v701_v27  ;;  %v598_v60 = vsel %vm597_vm5, %v5333_v5, %v594_v58 }
 0x147   : > { %951 = vmatmul.bf16.gmra.mxu1 %v701_v27  ;;  %1000 = vmatmul.bf16.gmra.mxu2 %v701_v27  ;;  %v659_v33 = vmul.f32 %v598_v60, %v5737_v44 }
 0x149   : > { %v675_v23 = vmul.f32 %v659_v33, %v6019_v51 }
 0x14b   : > { %v6142_v32 = vadd.f32 %v675_v23, %v6036_v25 }
 0x180   : > { %v448_v30 = vpop.xlane.xlu0 %447 }
 0x181   : > { %v468_v39 = vmul.f32 %v448_v30, %v5689_v13 }
 0x183   : > { %v484_v9 = vadd.f32 1e-12, %v468_v39 }
 0x185   : > { %5334 = vrsqrt.f32 %v484_v9  ;;  %vm605_vm7 = vweird.f32 %v484_v9 }
 0x188   : > { %v450_v53 = vpop.xlane.xlu0 %449 }
 0x189   : > { %v469_v42 = vmul.f32 %v450_v53, %v5689_v13 }
 0x18b   : > { %v5335_v54 = vpop.eup %5334  ;;  %v485_v43 = vadd.f32 1e-12, %v469_v42 }
 0x18c   : > { %v600_v28 = vmul.f32 %v5335_v54, %v484_v9  ;;  %vm606_vm6 = vweird.f32 %v5335_v54 }
 0x18d   : > { %5336 = vrsqrt.f32 %v485_v43  ;;  %vm607_vm8 = vmor %vm605_vm7, %vm606_vm6  ;;  %vm615_vm9 = vweird.f32 %v485_v43 }
 0x18e   : > { %v601_v17 = vmul.f32 %v5335_v54, %v600_v28 }
 0x190   : > { %v602_v63 = vmul.f32 0.5, %v601_v17  ;;  %v428_v62 = vpop.xlane.xlu0 %427 }
 0x191   : > { %v452_v3 = vpop.xlane.xlu1 %451  ;;  %v458_v48 = vmul.f32 %v428_v62, %v5689_v13 }
 0x192   : > { %v603_v61 = vsub.f32 1.5, %v602_v63  ;;  %v470_v2 = vmul.f32 %v452_v3, %v5689_v13 }
 0x193   : > { %v5337_v1 = vpop.eup %5336  ;;  %v474_v7 = vadd.f32 1e-12, %v458_v48 }
 0x194   : > { %v604_v49 = vmul.f32 %v5335_v54, %v603_v61  ;;  %v486_v36 = vadd.f32 1e-12, %v470_v2  ;;  %v610_v16 = vmul.f32 %v5337_v1, %v485_v43  ;;  %vm616_vm10 = vweird.f32 %v5337_v1 }
 0x195   : > { %5338 = vrsqrt.f32 %v474_v7  ;;  %vm617_vm11 = vmor %vm615_vm9, %vm616_vm10  ;;  %vm505_vm12 = vweird.f32 %v474_v7 }
 0x196   : > { %v608_v34 = vsel %vm607_vm8, %v5335_v54, %v604_v49  ;;  %v611_v19 = vmul.f32 %v5337_v1, %v610_v16  ;;  %5340 = vrsqrt.f32 %v486_v36  ;;  %vm625_vm0 = vweird.f32 %v486_v36 }
 0x197   : > { %v660_v50 = vmul.f32 %v608_v34, %v5962_v45 }
 0x198   : > { %v612_v21 = vmul.f32 0.5, %v611_v19 }
 0x199   : > { %v426_v44 = vpop.xlane.xlu2 %425  ;;  %v676_v20 = vmul.f32 %v660_v50, %v6019_v51 }
 0x19a   : > { %v457_v27 = vmul.f32 %v426_v44, %v5689_v13  ;;  %v613_v12 = vsub.f32 1.5, %v612_v21 }
 0x19b   : > { %v454_v38 = vpop.xlane.xlu1 %453  ;;  %v6145_v5 = vadd.f32 %v676_v20, %v6036_v25  ;;  %v5339_v30 = vpop.eup %5338 }
 0x19c   : > { %v6147_v45 = vadd.f32 1e-12, %v457_v27  ;;  %v471_v29 = vmul.f32 %v454_v38, %v5689_v13  ;;  %v5341_v9 = vpop.eup %5340  ;;  %v614_v31 = vmul.f32 %v5337_v1, %v613_v12  ;;  %v500_v52 = vmul.f32 %v5339_v30, %v474_v7 }
 0x19d   : > { %v702_v39 = vpack.c.bf16 %v6145_v5, %v6142_v32  ;;  %v620_v53 = vmul.f32 %v5341_v9, %v486_v36  ;;  %vm506_vm13 = vweird.f32 %v5339_v30  ;;  %vm626_vm14 = vweird.f32 %v5341_v9 }
 0x19e   : > { %5342 = vrsqrt.f32 %v6147_v45  ;;  %v6153_v54 = vadd.f32 1e-12, %v471_v29  ;;  %v501_v42 = vmul.f32 %v5339_v30, %v500_v52  ;;  %v618_v43 = vsel %vm617_vm11, %v5337_v1, %v614_v31  ;;  %vm6162_vm15 = vmor %vm505_vm12, %vm506_vm13 }
 0x19f   : > { %907 = vmatmul.bf16.gmra.mxu3 %v702_v39  ;;  %956 = vmatmul.bf16.gmra.mxu1 %v702_v39  ;;  %v621_v58 = vmul.f32 %v5341_v9, %v620_v53  ;;  %v661_v2 = vmul.f32 %v618_v43, %v5974_v0  ;;  %vm627_vm1 = vmor %vm625_vm0, %vm626_vm14  ;;  %vm495_vm2 = vweird.f32 %v6147_v45 }
 0x1a0   : > { %1005 = vmatmul.bf16.gmra.mxu2 %v702_v39  ;;  %5344 = vrsqrt.f32 %v6153_v54  ;;  %v502_v17 = vmul.f32 0.5, %v501_v42  ;;  %vm635_vm4 = vweird.f32 %v6153_v54 }
 0x1a1   : > { %v456_v28 = vpop.xlane.xlu2 %455  ;;  %v622_v63 = vmul.f32 0.5, %v621_v58  ;;  %v677_v38 = vmul.f32 %v661_v2, %v6019_v51 }
 0x1a2   : > { %v472_v60 = vmul.f32 %v456_v28, %v5689_v13  ;;  %v503_v3 = vsub.f32 1.5, %v502_v17 }
 0x1a3   : > { %v432_v61 = vpop.xlane.xlu1 %431  ;;  %v623_v49 = vsub.f32 1.5, %v622_v63 }
 0x1a4   : > { %v5343_v62 = vpop.eup %5342  ;;  %v6157_v33 = vadd.f32 1e-12, %v472_v60  ;;  %v460_v48 = vmul.f32 %v432_v61, %v5689_v13  ;;  %v504_v1 = vmul.f32 %v5339_v30, %v503_v3 }
 0x1a5   : > { %v490_v34 = vmul.f32 %v5343_v62, %v6147_v45  ;;  %v624_v23 = vmul.f32 %v5341_v9, %v623_v49  ;;  %vm496_vm3 = vweird.f32 %v5343_v62 }
 0x1a6   : > { %5346 = vrsqrt.f32 %v6157_v33  ;;  %v6167_v7 = vadd.f32 1e-12, %v460_v48  ;;  %v5345_v50 = vpop.eup %5344  ;;  %v508_v44 = vsel %vm6162_vm15, %v5339_v30, %v504_v1  ;;  %vm497_vm5 = vmor %vm495_vm2, %vm496_vm3  ;;  %vm645_vm11 = vweird.f32 %v6157_v33 }
 0x1a7   : > { %v491_v19 = vmul.f32 %v5343_v62, %v490_v34  ;;  %v630_v0 = vmul.f32 %v5345_v50, %v6153_v54  ;;  %v628_v20 = vsel %vm627_vm1, %v5341_v9, %v624_v23  ;;  %v650_v52 = vmul.f32 %v508_v44, %v6001_v35 }
 0x1a8   : > { %5348 = vrsqrt.f32 %v6167_v7  ;;  %v662_v12 = vmul.f32 %v628_v20, %v6008_v37  ;;  %v6182_v37 = vadd.f32 %v677_v38, %v6036_v25  ;;  %vm636_vm6 = vweird.f32 %v5345_v50 }
 0x1a9   : > { %v492_v21 = vmul.f32 0.5, %v491_v19  ;;  %v430_v27 = vpop.xlane.xlu0 %429  ;;  %v631_v29 = vmul.f32 %v5345_v50, %v630_v0  ;;  %v666_v48 = vmul.f32 %v650_v52, %v6019_v51  ;;  %vm637_vm7 = vmor %vm635_vm4, %vm636_vm6  ;;  %vm525_vm9 = vweird.f32 %v6167_v7 }
 0x1aa   : > { %v459_v39 = vmul.f32 %v430_v27, %v5689_v13  ;;  %v678_v30 = vmul.f32 %v662_v12, %v6019_v51 }
 0x1ab   : > { %v493_v36 = vsub.f32 1.5, %v492_v21  ;;  %v632_v53 = vmul.f32 0.5, %v631_v29 }
 0x1ac   : > { %v5347_v31 = vpop.eup %5346  ;;  %v475_v42 = vadd.f32 1e-12, %v459_v39  ;;  %v6185_v45 = vadd.f32 %v678_v30, %v6036_v25 }
 0x1ad   : > { %v494_v9 = vmul.f32 %v5343_v62, %v493_v36  ;;  %v640_v58 = vmul.f32 %v5347_v31, %v6157_v33  ;;  %v633_v43 = vsub.f32 1.5, %v632_v53  ;;  %vm646_vm8 = vweird.f32 %v5347_v31 }
 0x1ae   : > { %v5349_v28 = vpop.eup %5348  ;;  %5350 = vrsqrt.f32 %v475_v42  ;;  %v703_v3 = vpack.c.bf16 %v6185_v45, %v6182_v37  ;;  %vm647_vm12 = vmor %vm645_vm11, %vm646_vm8  ;;  %vm515_vm14 = vweird.f32 %v475_v42 }
 0x1af   : > { %v498_v35 = vsel %vm497_vm5, %v5343_v62, %v494_v9  ;;  %v641_v17 = vmul.f32 %v5347_v31, %v640_v58  ;;  %v520_v60 = vmul.f32 %v5349_v28, %v6167_v7  ;;  %v634_v61 = vmul.f32 %v5345_v50, %v633_v43 }
 0x1b0   : > { %v649_v63 = vmul.f32 %v498_v35, %v6051_v18  ;;  %912 = vmatmul.bf16.gmra.mxu3 %v703_v3  ;;  %961 = vmatmul.bf16.gmra.mxu1 %v703_v3  ;;  %vm526_vm10 = vweird.f32 %v5349_v28 }
 0x1b1   : > { %v642_v2 = vmul.f32 0.5, %v641_v17  ;;  %v521_v49 = vmul.f32 %v5349_v28, %v520_v60  ;;  %v638_v34 = vsel %vm637_vm7, %v5345_v50, %v634_v61  ;;  %1010 = vmatmul.bf16.gmra.mxu2 %v703_v3  ;;  %v6202_v50 = vadd.f32 %v666_v48, %v6036_v25  ;;  %vm527_vm13 = vmor %vm525_vm9, %vm526_vm10 }
 0x1b2   : > { %v665_v62 = vmul.f32 %v649_v63, %v6019_v51  ;;  %v663_v23 = vmul.f32 %v638_v34, %v6044_v15 }
 0x1b3   : > { %v643_v1 = vsub.f32 1.5, %v642_v2  ;;  %v522_v16 = vmul.f32 0.5, %v521_v49 }
 0x1b4   : > { %v5351_v18 = vpop.eup %5350  ;;  %v6199_v54 = vadd.f32 %v665_v62, %v6036_v25  ;;  %v679_v27 = vmul.f32 %v663_v23, %v6019_v51 }
 0x1b5   : > { %v644_v19 = vmul.f32 %v5347_v31, %v643_v1  ;;  %v523_v0 = vsub.f32 1.5, %v522_v16  ;;  %v510_v44 = vmul.f32 %v5351_v18, %v475_v42  ;;  %vm516_vm15 = vweird.f32 %v5351_v18  ;;  %v6257_v16 = vld [vmem:[%s8437_s7 + $0x2] ss:$8 sm:$0x7] }
 0x1b6   : > { %v697_v7 = vpack.c.bf16 %v6202_v50, %v6199_v54  ;;  %vm517_vm0 = vmor %vm515_vm14, %vm516_vm15  ;;  %v6262_v23 = vperm.slane %v6257_v16, 1 }
 0x1b7   : > { %v648_v20 = vsel %vm647_vm12, %v5347_v31, %v644_v19  ;;  %v524_v21 = vmul.f32 %v5349_v28, %v523_v0  ;;  %v511_v15 = vmul.f32 %v5351_v18, %v510_v44  ;;  %v6213_v31 = vadd.f32 %v679_v27, %v6036_v25 }
 0x1b8   : > { %v664_v33 = vmul.f32 %v648_v20, %v6087_v55  ;;  %882 = vmatmul.bf16.vlgmr.msra.gmra.mxu0 %v697_v7 }
 0x1b9   : > { %v528_v38 = vsel %vm527_vm13, %v5349_v28, %v524_v21  ;;  %v512_v12 = vmul.f32 0.5, %v511_v15  ;;  %972 = vmatpush.bf16.msra.mxu0 %v5782_v59  ;;  %v6267_v21 = vperm.slane %v6257_v16, 2 }
 0x1ba   : > { %v680_v29 = vmul.f32 %v664_v33, %v6019_v51  ;;  %v652_v36 = vmul.f32 %v528_v38, %v6084_v56 }
 0x1bb   : > { %v513_v39 = vsub.f32 1.5, %v512_v12 }
 0x1bc   : > { %v6216_v52 = vadd.f32 %v680_v29, %v6036_v25  ;;  %v668_v42 = vmul.f32 %v652_v36, %v6019_v51 }
 0x1bd   : > { %v514_v55 = vmul.f32 %v5351_v18, %v513_v39  ;;  %973 = vmatpush.bf16.msra.mxu0 %v5806_v4 }
 0x1be   : > { %v704_v59 = vpack.c.bf16 %v6216_v52, %v6213_v31  ;;  %v6229_v4 = vadd.f32 %v668_v42, %v6036_v25 }
 0x1bf   : > { %v518_v53 = vsel %vm517_vm0, %v5351_v18, %v514_v55 }
 0x1c0   : > { %v651_v30 = vmul.f32 %v518_v53, %v6104_v6  ;;  %917 = vmatmul.bf16.gmra.mxu3 %v704_v59  ;;  %966 = vmatmul.bf16.gmra.mxu1 %v704_v59 }
 0x1c1   : > { %974 = vmatpush.bf16.msra.mxu0 %v5830_v14  ;;  %1015 = vmatmul.bf16.gmra.mxu2 %v704_v59  ;;  %v6238_v14 = vpop.f32.mrf.mxu1 }
 0x1c2   : > { %v667_v56 = vmul.f32 %v651_v30, %v6019_v51  ;;  %v6240_v51 = vpop.f32.mrf.mxu2 }
 0x1c4   : > { %v6226_v9 = vadd.f32 %v667_v56, %v6036_v25 }
 0x1c5   : > { %975 = vmatpush.bf16.msra.mxu0 %v5854_v26 }
 0x1c6   : > { %v698_v6 = vpack.c.bf16 %v6229_v4, %v6226_v9 }
 0x1c8   : > { %887 = vmatmul.bf16.gmra.mxu0 %v698_v6 }
 0x1c9   : > { %976 = vmatpush.bf16.msra.mxu0 %v5878_v40  ;;  %v6242_v25 = vpop.f32.mrf.mxu1 }
 0x1ca   : > { %v6244_v26 = vpop.f32.mrf.mxu2 }
 0x1cd   : > { %977 = vmatpush.bf16.msra.mxu0 %v5902_v57 }
 0x1d1   : > { %978 = vmatpush.bf16.msra.mxu0 %v5927_v8  ;;  %v6246_v58 = vpop.f32.mrf.mxu1 }
 0x1d2   : > { %v996_v40 = vpop.f32.mrf.mxu2 }
 0x1d5   : > { %979 = vmatpush.bf16.msra.mxu0 %v5951_v22 }
 0x1d8   : > { %931 = vmatmul.bf16.vlgmr.msrb.gmra.mxu0 %v697_v7 }
 0x1d9   : > { %v6248_v28 = vpop.f32.mrf.mxu1 }
 0x1da   : > { %v998_v57 = vpop.f32.mrf.mxu2 }
 0x1e1   : > { %v952_v8 = vpop.f32.mrf.mxu1 }
 0x1e2   : > { %v1001_v22 = vpop.f32.mrf.mxu2 }
 0x1e8   : > { %936 = vmatmul.bf16.gmra.mxu0 %v698_v6 }
 0x1e9   : > { %v954_v43 = vpop.f32.mrf.mxu1 }
 0x1ea   : > { %v1003_v35 = vpop.f32.mrf.mxu2 }
 0x1f8   : > { %980 = vmatmul.bf16.vlgmr.msra.gmra.mxu0 %v697_v7 }
 0x208   : > { %985 = vmatmul.bf16.gmra.mxu0 %v698_v6 }
 0x21c   : > { %v957_v17 = vpop.f32.mrf.mxu1 }
 0x223   : > { %v1006_v60 = vpop.f32.mrf.mxu2 }
 0x224   : > { %v959_v63 = vpop.f32.mrf.mxu1  ;;  %v1007_v6 = vadd.f32 %v1006_v60, %v6267_v21  ;;  %v953_v60 = vadd.f32 %v952_v8, %v6262_v23 }
 0x225   : > { %v960_v56 = vadd.f32 %v959_v63, %v6262_v23  ;;  %v997_v63 = vadd.f32 %v996_v40, %v6267_v21  ;;  %v948_v40 = vadd.f32 %v6246_v58, %v6262_v23 }
 0x22b   : > { %v1008_v61 = vpop.f32.mrf.mxu2 }
 0x22c   : > { %v1009_v53 = vadd.f32 %v1008_v61, %v6267_v21 }
 0x22d   : > { %v962_v3 = vpop.f32.mrf.mxu1 }
 0x22e   : > { %v963_v29 = vadd.f32 %v962_v3, %v6262_v23  ;;  %v1004_v3 = vadd.f32 %v1003_v35, %v6267_v21  ;;  %v994_v35 = vadd.f32 %v6244_v26, %v6267_v21  ;;  %v945_v26 = vadd.f32 %v6242_v25, %v6262_v23 }
 0x22f   : > { %v740_v25 = vperm.slane %v6257_v16, 0 }
 0x234   : > { %v1011_v2 = vpop.f32.mrf.mxu2 }
 0x235   : > { %v6250_v48 = vpop.f32.mrf.mxu0  ;;  %v964_v49 = vpop.f32.mrf.mxu1  ;;  %v1012_v59 = vadd.f32 %v1011_v2, %v6267_v21  ;;  %v999_v2 = vadd.f32 %v998_v57, %v6267_v21 }
 0x236   : > { %v965_v33 = vadd.f32 %v964_v49, %v6262_v23  ;;  %v958_v49 = vadd.f32 %v957_v17, %v6262_v23 }
 0x237   : > { %v1040_v17 = vpack.c.bf16 %v999_v2, %v997_v63 }
 0x238   : > { %v1035_v55 = vpack.c.bf16 %v965_v33, %v963_v29 }
 0x23c   : > { %v1013_v62 = vpop.f32.mrf.mxu2 }
 0x23d   : > { %v6252_v34 = vpop.f32.mrf.mxu0  ;;  %v967_v1 = vpop.f32.mrf.mxu1  ;;  %v1014_v39 = vadd.f32 %v1013_v62, %v6267_v21  ;;  %v1042_v62 = vpack.c.bf16 %v1009_v53, %v1007_v6 }
 0x23e   : > { %v968_v44 = vadd.f32 %v967_v1, %v6262_v23  ;;  %v1034_v1 = vpack.c.bf16 %v960_v56, %v958_v49  ;;  %v893_v53 = vpop.f32.mrf.mxu3 }
 0x23f   : > { %v1043_v30 = vpack.c.bf16 %v1014_v39, %v1012_v59 }
 0x244   : > { %v1016_v19 = vpop.f32.mrf.mxu2 }
 0x245   : > { %v6259_v18 = vpop.f32.mrf.mxu0  ;;  %v969_v0 = vpop.f32.mrf.mxu1  ;;  %v1017_v38 = vadd.f32 %v1016_v19, %v6267_v21  ;;  %v1002_v19 = vadd.f32 %v1001_v22, %v6267_v21  ;;  %v992_v22 = vadd.f32 %v6240_v51, %v6267_v21  ;;  %v943_v51 = vadd.f32 %v6238_v14, %v6262_v23 }
 0x246   : > { %v970_v7 = vadd.f32 %v969_v0, %v6262_v23  ;;  %v886_v14 = vadd.f32 %v6252_v34, %v740_v25 }
 0x247   : > { %v1041_v61 = vpack.c.bf16 %v1004_v3, %v1002_v19  ;;  %v1039_v57 = vpack.c.bf16 %v994_v35, %v992_v22 }
 0x248   : > { %v1036_v20 = vpack.c.bf16 %v970_v7, %v968_v44  ;;  %v955_v44 = vadd.f32 %v954_v43, %v6262_v23  ;;  %v950_v43 = vadd.f32 %v6248_v28, %v6262_v23 }
 0x24a   : > { %1045 = vmatpush.bf16.xpose.msrb.mxu3 %v1036_v20  ;;  %v1033_v7 = vpack.c.bf16 %v955_v44, %v953_v60  ;;  %v1032_v8 = vpack.c.bf16 %v950_v43, %v948_v40  ;;  %v894_v44 = vadd.f32 %v893_v53, %v740_v25 }
 0x24c   : > { %v1018_v27 = vpop.f32.mrf.mxu2 }
 0x24d   : > { %v6269_v15 = vpop.f32.mrf.mxu0  ;;  %v1019_v12 = vadd.f32 %v1018_v27, %v6267_v21  ;;  %v1031_v27 = vpack.c.bf16 %v945_v26, %v943_v51 }
 0x24e   : > { %v891_v34 = vadd.f32 %v6269_v15, %v740_v25 }
 0x24f   : > { %v1044_v36 = vpack.c.bf16 %v1019_v12, %v1017_v38 }
 0x251   : > { %1284 = vmatpush.bf16.msrb.mxu0 %v1044_v36 }
 0x252   : > { %1046 = vmatpush.bf16.xpose.msrb.mxu3 %v1035_v55 }
 0x255   : > { %v932_v42 = vpop.f32.mrf.mxu0  ;;  %1285 = vmatpush.bf16.msrb.mxu0 %v1043_v30  ;;  %v884_v30 = vadd.f32 %v6250_v48, %v740_v25  ;;  %v889_v48 = vadd.f32 %v6259_v18, %v740_v25 }
 0x256   : > { %v933_v36 = vadd.f32 %v932_v42, %v6262_v23 }
 0x257   : > { %v1021_v56 = vpack.c.bf16 %v886_v14, %v884_v30  ;;  %v1022_v19 = vpack.c.bf16 %v891_v34, %v889_v48 }
 0x259   : > { %1286 = vmatpush.bf16.msrb.mxu0 %v1042_v62  ;;  %v895_v62 = vpop.f32.mrf.mxu3 }
 0x25a   : > { %1047 = vmatpush.bf16.xpose.msrb.mxu3 %v1034_v1 }
 0x25d   : > { %v934_v0 = vpop.f32.mrf.mxu0  ;;  %1287 = vmatpush.bf16.msrb.mxu0 %v1041_v61 }
 0x25e   : > { %v935_v58 = vadd.f32 %v934_v0, %v6262_v23  ;;  %v896_v0 = vadd.f32 %v895_v62, %v740_v25 }
 0x260   : > { %v1029_v55 = vpack.c.bf16 %v935_v58, %v933_v36  ;;  %v1023_v63 = vpack.c.bf16 %v896_v0, %v894_v44  ;;  %v1110_v36 = vld [vmem:[%s314_s20] sm:$0x1] }
 0x261   : > { %1288 = vmatpush.bf16.msrb.mxu0 %v1040_v17  ;;  %v898_v2 = vpop.f32.mrf.mxu3 }
 0x262   : > { %1048 = vmatpush.bf16.xpose.msrb.mxu3 %v1033_v7  ;;  %v899_v17 = vadd.f32 %v898_v2, %v740_v25 }
 0x265   : > { %v937_v20 = vpop.f32.mrf.mxu0  ;;  %1289 = vmatpush.bf16.msrb.mxu0 %v1039_v57 }
 0x266   : > { %v938_v28 = vadd.f32 %v937_v20, %v6262_v23 }
 0x269   : > { %v900_v61 = vpop.f32.mrf.mxu3 }
 0x26a   : > { %1049 = vmatpush.bf16.xpose.msrb.mxu3 %v1032_v8  ;;  %v901_v35 = vadd.f32 %v900_v61, %v740_v25 }
 0x26d   : > { %v939_v33 = vpop.f32.mrf.mxu0 }
 0x26e   : > { %v940_v12 = vadd.f32 %v939_v33, %v6262_v23 }
 0x270   : > { %v1030_v29 = vpack.c.bf16 %v940_v12, %v938_v28 }
 0x271   : > { %v903_v60 = vpop.f32.mrf.mxu3 }
 0x272   : > { %1050 = vmatpush.bf16.xpose.msrb.mxu3 %v1031_v27  ;;  %v904_v15 = vadd.f32 %v903_v60, %v740_v25 }
 0x275   : > { %v981_v38 = vpop.f32.mrf.mxu0 }
 0x276   : > { %v982_v16 = vadd.f32 %v981_v38, %v6267_v21 }
 0x279   : > { %v905_v7 = vpop.f32.mrf.mxu3 }
 0x27a   : > { %1051 = vmatpush.bf16.xpose.msrb.mxu3 %v1030_v29  ;;  %v906_v57 = vadd.f32 %v905_v7, %v740_v25 }
 0x27c   : > { %v1025_v20 = vpack.c.bf16 %v906_v57, %v904_v15 }
 0x27d   : > { %v983_v39 = vpop.f32.mrf.mxu0 }
 0x27e   : > { %v984_v23 = vadd.f32 %v983_v39, %v6267_v21 }
 0x280   : > { %v1037_v1 = vpack.c.bf16 %v984_v23, %v982_v16 }
 0x281   : > { %v908_v22 = vpop.f32.mrf.mxu3 }
 0x282   : > { %1052 = vmatpush.bf16.xpose.msrb.mxu3 %v1029_v55  ;;  %v909_v8 = vadd.f32 %v908_v22, %v740_v25  ;;  %v4854_v55 = vadd.f32 -1.0, %v1110_v36 }
 0x284   : > { %v1112_v14 = vmul.f32 1e+30, %v4854_v55 }
 0x285   : > { %v986_v59 = vpop.f32.mrf.mxu0 }
 0x286   : > { %v987_v49 = vadd.f32 %v986_v59, %v6267_v21  ;;  %v6316_v59 = vperm.slane %v1112_v14, 0 }
 0x289   : > { %1053 = vmatmul.bf16.vlgmr.msrb.gmra.mxu3 %v1021_v56  ;;  %v910_v43 = vpop.f32.mrf.mxu3 }
 0x28a   : > { %v911_v40 = vadd.f32 %v910_v43, %v740_v25 }
 0x28c   : > { %v1026_v33 = vpack.c.bf16 %v911_v40, %v909_v8 }
 0x28d   : > { %v988_v6 = vpop.f32.mrf.mxu0 }
 0x28e   : > { %v989_v3 = vadd.f32 %v988_v6, %v6267_v21  ;;  %v1024_v21 = vpack.c.bf16 %v901_v35, %v899_v17 }
 0x290   : > { %v1038_v42 = vpack.c.bf16 %v989_v3, %v987_v49 }
 0x291   : > { %v913_v18 = vpop.f32.mrf.mxu3 }
 0x292   : > { %1290 = vmatpush.bf16.msrb.mxu0 %v1038_v42  ;;  %v914_v27 = vadd.f32 %v913_v18, %v740_v25 }
 0x296   : > { %1291 = vmatpush.bf16.msrb.mxu0 %v1037_v1 }
 0x299   : > { %1058 = vmatmul.bf16.gmra.mxu3 %v1022_v19  ;;  %v915_v26 = vpop.f32.mrf.mxu3 }
 0x29a   : > { %v916_v51 = vadd.f32 %v915_v26, %v740_v25 }
 0x29c   : > { %v1027_v12 = vpack.c.bf16 %v916_v51, %v914_v27 }
 0x2a1   : > { %v918_v38 = vpop.f32.mrf.mxu3 }
 0x2a2   : > { %v919_v39 = vadd.f32 %v918_v38, %v740_v25 }
 0x2a9   : > { %1063 = vmatmul.bf16.gmra.mxu3 %v1023_v63  ;;  %v920_v28 = vpop.f32.mrf.mxu3 }
 0x2aa   : > { %v921_v29 = vadd.f32 %v920_v28, %v740_v25 }
 0x2ac   : > { %v1028_v58 = vpack.c.bf16 %v921_v29, %v919_v39 }
 0x2b9   : > { %1068 = vmatmul.bf16.gmra.mxu3 %v1024_v21 }
 0x2c9   : > { %1073 = vmatmul.bf16.gmra.mxu3 %v1025_v20 }
 0x2d9   : > { %1078 = vmatmul.bf16.gmra.mxu3 %v1026_v33 }
 0x2e9   : > { %1083 = vmatmul.bf16.gmra.mxu3 %v1027_v12 }
 0x2f9   : > { %1088 = vmatmul.bf16.gmra.mxu3 %v1028_v58 }
 0x30c   : > { %v1054_v53 = vpop.f32.mrf.mxu3 }
 0x30d   : > { %v1094_v30 = vmul.f32 0.088388346, %v1054_v53 }
 0x30f   : > { %v1116_v56 = vadd.f32 %v6316_v59, %v1094_v30 }
 0x311   : > { %1132 = vmax.xlane.f32.xlu2 %v1116_v56 }
 0x314   : > { %v1056_v6 = vpop.f32.mrf.mxu3 }
 0x315   : > { %v1095_v49 = vmul.f32 0.088388346, %v1056_v6 }
 0x317   : > { %v1117_v25 = vadd.f32 %v6316_v59, %v1095_v49 }
 0x319   : > { %1134 = vmax.xlane.f32.xlu0 %v1117_v25 }
 0x31c   : > { %v1059_v3 = vpop.f32.mrf.mxu3 }
 0x31d   : > { %v1096_v62 = vmul.f32 0.088388346, %v1059_v3 }
 0x31f   : > { %v1118_v23 = vadd.f32 %v6316_v59, %v1096_v62 }
 0x321   : > { %1136 = vmax.xlane.f32.xlu1 %v1118_v23 }
 0x324   : > { %v1061_v42 = vpop.f32.mrf.mxu3 }
 0x325   : > { %v1097_v16 = vmul.f32 0.088388346, %v1061_v42 }
 0x327   : > { %v1119_v1 = vadd.f32 %v6316_v59, %v1097_v16 }
 0x329   : > { %1138 = vmax.xlane.f32.xlu2 %v1119_v1 }
 0x32c   : > { %v1064_v34 = vpop.f32.mrf.mxu3 }
 0x32d   : > { %v1098_v48 = vmul.f32 0.088388346, %v1064_v34 }
 0x32f   : > { %v1120_v19 = vadd.f32 %v6316_v59, %v1098_v48 }
 0x331   : > { %1140 = vmax.xlane.f32.xlu0 %v1120_v19 }
 0x334   : > { %v1066_v2 = vpop.f32.mrf.mxu3 }
 0x335   : > { %v1099_v61 = vmul.f32 0.088388346, %v1066_v2 }
 0x337   : > { %v1121_v0 = vadd.f32 %v6316_v59, %v1099_v61 }
 0x339   : > { %1142 = vmax.xlane.f32.xlu1 %v1121_v0 }
 0x33c   : > { %v1069_v44 = vpop.f32.mrf.mxu3 }
 0x33d   : > { %v1100_v63 = vmul.f32 0.088388346, %v1069_v44 }
 0x33f   : > { %v6325_v60 = vadd.f32 %v6316_v59, %v1100_v63 }
 0x341   : > { %1144 = vmax.xlane.f32.xlu2 %v6325_v60 }
 0x344   : > { %v1071_v35 = vpop.f32.mrf.mxu3 }
 0x345   : > { %v1101_v17 = vmul.f32 0.088388346, %v1071_v35 }
 0x347   : > { %v6329_v7 = vadd.f32 %v6316_v59, %v1101_v17 }
 0x349   : > { %1146 = vmax.xlane.f32.xlu0 %v6329_v7 }
 0x34c   : > { %v1074_v21 = vpop.f32.mrf.mxu3 }
 0x34d   : > { %v1102_v22 = vmul.f32 0.088388346, %v1074_v21 }
 0x34f   : > { %v6333_v57 = vadd.f32 %v6316_v59, %v1102_v22 }
 0x351   : > { %1148 = vmax.xlane.f32.xlu0 %v6333_v57 }
 0x354   : > { %v1076_v15 = vpop.f32.mrf.mxu3 }
 0x355   : > { %v1103_v27 = vmul.f32 0.088388346, %v1076_v15 }
 0x357   : > { %v6340_v28 = vadd.f32 %v6316_v59, %v1103_v27 }
 0x35c   : > { %v1079_v8 = vpop.f32.mrf.mxu3 }
 0x35d   : > { %v1104_v36 = vmul.f32 0.088388346, %v1079_v8 }
 0x35f   : > { %v6347_v53 = vadd.f32 %v6316_v59, %v1104_v36 }
 0x364   : > { %v1081_v39 = vpop.f32.mrf.mxu3 }
 0x365   : > { %v1105_v49 = vmul.f32 0.088388346, %v1081_v39 }
 0x367   : > { %v6354_v62 = vadd.f32 %v6316_v59, %v1105_v49 }
 0x36c   : > { %v1084_v6 = vpop.f32.mrf.mxu3 }
 0x36d   : > { %v1106_v16 = vmul.f32 0.088388346, %v1084_v6 }
 0x36f   : > { %v6361_v2 = vadd.f32 %v6316_v59, %v1106_v16 }
 0x384   : > { %v1133_v20 = vpop.xlane.xlu2 %1132 }
 0x385   : > { %v1164_v43 = vsub.f32 %v1116_v56, %v1133_v20 }
 0x387   : > { %v1180_v18 = vmul.f32 1.442695, %v1164_v43 }
 0x389   : > { %5352 = vpow2.f32 %v1180_v18 }
 0x38c   : > { %v1135_v40 = vpop.xlane.xlu0 %1134 }
 0x38d   : > { %v1165_v33 = vsub.f32 %v1117_v25, %v1135_v40 }
 0x38f   : > { %v6336_v26 = vpop.eup %5352  ;;  %v1182_v51 = vmul.f32 1.442695, %v1165_v33 }
 0x390   : > { %1212 = vadd.xlane.f32.xlu1 %v6336_v26 }
 0x391   : > { %5354 = vpow2.f32 %v1182_v51 }
 0x394   : > { %v1137_v38 = vpop.xlane.xlu1 %1136 }
 0x395   : > { %v1166_v12 = vsub.f32 %v1118_v23, %v1137_v38 }
 0x397   : > { %v6342_v29 = vpop.eup %5354  ;;  %v1184_v58 = vmul.f32 1.442695, %v1166_v12 }
 0x398   : > { %1214 = vadd.xlane.f32.xlu2 %v6342_v29  ;;  %1150 = vmax.xlane.f32.xlu1 %v6340_v28 }
 0x399   : > { %5356 = vpow2.f32 %v1184_v58 }
 0x39c   : > { %v1139_v55 = vpop.xlane.xlu2 %1138 }
 0x39d   : > { %v1167_v14 = vsub.f32 %v1119_v1, %v1139_v55  ;;  %v1086_v1 = vpop.f32.mrf.mxu3 }
 0x39e   : > { %v1107_v44 = vmul.f32 0.088388346, %v1086_v1 }
 0x39f   : > { %v6349_v30 = vpop.eup %5356  ;;  %v1186_v56 = vmul.f32 1.442695, %v1167_v14 }
 0x3a0   : > { %1216 = vadd.xlane.f32.xlu2 %v6349_v30  ;;  %1152 = vmax.xlane.f32.xlu1 %v6347_v53  ;;  %v6369_v21 = vadd.f32 %v6316_v59, %v1107_v44 }
 0x3a1   : > { %5358 = vpow2.f32 %v1186_v56 }
 0x3a4   : > { %v1141_v25 = vpop.xlane.xlu0 %1140 }
 0x3a5   : > { %v1168_v3 = vsub.f32 %v1120_v19, %v1141_v25  ;;  %v1089_v35 = vpop.f32.mrf.mxu3 }
 0x3a6   : > { %v1108_v15 = vmul.f32 0.088388346, %v1089_v35 }
 0x3a7   : > { %v6356_v23 = vpop.eup %5358  ;;  %v1188_v42 = vmul.f32 1.442695, %v1168_v3 }
 0x3a8   : > { %1218 = vadd.xlane.f32.xlu0 %v6356_v23  ;;  %1154 = vmax.xlane.f32.xlu2 %v6354_v62  ;;  %v6377_v18 = vadd.f32 %v6316_v59, %v1108_v15 }
 0x3a9   : > { %5360 = vpow2.f32 %v1188_v42 }
 0x3ac   : > { %v1143_v34 = vpop.xlane.xlu1 %1142 }
 0x3ad   : > { %v1169_v48 = vsub.f32 %v1121_v0, %v1143_v34 }
 0x3af   : > { %v6363_v61 = vpop.eup %5360  ;;  %v1190_v19 = vmul.f32 1.442695, %v1169_v48 }
 0x3b0   : > { %1220 = vadd.xlane.f32.xlu0 %v6363_v61  ;;  %1156 = vmax.xlane.f32.xlu2 %v6361_v2 }
 0x3b1   : > { %5362 = vpow2.f32 %v1190_v19 }
 0x3b4   : > { %v1145_v63 = vpop.xlane.xlu2 %1144 }
 0x3b5   : > { %v1170_v17 = vsub.f32 %v6325_v60, %v1145_v63  ;;  %v1091_v60 = vpop.f32.mrf.mxu3 }
 0x3b6   : > { %v1109_v33 = vmul.f32 0.088388346, %v1091_v60  ;;  %v5212_v60 = vld [vmem:[%s8433_s3 + $0x38] sm:$0xff] }
 0x3b7   : > { %v6371_v0 = vpop.eup %5362  ;;  %v1192_v22 = vmul.f32 1.442695, %v1170_v17  ;;  %1406 = vmatpush.bf16.msrb.mxu1 %v5212_v60 }
 0x3b8   : > { %1222 = vadd.xlane.f32.xlu1 %v6371_v0  ;;  %1158 = vmax.xlane.f32.xlu0 %v6369_v21  ;;  %v6385_v38 = vadd.f32 %v6316_v59, %v1109_v33  ;;  %v5210_v33 = vld [vmem:[%s8433_s3 + $0x28] sm:$0xff] }
 0x3b9   : > { %5364 = vpow2.f32 %v1192_v22 }
 0x3bc   : > { %v1147_v20 = vpop.xlane.xlu0 %1146 }
 0x3bd   : > { %v1171_v43 = vsub.f32 %v6329_v7, %v1147_v20 }
 0x3bf   : > { %v6379_v40 = vpop.eup %5364  ;;  %v1194_v8 = vmul.f32 1.442695, %v1171_v43 }
 0x3c0   : > { %1224 = vadd.xlane.f32.xlu1 %v6379_v40  ;;  %1160 = vmax.xlane.f32.xlu0 %v6377_v18 }
 0x3c1   : > { %5366 = vpow2.f32 %v1194_v8 }
 0x3c4   : > { %v1149_v51 = vpop.xlane.xlu0 %1148 }
 0x3c5   : > { %v1172_v27 = vsub.f32 %v6333_v57, %v1149_v51 }
 0x3c7   : > { %v6387_v7 = vpop.eup %5366  ;;  %v1196_v12 = vmul.f32 1.442695, %v1172_v27 }
 0x3c8   : > { %1226 = vadd.xlane.f32.xlu2 %v6387_v7  ;;  %1162 = vmax.xlane.f32.xlu1 %v6385_v38 }
 0x3c9   : > { %5368 = vpow2.f32 %v1196_v12 }
 0x3cf   : > { %v6391_v39 = vpop.eup %5368 }
 0x3d0   : > { %1228 = vadd.xlane.f32.xlu2 %v6391_v39 }
 0x403   : > { %v1213_v58 = vpop.xlane.xlu1 %1212 }
 0x404   : > { %5370 = vrcp.f32 %v1213_v58  ;;  %v5209_v58 = vld [vmem:[%s8433_s3 + $0x20] sm:$0xff] }
 0x40a   : > { %v5371_v14 = vpop.eup %5370 }
 0x40b   : > { %v1215_v36 = vpop.xlane.xlu2 %1214  ;;  %v1151_v55 = vpop.xlane.xlu1 %1150  ;;  %v1260_v6 = vmul.f32 %v5371_v14, %v6336_v26 }
 0x40c   : > { %5372 = vrcp.f32 %v1215_v36  ;;  %v1173_v59 = vsub.f32 %v6340_v28, %v1151_v55 }
 0x40e   : > { %v1198_v57 = vmul.f32 1.442695, %v1173_v59 }
 0x410   : > { %5374 = vpow2.f32 %v1198_v57 }
 0x412   : > { %v5373_v56 = vpop.eup %5372 }
 0x413   : > { %v1261_v49 = vmul.f32 %v5373_v56, %v6342_v29  ;;  %v1217_v25 = vpop.xlane.xlu2 %1216  ;;  %v1153_v3 = vpop.xlane.xlu1 %1152 }
 0x414   : > { %v1174_v42 = vsub.f32 %v6347_v53, %v1153_v3 }
 0x415   : > { %v1276_v16 = vpack.c.bf16 %v1261_v49, %v1260_v6 }
 0x416   : > { %v6398_v1 = vpop.eup %5374  ;;  %v1200_v34 = vmul.f32 1.442695, %v1174_v42 }
 0x417   : > { %1292 = vmatmul.bf16.vlgmr.msrb.gmra.mxu0 %v1276_v16  ;;  %1230 = vadd.xlane.f32.xlu0 %v6398_v1 }
 0x418   : > { %5376 = vpow2.f32 %v1200_v34 }
 0x419   : > { %5378 = vrcp.f32 %v1217_v25 }
 0x41b   : > { %v1219_v28 = vpop.xlane.xlu0 %1218  ;;  %v1155_v48 = vpop.xlane.xlu2 %1154 }
 0x41c   : > { %5380 = vrcp.f32 %v1219_v28  ;;  %v1175_v26 = vsub.f32 %v6354_v62, %v1155_v48 }
 0x41e   : > { %v6402_v19 = vpop.eup %5376  ;;  %v1202_v29 = vmul.f32 1.442695, %v1175_v26 }
 0x41f   : > { %1232 = vadd.xlane.f32.xlu1 %v6402_v19  ;;  %v5379_v53 = vpop.eup %5378 }
 0x420   : > { %5382 = vpow2.f32 %v1202_v29  ;;  %v1262_v17 = vmul.f32 %v5379_v53, %v6349_v30  ;;  %v5211_v30 = vld [vmem:[%s8433_s3 + $0x30] sm:$0xff] }
 0x421   : > { %1407 = vmatpush.bf16.msrb.mxu1 %v5211_v30  ;;  %v5207_v29 = vld [vmem:[%s8433_s3 + $0x10] sm:$0xff] }
 0x422   : > { %v5381_v44 = vpop.eup %5380 }
 0x423   : > { %v1221_v63 = vpop.xlane.xlu0 %1220  ;;  %v1157_v35 = vpop.xlane.xlu2 %1156  ;;  %v1263_v22 = vmul.f32 %v5381_v44, %v6356_v23 }
 0x424   : > { %v1176_v15 = vsub.f32 %v6361_v2, %v1157_v35 }
 0x425   : > { %v1277_v20 = vpack.c.bf16 %v1263_v22, %v1262_v17  ;;  %1408 = vmatpush.bf16.msrb.mxu1 %v5210_v33 }
 0x426   : > { %v6408_v43 = vpop.eup %5382  ;;  %v1204_v62 = vmul.f32 1.442695, %v1176_v15 }
 0x427   : > { %1297 = vmatmul.bf16.gmra.mxu0 %v1277_v20  ;;  %1234 = vadd.xlane.f32.xlu2 %v6408_v43 }
 0x428   : > { %5384 = vpow2.f32 %v1204_v62 }
 0x429   : > { %5386 = vrcp.f32 %v1221_v63  ;;  %1409 = vmatpush.bf16.msrb.mxu1 %v5209_v58 }
 0x42b   : > { %v1223_v23 = vpop.xlane.xlu1 %1222  ;;  %v1159_v2 = vpop.xlane.xlu0 %1158 }
 0x42c   : > { %5388 = vrcp.f32 %v1223_v23  ;;  %v1177_v8 = vsub.f32 %v6369_v21, %v1159_v2 }
 0x42e   : > { %v6421_v51 = vpop.eup %5384  ;;  %v1206_v27 = vmul.f32 1.442695, %v1177_v8 }
 0x42f   : > { %1236 = vadd.xlane.f32.xlu0 %v6421_v51  ;;  %v5387_v12 = vpop.eup %5386 }
 0x430   : > { %5390 = vpow2.f32 %v1206_v27  ;;  %v1264_v59 = vmul.f32 %v5387_v12, %v6363_v61 }
 0x432   : > { %v5389_v36 = vpop.eup %5388 }
 0x433   : > { %v1225_v55 = vpop.xlane.xlu1 %1224  ;;  %v1161_v21 = vpop.xlane.xlu0 %1160  ;;  %v1265_v57 = vmul.f32 %v5389_v36, %v6371_v0 }
 0x434   : > { %v1178_v14 = vsub.f32 %v6377_v18, %v1161_v21 }
 0x435   : > { %v1278_v56 = vpack.c.bf16 %v1265_v57, %v1264_v59 }
 0x436   : > { %v6430_v6 = vpop.eup %5390  ;;  %v1208_v49 = vmul.f32 1.442695, %v1178_v14 }
 0x437   : > { %1302 = vmatmul.bf16.gmra.mxu0 %v1278_v56  ;;  %1238 = vadd.xlane.f32.xlu1 %v6430_v6 }
 0x438   : > { %5392 = vpow2.f32 %v1208_v49 }
 0x439   : > { %5394 = vrcp.f32 %v1225_v55 }
 0x43b   : > { %v1227_v25 = vpop.xlane.xlu2 %1226  ;;  %v1163_v3 = vpop.xlane.xlu1 %1162 }
 0x43c   : > { %5396 = vrcp.f32 %v1227_v25  ;;  %v1179_v42 = vsub.f32 %v6385_v38, %v1163_v3  ;;  %v5208_v38 = vld [vmem:[%s8433_s3 + $0x18] sm:$0xff] }
 0x43d   : > { %1410 = vmatpush.bf16.msrb.mxu1 %v5208_v38  ;;  %v6461_v38 = vld [vmem:[%s8437_s7 + $0x3] ss:$0 sm:$0xff] }
 0x43e   : > { %v6434_v61 = vpop.eup %5392  ;;  %v1210_v0 = vmul.f32 1.442695, %v1179_v42 }
 0x43f   : > { %1240 = vadd.xlane.f32.xlu2 %v6434_v61  ;;  %v5395_v18 = vpop.eup %5394 }
 0x440   : > { %5398 = vpow2.f32 %v1210_v0  ;;  %v1266_v34 = vmul.f32 %v5395_v18, %v6379_v40  ;;  %v5206_v40 = vld [vmem:[%s8433_s3 + $0x8] sm:$0xff] }
 0x441   : > { %1411 = vmatpush.bf16.msrb.mxu1 %v5207_v29 }
 0x442   : > { %v5397_v16 = vpop.eup %5396 }
 0x443   : > { %v1267_v28 = vmul.f32 %v5397_v16, %v6387_v7  ;;  %v5205_v7 = vld [vmem:[%s8433_s3] sm:$0xff]  ;;  %v1229_v53 = vpop.xlane.xlu2 %1228 }
 0x444   : > { %5400 = vrcp.f32 %v1229_v53 }
 0x445   : > { %v1279_v48 = vpack.c.bf16 %v1267_v28, %v1266_v34  ;;  %1412 = vmatpush.bf16.msrb.mxu1 %v5206_v40 }
 0x446   : > { %v5399_v26 = vpop.eup %5398 }
 0x447   : > { %1307 = vmatmul.bf16.gmra.mxu0 %v1279_v48  ;;  %1242 = vadd.xlane.f32.xlu0 %v5399_v26 }
 0x449   : > { %1413 = vmatpush.bf16.msrb.mxu1 %v5205_v7 }
 0x44a   : > { %v5401_v63 = vpop.eup %5400 }
 0x44b   : > { %v1268_v17 = vmul.f32 %v5401_v63, %v6391_v39 }
 0x48a   : > { %v1231_v44 = vpop.xlane.xlu0 %1230 }
 0x48b   : > { %5402 = vrcp.f32 %v1231_v44 }
 0x491   : > { %v5403_v35 = vpop.eup %5402 }
 0x492   : > { %v1269_v22 = vmul.f32 %v5403_v35, %v6398_v1  ;;  %v1233_v62 = vpop.xlane.xlu1 %1232 }
 0x493   : > { %5404 = vrcp.f32 %v1233_v62 }
 0x494   : > { %v1293_v15 = vpop.f32.mrf.mxu0  ;;  %v1280_v20 = vpack.c.bf16 %v1269_v22, %v1268_v17 }
 0x496   : > { %1312 = vmatmul.bf16.gmra.mxu0 %v1280_v20 }
 0x499   : > { %v5405_v2 = vpop.eup %5404 }
 0x49a   : > { %v1235_v60 = vpop.xlane.xlu2 %1234  ;;  %v1270_v33 = vmul.f32 %v5405_v2, %v6402_v19 }
 0x49b   : > { %5406 = vrcp.f32 %v1235_v60 }
 0x49c   : > { %v1295_v30 = vpop.f32.mrf.mxu0 }
 0x49d   : > { %v1333_v23 = vpack.c.bf16 %v1295_v30, %v1293_v15 }
 0x49f   : > { %1414 = vmatmul.bf16.vlgmr.msrb.gmra.mxu1 %v1333_v23 }
 0x4a1   : > { %v5407_v8 = vpop.eup %5406 }
 0x4a2   : > { %v1271_v27 = vmul.f32 %v5407_v8, %v6408_v43  ;;  %v1237_v58 = vpop.xlane.xlu0 %1236 }
 0x4a3   : > { %5408 = vrcp.f32 %v1237_v58 }
 0x4a4   : > { %v1298_v12 = vpop.f32.mrf.mxu0  ;;  %v1281_v39 = vpack.c.bf16 %v1271_v27, %v1270_v33 }
 0x4a6   : > { %1317 = vmatmul.bf16.gmra.mxu0 %v1281_v39 }
 0x4a9   : > { %v5409_v21 = vpop.eup %5408 }
 0x4aa   : > { %v1239_v1 = vpop.xlane.xlu1 %1238  ;;  %v1272_v57 = vmul.f32 %v5409_v21, %v6421_v51 }
 0x4ab   : > { %5410 = vrcp.f32 %v1239_v1 }
 0x4ac   : > { %v1300_v36 = vpop.f32.mrf.mxu0 }
 0x4ad   : > { %v1334_v55 = vpack.c.bf16 %v1300_v36, %v1298_v12 }
 0x4af   : > { %1419 = vmatmul.bf16.gmra.mxu1 %v1334_v55 }
 0x4b1   : > { %v5411_v59 = vpop.eup %5410 }
 0x4b2   : > { %v1273_v14 = vmul.f32 %v5411_v59, %v6430_v6  ;;  %v1241_v49 = vpop.xlane.xlu2 %1240 }
 0x4b3   : > { %5412 = vrcp.f32 %v1241_v49 }
 0x4b4   : > { %v1303_v56 = vpop.f32.mrf.mxu0  ;;  %v1282_v19 = vpack.c.bf16 %v1273_v14, %v1272_v57 }
 0x4b6   : > { %1322 = vmatmul.bf16.gmra.mxu0 %v1282_v19 }
 0x4b9   : > { %v5413_v42 = vpop.eup %5412 }
 0x4ba   : > { %v1243_v43 = vpop.xlane.xlu0 %1242  ;;  %v1274_v18 = vmul.f32 %v5413_v42, %v6434_v61 }
 0x4bb   : > { %5414 = vrcp.f32 %v1243_v43 }
 0x4bc   : > { %v1305_v25 = vpop.f32.mrf.mxu0 }
 0x4bd   : > { %v1335_v3 = vpack.c.bf16 %v1305_v25, %v1303_v56 }
 0x4bf   : > { %1424 = vmatmul.bf16.gmra.mxu1 %v1335_v3 }
 0x4c1   : > { %v5415_v0 = vpop.eup %5414 }
 0x4c2   : > { %v1275_v16 = vmul.f32 %v5415_v0, %v5399_v26 }
 0x4c4   : > { %v1308_v34 = vpop.f32.mrf.mxu0  ;;  %v1283_v28 = vpack.c.bf16 %v1275_v16, %v1274_v18 }
 0x4c6   : > { %1327 = vmatmul.bf16.gmra.mxu0 %v1283_v28 }
 0x4cc   : > { %v1310_v51 = vpop.f32.mrf.mxu0 }
 0x4cd   : > { %v1336_v6 = vpack.c.bf16 %v1310_v51, %v1308_v34 }
 0x4cf   : > { %1429 = vmatmul.bf16.gmra.mxu1 %v1336_v6 }
 0x513   : > { %v1313_v48 = vpop.f32.mrf.mxu0 }
 0x51b   : > { %v1315_v29 = vpop.f32.mrf.mxu0 }
 0x51c   : > { %v1415_v40 = vpop.f32.mrf.mxu1  ;;  %v1337_v7 = vpack.c.bf16 %v1315_v29, %v1313_v48 }
 0x51d   : > { %v1416_v53 = vadd.f32 %v1415_v40, %v6461_v38 }
 0x51e   : > { %1434 = vmatmul.bf16.gmra.mxu1 %v1337_v7 }
 0x51f   : > { %v1455_v61 = vadd.f32 %v1416_v53, %v6199_v54 }
 0x521   : > { %1473 = vadd.xlane.f32.xlu1 %v1455_v61 }
 0x523   : > { %v1318_v26 = vpop.f32.mrf.mxu0 }
 0x524   : > { %v1417_v44 = vpop.f32.mrf.mxu1 }
 0x525   : > { %v1418_v63 = vadd.f32 %v1417_v44, %v6461_v38 }
 0x527   : > { %v1456_v35 = vadd.f32 %v1418_v63, %v6202_v50 }
 0x529   : > { %1475 = vadd.xlane.f32.xlu2 %v1456_v35 }
 0x52b   : > { %v1320_v17 = vpop.f32.mrf.mxu0 }
 0x52c   : > { %v1420_v22 = vpop.f32.mrf.mxu1  ;;  %v1338_v15 = vpack.c.bf16 %v1320_v17, %v1318_v26 }
 0x52d   : > { %v1421_v20 = vadd.f32 %v1420_v22, %v6461_v38 }
 0x52e   : > { %1439 = vmatmul.bf16.gmra.mxu1 %v1338_v15 }
 0x52f   : > { %v1457_v62 = vadd.f32 %v1421_v20, %v6226_v9 }
 0x531   : > { %1477 = vadd.xlane.f32.xlu0 %v1457_v62 }
 0x533   : > { %v1323_v60 = vpop.f32.mrf.mxu0 }
 0x534   : > { %v1422_v30 = vpop.f32.mrf.mxu1 }
 0x535   : > { %v1423_v54 = vadd.f32 %v1422_v30, %v6461_v38 }
 0x537   : > { %v1458_v23 = vadd.f32 %v1423_v54, %v6229_v4 }
 0x539   : > { %1479 = vadd.xlane.f32.xlu1 %v1458_v23 }
 0x53b   : > { %v1325_v2 = vpop.f32.mrf.mxu0 }
 0x53c   : > { %v1339_v8 = vpack.c.bf16 %v1325_v2, %v1323_v60  ;;  %v1425_v50 = vpop.f32.mrf.mxu1 }
 0x53d   : > { %v1426_v33 = vadd.f32 %v1425_v50, %v6461_v38 }
 0x53e   : > { %1444 = vmatmul.bf16.gmra.mxu1 %v1339_v8 }
 0x53f   : > { %v1459_v27 = vadd.f32 %v1426_v33, %v6056_v41 }
 0x541   : > { %1481 = vadd.xlane.f32.xlu2 %v1459_v27 }
 0x543   : > { %v1328_v12 = vpop.f32.mrf.mxu0 }
 0x544   : > { %v1427_v39 = vpop.f32.mrf.mxu1 }
 0x545   : > { %v1428_v9 = vadd.f32 %v1427_v39, %v6461_v38 }
 0x547   : > { %v1460_v58 = vadd.f32 %v1428_v9, %v6059_v46 }
 0x549   : > { %1483 = vadd.xlane.f32.xlu0 %v1460_v58 }
 0x54b   : > { %v1330_v1 = vpop.f32.mrf.mxu0 }
 0x54c   : > { %v1340_v36 = vpack.c.bf16 %v1330_v1, %v1328_v12  ;;  %v1430_v4 = vpop.f32.mrf.mxu1 }
 0x54d   : > { %v1431_v55 = vadd.f32 %v1430_v4, %v6461_v38  ;;  %v5260_v4 = vld [vmem:[%s8434_s4 + $0xf4] sm:$0xf0] }
 0x54e   : > { %1449 = vmatmul.bf16.gmra.mxu1 %v1340_v36  ;;  %v5011_v36 = vld [vmem:[%s8434_s4 + $0xe8] sm:$0xf] }
 0x54f   : > { %v1461_v21 = vadd.f32 %v1431_v55, %v6098_v24 }
 0x551   : > { %1485 = vadd.xlane.f32.xlu0 %v1461_v21 }
 0x554   : > { %v1432_v59 = vpop.f32.mrf.mxu1 }
 0x555   : > { %v1433_v49 = vadd.f32 %v1432_v59, %v6461_v38  ;;  %v5259_v59 = vld [vmem:[%s8434_s4 + $0xec] sm:$0xf] }
 0x557   : > { %v6489_v3 = vadd.f32 %v1433_v49, %v6107_v10 }
 0x594   : > { %v1474_v57 = vpop.xlane.xlu1 %1473 }
 0x595   : > { %v1505_v41 = vmul.f32 %v1474_v57, %v5689_v13  ;;  %v5013_v57 = vld [vmem:[%s8434_s4 + $0xf8] sm:$0xf0] }
 0x597   : > { %v6478_v14 = vsub.f32 %v1455_v61, %v1505_v41  ;;  %v5016_v41 = vor.u32 %v5259_v59, %v5013_v57 }
 0x599   : > { %v1537_v56 = vmul.f32 %v6478_v14, %v6478_v14  ;;  %2954 = vmatpush.bf16.msra.mxu1 %v5016_v41  ;;  %v5251_v41 = vld [vmem:[%s8434_s4 + $0x6c] sm:$0xf] }
 0x59b   : > { %v1435_v46 = vpop.f32.mrf.mxu1  ;;  %1553 = vadd.xlane.f32.xlu1 %v1537_v56  ;;  %v4938_v56 = vld [vmem:[%s8434_s4 + $0xc0] sm:$0xf] }
 0x59c   : > { %v1476_v19 = vpop.xlane.xlu2 %1475  ;;  %v1436_v18 = vadd.f32 %v1435_v46, %v6461_v38  ;;  %v5226_v46 = vld [vmem:[%s8434_s4 + $0xcc] sm:$0xf0] }
 0x59d   : > { %v1506_v43 = vmul.f32 %v1476_v19, %v5689_v13  ;;  %v5225_v19 = vld [vmem:[%s8434_s4 + $0xc4] sm:$0xf]  ;;  %v4939_v49 = vor.u32 %v5226_v46, %v4938_v56  ;;  %v4981_v56 = vld [vmem:[%s8434_s4 + $0x78] sm:$0xf0] }
 0x59e   : > { %v6499_v51 = vadd.f32 %v1436_v18, %v6126_v11  ;;  %v4984_v46 = vor.u32 %v5251_v41, %v4981_v56 }
 0x59f   : > { %v6484_v25 = vsub.f32 %v1456_v35, %v1506_v43  ;;  %v4940_v43 = vld [vmem:[%s8434_s4 + $0xd0] sm:$0xf0] }
 0x5a1   : > { %v1538_v24 = vmul.f32 %v6484_v25, %v6484_v25 }
 0x5a3   : > { %1555 = vadd.xlane.f32.xlu2 %v1538_v24  ;;  %v1437_v42 = vpop.f32.mrf.mxu1  ;;  %1487 = vadd.xlane.f32.xlu1 %v6489_v3  ;;  %v5003_v24 = vld [vmem:[%s8434_s4 + $0xc8] sm:$0xf] }
 0x5a4   : > { %v1478_v0 = vpop.xlane.xlu0 %1477  ;;  %v1438_v48 = vadd.f32 %v1437_v42, %v6461_v38  ;;  %v5258_v42 = vld [vmem:[%s8434_s4 + $0xd4] sm:$0xf0] }
 0x5a5   : > { %v1507_v16 = vmul.f32 %v1478_v0, %v5689_v13  ;;  %v4943_v0 = vor.u32 %v5225_v19, %v4940_v43  ;;  %v5004_v18 = vor.u32 %v5258_v42, %v5003_v24  ;;  %v4906_v19 = vld [vmem:[%s8434_s4 + $0x40] sm:$0xf]  ;;  %v5217_v43 = vld [vmem:[%s8434_s4 + $0x44] sm:$0xf]  ;;  %v4908_v42 = vld [vmem:[%s8434_s4 + $0x50] sm:$0xf0] }
 0x5a6   : > { %v6507_v7 = vadd.f32 %v1438_v48, %v6123_v47  ;;  %v5224_v48 = vld [vmem:[%s8434_s4 + $0xac] sm:$0xf0] }
 0x5a7   : > { %v6494_v34 = vsub.f32 %v1457_v62, %v1507_v16  ;;  %v5257_v16 = vld [vmem:[%s8434_s4 + $0xcc] sm:$0xf] }
 0x5a9   : > { %v1539_v28 = vmul.f32 %v6494_v34, %v6494_v34 }
 0x5ab   : > { %1557 = vadd.xlane.f32.xlu2 %v1539_v28  ;;  %v1440_v10 = vpop.f32.mrf.mxu1  ;;  %1489 = vadd.xlane.f32.xlu1 %v6499_v51  ;;  %v5005_v28 = vld [vmem:[%s8434_s4 + $0xd8] sm:$0xf0] }
 0x5ac   : > { %v1480_v6 = vpop.xlane.xlu1 %1479  ;;  %v1441_v26 = vadd.f32 %v1440_v10, %v6461_v38  ;;  %v5008_v10 = vor.u32 %v5257_v16, %v5005_v28  ;;  %v4911_v16 = vor.u32 %v5217_v43, %v4908_v42 }
 0x5ad   : > { %v1508_v29 = vmul.f32 %v1480_v6, %v5689_v13  ;;  %v4930_v6 = vld [vmem:[%s8434_s4 + $0xa0] sm:$0xf] }
 0x5ae   : > { %v6517_v35 = vadd.f32 %v1441_v26, %v6142_v32  ;;  %2955 = vmatpush.bf16.msra.mxu1 %v5008_v10  ;;  %v5256_v26 = vld [vmem:[%s8434_s4 + $0xb4] sm:$0xf0]  ;;  %v5249_v10 = vld [vmem:[%s8434_s4 + $0x4c] sm:$0xf] }
 0x5af   : > { %v6504_v40 = vsub.f32 %v1458_v23, %v1508_v29  ;;  %v5223_v29 = vld [vmem:[%s8434_s4 + $0xa4] sm:$0xf] }
 0x5b1   : > { %v1540_v53 = vmul.f32 %v6504_v40, %v6504_v40 }
 0x5b3   : > { %1491 = vadd.xlane.f32.xlu2 %v6507_v7  ;;  %1559 = vadd.xlane.f32.xlu0 %v1540_v53  ;;  %v1442_v11 = vpop.f32.mrf.mxu1  ;;  %v4931_v53 = vor.u32 %v5224_v48, %v4930_v6  ;;  %v4973_v6 = vld [vmem:[%s8434_s4 + $0x58] sm:$0xf0] }
 0x5b4   : > { %v1482_v61 = vpop.xlane.xlu2 %1481  ;;  %v1443_v22 = vadd.f32 %v1442_v11, %v6461_v38  ;;  %v4932_v11 = vld [vmem:[%s8434_s4 + $0xb0] sm:$0xf0]  ;;  %v4976_v48 = vor.u32 %v5249_v10, %v4973_v6 }
 0x5b5   : > { %v1509_v44 = vmul.f32 %v1482_v61, %v5689_v13  ;;  %v4995_v61 = vld [vmem:[%s8434_s4 + $0xa8] sm:$0xf] }
 0x5b6   : > { %v6529_v32 = vadd.f32 %v1443_v22, %v6145_v5  ;;  %v4997_v22 = vld [vmem:[%s8434_s4 + $0xb8] sm:$0xf0] }
 0x5b7   : > { %v6514_v63 = vsub.f32 %v1459_v27, %v1509_v44  ;;  %v4935_v44 = vor.u32 %v5223_v29, %v4932_v11  ;;  %v4898_v29 = vld [vmem:[%s8434_s4 + $0x20] sm:$0xf]  ;;  %v5215_v11 = vld [vmem:[%s8434_s4 + $0x24] sm:$0xf] }
 0x5b9   : > { %v1541_v47 = vmul.f32 %v6514_v63, %v6514_v63 }
 0x5bb   : > { %1493 = vadd.xlane.f32.xlu2 %v6517_v35  ;;  %1561 = vadd.xlane.f32.xlu0 %v1541_v47  ;;  %v1445_v20 = vpop.f32.mrf.mxu1  ;;  %v4996_v47 = vor.u32 %v5256_v26, %v4995_v61 }
 0x5bc   : > { %v1484_v17 = vpop.xlane.xlu0 %1483  ;;  %v1446_v54 = vadd.f32 %v1445_v20, %v6461_v38  ;;  %v4922_v20 = vld [vmem:[%s8434_s4 + $0x80] sm:$0xf] }
 0x5bd   : > { %v1510_v15 = vmul.f32 %v1484_v17, %v5689_v13  ;;  %v5255_v17 = vld [vmem:[%s8434_s4 + $0xac] sm:$0xf] }
 0x5be   : > { %v6539_v33 = vadd.f32 %v1446_v54, %v6182_v37  ;;  %v4946_v37 = vld [vmem:[%s8434_s4 + $0xe0] sm:$0xf] }
 0x5bf   : > { %v6524_v62 = vsub.f32 %v1460_v58, %v1510_v15  ;;  %v5228_v58 = vld [vmem:[%s8434_s4 + $0xec] sm:$0xf0]  ;;  %v5000_v15 = vor.u32 %v5255_v17, %v4997_v22  ;;  %v5248_v17 = vld [vmem:[%s8434_s4 + $0x34] sm:$0xf0] }
 0x5c0   : > { %v4947_v1 = vor.u32 %v5228_v58, %v4946_v37  ;;  %v4989_v37 = vld [vmem:[%s8434_s4 + $0x98] sm:$0xf0] }
 0x5c1   : > { %v1542_v60 = vmul.f32 %v6524_v62, %v6524_v62  ;;  %2956 = vmatpush.bf16.msra.mxu1 %v5000_v15 }
 0x5c2   : > { %1936 = vmatpush.bf16.msrb.mxu2 %v4947_v1  ;;  %v5220_v1 = vld [vmem:[%s8434_s4 + $0x6c] sm:$0xf0] }
 0x5c3   : > { %1563 = vadd.xlane.f32.xlu1 %v1542_v60  ;;  %1495 = vadd.xlane.f32.xlu0 %v6529_v32  ;;  %v1447_v8 = vpop.f32.mrf.mxu1  ;;  %v5222_v60 = vld [vmem:[%s8434_s4 + $0x8c] sm:$0xf0] }
 0x5c4   : > { %v1486_v30 = vpop.xlane.xlu0 %1485  ;;  %v1448_v5 = vadd.f32 %v1447_v8, %v6461_v38  ;;  %v4923_v54 = vor.u32 %v5222_v60, %v4922_v20  ;;  %v4987_v8 = vld [vmem:[%s8434_s4 + $0x88] sm:$0xf]  ;;  %v5247_v60 = vld [vmem:[%s8434_s4 + $0x2c] sm:$0xf] }
 0x5c5   : > { %v1511_v23 = vmul.f32 %v1486_v30, %v5689_v13  ;;  %v5221_v30 = vld [vmem:[%s8434_s4 + $0x84] sm:$0xf] }
 0x5c6   : > { %v6544_v27 = vadd.f32 %v1448_v5, %v6185_v45  ;;  %v5227_v45 = vld [vmem:[%s8434_s4 + $0xe4] sm:$0xf]  ;;  %1937 = vmatpush.bf16.msrb.mxu2 %v4939_v49  ;;  %v5218_v49 = vld [vmem:[%s8434_s4 + $0x4c] sm:$0xf0] }
 0x5c7   : > { %v6534_v2 = vsub.f32 %v1461_v21, %v1511_v23  ;;  %v5012_v21 = vor.u32 %v5260_v4, %v5011_v36  ;;  %v4924_v23 = vld [vmem:[%s8434_s4 + $0x90] sm:$0xf0]  ;;  %v4907_v24 = vor.u32 %v5218_v49, %v4906_v19 }
 0x5c8   : > { %v4927_v5 = vor.u32 %v5221_v30, %v4924_v23  ;;  %v4916_v4 = vld [vmem:[%s8434_s4 + $0x70] sm:$0xf0]  ;;  %v4965_v30 = vld [vmem:[%s8434_s4 + $0x38] sm:$0xf0] }
 0x5c9   : > { %v1543_v50 = vmul.f32 %v6534_v2, %v6534_v2  ;;  %2905 = vmatpush.bf16.msra.mxu0 %v5012_v21  ;;  %v5252_v21 = vld [vmem:[%s8434_s4 + $0x74] sm:$0xf0] }
 0x5ca   : > { %1938 = vmatpush.bf16.msrb.mxu2 %v4931_v53  ;;  %v5216_v53 = vld [vmem:[%s8434_s4 + $0x2c] sm:$0xf0] }
 0x5cb   : > { %1565 = vadd.xlane.f32.xlu1 %v1543_v50  ;;  %1497 = vadd.xlane.f32.xlu0 %v6539_v33  ;;  %v1450_v12 = vpop.f32.mrf.mxu1  ;;  %v5254_v50 = vld [vmem:[%s8434_s4 + $0x94] sm:$0xf0]  ;;  %v4899_v26 = vor.u32 %v5216_v53, %v4898_v29 }
 0x5cc   : > { %v1451_v39 = vadd.f32 %v1450_v12, %v6461_v38  ;;  %v4988_v12 = vor.u32 %v5254_v50, %v4987_v8  ;;  %v4890_v8 = vld [vmem:[%s8434_s4] sm:$0xf]  ;;  %v5214_v50 = vld [vmem:[%s8434_s4 + $0xc] sm:$0xf0] }
 0x5cd   : > { %2906 = vmatpush.bf16.msra.mxu0 %v5004_v18  ;;  %v5250_v18 = vld [vmem:[%s8434_s4 + $0x54] sm:$0xf0] }
 0x5ce   : > { %v6549_v9 = vadd.f32 %v1451_v39, %v6213_v31  ;;  %v4948_v31 = vld [vmem:[%s8434_s4 + $0xf0] sm:$0xf0]  ;;  %v5253_v39 = vld [vmem:[%s8434_s4 + $0x8c] sm:$0xf]  ;;  %1939 = vmatpush.bf16.msrb.mxu2 %v4923_v54  ;;  %v4968_v54 = vor.u32 %v5247_v60, %v4965_v30 }
 0x5cf   : > { %v4951_v55 = vor.u32 %v5227_v45, %v4948_v31  ;;  %v4992_v58 = vor.u32 %v5253_v39, %v4989_v37  ;;  %v4914_v45 = vld [vmem:[%s8434_s4 + $0x60] sm:$0xf]  ;;  %v5219_v31 = vld [vmem:[%s8434_s4 + $0x64] sm:$0xf]  ;;  %v4892_v39 = vld [vmem:[%s8434_s4 + $0x10] sm:$0xf0] }
 0x5d0   : > { %v4915_v36 = vor.u32 %v5220_v1, %v4914_v45  ;;  %v4919_v59 = vor.u32 %v5219_v31, %v4916_v4  ;;  %v4955_v37 = vld [vmem:[%s8434_s4 + $0x8] sm:$0xf]  ;;  %v5246_v45 = vld [vmem:[%s8434_s4 + $0x14] sm:$0xf0]  ;;  %v5245_v1 = vld [vmem:[%s8434_s4 + $0xc] sm:$0xf] }
 0x5d1   : > { %1985 = vmatpush.bf16.msra.mxu3 %v4951_v55  ;;  %2907 = vmatpush.bf16.msra.mxu0 %v4996_v47  ;;  %v4979_v55 = vld [vmem:[%s8434_s4 + $0x68] sm:$0xf]  ;;  %v4957_v31 = vld [vmem:[%s8434_s4 + $0x18] sm:$0xf0] }
 0x5d2   : > { %2957 = vmatpush.bf16.msra.mxu1 %v4992_v58  ;;  %v4980_v57 = vor.u32 %v5252_v21, %v4979_v55  ;;  %1940 = vmatpush.bf16.msrb.mxu2 %v4915_v36  ;;  %v4963_v47 = vld [vmem:[%s8434_s4 + $0x28] sm:$0xf]  ;;  %v4956_v36 = vor.u32 %v5246_v45, %v4955_v37  ;;  %v4960_v4 = vor.u32 %v5245_v1, %v4957_v31  ;;  %v6782_v31 = vld [vmem:[%s8437_s7 + $0x5] ss:$0 sm:$0xff] }
 0x5d3   : > { %1499 = vadd.xlane.f32.xlu1 %v6544_v27  ;;  %v4964_v20 = vor.u32 %v5248_v17, %v4963_v47 }
 0x5d5   : > { %1986 = vmatpush.bf16.msra.mxu3 %v4943_v0  ;;  %2908 = vmatpush.bf16.msra.mxu0 %v4988_v12  ;;  %v4971_v0 = vld [vmem:[%s8434_s4 + $0x48] sm:$0xf]  ;;  %v5213_v12 = vld [vmem:[%s8434_s4 + $0x4] sm:$0xf] }
 0x5d6   : > { %2958 = vmatpush.bf16.msra.mxu1 %v4984_v46  ;;  %v4972_v28 = vor.u32 %v5250_v18, %v4971_v0  ;;  %1941 = vmatpush.bf16.msrb.mxu2 %v4907_v24  ;;  %v4895_v58 = vor.u32 %v5213_v12, %v4892_v39 }
 0x5d9   : > { %1987 = vmatpush.bf16.msra.mxu3 %v4935_v44  ;;  %2909 = vmatpush.bf16.msra.mxu0 %v4980_v57  ;;  %v4900_v44 = vld [vmem:[%s8434_s4 + $0x30] sm:$0xf0] }
 0x5da   : > { %2959 = vmatpush.bf16.msra.mxu1 %v4976_v48  ;;  %v4903_v15 = vor.u32 %v5215_v11, %v4900_v44  ;;  %1942 = vmatpush.bf16.msrb.mxu2 %v4899_v26  ;;  %v1452_v11 = vpop.f32.mrf.mxu1 }
 0x5db   : > { %1501 = vadd.xlane.f32.xlu1 %v6549_v9 }
 0x5dd   : > { %1988 = vmatpush.bf16.msra.mxu3 %v4927_v5  ;;  %2910 = vmatpush.bf16.msra.mxu0 %v4972_v28  ;;  %v4891_v5 = vor.u32 %v5214_v50, %v4890_v8 }
 0x5de   : > { %2960 = vmatpush.bf16.msra.mxu1 %v4968_v54 }
 0x5df   : > { %1943 = vmatpush.bf16.msrb.mxu2 %v4891_v5 }
 0x5e1   : > { %1989 = vmatpush.bf16.msra.mxu3 %v4919_v59  ;;  %2911 = vmatpush.bf16.msra.mxu0 %v4964_v20 }
 0x5e2   : > { %2961 = vmatpush.bf16.msra.mxu1 %v4960_v4 }
 0x5e5   : > { %1990 = vmatpush.bf16.msra.mxu3 %v4911_v16  ;;  %2912 = vmatpush.bf16.msra.mxu0 %v4956_v36 }
 0x5e9   : > { %1991 = vmatpush.bf16.msra.mxu3 %v4903_v15 }
 0x5ed   : > { %1992 = vmatpush.bf16.msra.mxu3 %v4895_v58 }
 0x60e   : > { %v1554_v61 = vpop.xlane.xlu1 %1553 }
 0x60f   : > { %v1585_v22 = vmul.f32 %v1554_v61, %v5689_v13 }
 0x611   : > { %v1601_v23 = vadd.f32 1e-12, %v1585_v22  ;;  %v1453_v22 = vadd.f32 %v1452_v11, %v6461_v38  ;;  %v6769_v38 = vld [vmem:[%s8437_s7 + $0x4] ss:$0 sm:$0xff] }
 0x613   : > { %5416 = vrsqrt.f32 %v1601_v23  ;;  %vm1623_vm2 = vweird.f32 %v1601_v23  ;;  %v6774_v12 = vadd.f32 %v1453_v22, %v6216_v52 }
 0x616   : > { %v1556_v55 = vpop.xlane.xlu2 %1555  ;;  %v1488_v21 = vpop.xlane.xlu1 %1487 }
 0x617   : > { %v1586_v59 = vmul.f32 %v1556_v55, %v5689_v13  ;;  %v1512_v57 = vmul.f32 %v1488_v21, %v5689_v13 }
 0x619   : > { %v5417_v41 = vpop.eup %5416  ;;  %v1602_v56 = vadd.f32 1e-12, %v1586_v59  ;;  %v6748_v46 = vsub.f32 %v6489_v3, %v1512_v57 }
 0x61a   : > { %v1618_v19 = vmul.f32 %v5417_v41, %v1601_v23  ;;  %vm1624_vm1 = vweird.f32 %v5417_v41 }
 0x61b   : > { %5418 = vrsqrt.f32 %v1602_v56  ;;  %v1544_v49 = vmul.f32 %v6748_v46, %v6748_v46  ;;  %vm1625_vm3 = vmor %vm1623_vm2, %vm1624_vm1  ;;  %vm1633_vm5 = vweird.f32 %v1602_v56 }
 0x61c   : > { %v1619_v43 = vmul.f32 %v5417_v41, %v1618_v19 }
 0x61d   : > { %1567 = vadd.xlane.f32.xlu2 %v1544_v49 }
 0x61e   : > { %v1620_v24 = vmul.f32 0.5, %v1619_v43  ;;  %v1558_v42 = vpop.xlane.xlu2 %1557  ;;  %v1490_v0 = vpop.xlane.xlu1 %1489 }
 0x61f   : > { %v1587_v18 = vmul.f32 %v1558_v42, %v5689_v13  ;;  %v1513_v16 = vmul.f32 %v1490_v0, %v5689_v13 }
 0x620   : > { %v1621_v28 = vsub.f32 1.5, %v1620_v24 }
 0x621   : > { %v5419_v10 = vpop.eup %5418  ;;  %v1603_v6 = vadd.f32 1e-12, %v1587_v18  ;;  %v6755_v3 = vsub.f32 %v6499_v51, %v1513_v16 }
 0x622   : > { %v1622_v48 = vmul.f32 %v5417_v41, %v1621_v28  ;;  %v1628_v29 = vmul.f32 %v5419_v10, %v1602_v56  ;;  %vm1634_vm4 = vweird.f32 %v5419_v10 }
 0x623   : > { %5420 = vrsqrt.f32 %v1603_v6  ;;  %v1545_v53 = vmul.f32 %v6755_v3, %v6755_v3  ;;  %vm1635_vm6 = vmor %vm1633_vm5, %vm1634_vm4  ;;  %vm1643_vm8 = vweird.f32 %v1603_v6 }
 0x624   : > { %v1629_v61 = vmul.f32 %v5419_v10, %v1628_v29  ;;  %v1626_v26 = vsel %vm1625_vm3, %v5417_v41, %v1622_v48 }
 0x625   : > { %1569 = vadd.xlane.f32.xlu2 %v1545_v53  ;;  %v1777_v30 = vmul.f32 %v1626_v26, %v6478_v14 }
 0x626   : > { %v1630_v44 = vmul.f32 0.5, %v1629_v61  ;;  %v1492_v47 = vpop.xlane.xlu2 %1491  ;;  %v1560_v17 = vpop.xlane.xlu0 %1559 }
 0x627   : > { %v1514_v51 = vmul.f32 %v1492_v47, %v5689_v13  ;;  %v1588_v15 = vmul.f32 %v1560_v17, %v5689_v13  ;;  %v1793_v37 = vmul.f32 %v1777_v30, %v6769_v38 }
 0x628   : > { %v1631_v20 = vsub.f32 1.5, %v1630_v44 }
 0x629   : > { %v5421_v60 = vpop.eup %5420  ;;  %v6764_v54 = vsub.f32 %v6507_v7, %v1514_v51  ;;  %v1604_v23 = vadd.f32 1e-12, %v1588_v15  ;;  %v6791_v57 = vadd.f32 %v1793_v37, %v6782_v31 }
 0x62a   : > { %v1632_v8 = vmul.f32 %v5419_v10, %v1631_v20  ;;  %v1638_v50 = vmul.f32 %v5421_v60, %v1603_v6  ;;  %vm1644_vm7 = vweird.f32 %v5421_v60 }
 0x62b   : > { %5422 = vrsqrt.f32 %v1604_v23  ;;  %v1546_v5 = vmul.f32 %v6764_v54, %v6764_v54  ;;  %8494 = vst [vmem:[#allocation3_spill] sm:$0xff] %v6791_v57  ;;  %vm1645_vm9 = vmor %vm1643_vm8, %vm1644_vm7  ;;  %vm1653_vm11 = vweird.f32 %v1604_v23 }
 0x62c   : > { %v1636_v14 = vsel %vm1635_vm6, %v5419_v10, %v1632_v8  ;;  %v1639_v7 = vmul.f32 %v5421_v60, %v1638_v50 }
 0x62d   : > { %v1778_v39 = vmul.f32 %v1636_v14, %v6484_v25  ;;  %1571 = vadd.xlane.f32.xlu0 %v1546_v5  ;;  %1503 = vadd.xlane.f32.xlu2 %v6774_v12 }
 0x62e   : > { %v1640_v58 = vmul.f32 0.5, %v1639_v7  ;;  %v1494_v45 = vpop.xlane.xlu2 %1493  ;;  %v1562_v1 = vpop.xlane.xlu0 %1561 }
 0x62f   : > { %v1515_v52 = vmul.f32 %v1494_v45, %v5689_v13  ;;  %v1589_v36 = vmul.f32 %v1562_v1, %v5689_v13  ;;  %v1794_v4 = vmul.f32 %v1778_v39, %v6769_v38 }
 0x630   : > { %v1641_v25 = vsub.f32 1.5, %v1640_v58 }
 0x631   : > { %v5423_v55 = vpop.eup %5422  ;;  %v6788_v21 = vsub.f32 %v6517_v35, %v1515_v52  ;;  %v1605_v59 = vadd.f32 1e-12, %v1589_v36  ;;  %v6794_v41 = vadd.f32 %v1794_v4, %v6782_v31 }
 0x632   : > { %v1642_v56 = vmul.f32 %v5421_v60, %v1641_v25  ;;  %v1648_v19 = vmul.f32 %v5423_v55, %v1604_v23  ;;  %vm1654_vm10 = vweird.f32 %v5423_v55 }
 0x633   : > { %8495 = vst [vmem:[#allocation4_spill] sm:$0xff] %v6794_v41  ;;  %5424 = vrsqrt.f32 %v1605_v59  ;;  %v1547_v49 = vmul.f32 %v6788_v21, %v6788_v21  ;;  %v1825_v43 = vpack.c.bf16 %v6794_v41, %v6791_v57  ;;  %vm1655_vm12 = vmor %vm1653_vm11, %vm1654_vm10  ;;  %vm1663_vm14 = vweird.f32 %v1605_v59 }
 0x634   : > { %v1649_v35 = vmul.f32 %v5423_v55, %v1648_v19  ;;  %v1646_v24 = vsel %vm1645_vm9, %v5421_v60, %v1642_v56 }
 0x635   : > { %1573 = vadd.xlane.f32.xlu0 %v1547_v49  ;;  %1944 = vmatmul.bf16.vlgmr.msrb.gmra.mxu2 %v1825_v43  ;;  %v1779_v6 = vmul.f32 %v1646_v24, %v6494_v34 }
 0x636   : > { %v1650_v42 = vmul.f32 0.5, %v1649_v35  ;;  %1993 = vmatmul.bf16.vlgmr.msra.gmra.mxu3 %v1825_v43  ;;  %2913 = vmatmul.bf16.vlgmr.msra.gmra.mxu0 %v1825_v43  ;;  %v1496_v0 = vpop.xlane.xlu0 %1495  ;;  %v1564_v18 = vpop.xlane.xlu1 %1563 }
 0x637   : > { %2962 = vmatmul.bf16.vlgmr.msra.gmra.mxu1 %v1825_v43  ;;  %v1516_v16 = vmul.f32 %v1496_v0, %v5689_v13  ;;  %v1590_v28 = vmul.f32 %v1564_v18, %v5689_v13  ;;  %v1795_v22 = vmul.f32 %v1779_v6, %v6769_v38 }
 0x638   : > { %v1651_v10 = vsub.f32 1.5, %v1650_v42 }
 0x639   : > { %v5425_v48 = vpop.eup %5424  ;;  %v6804_v29 = vsub.f32 %v6529_v32, %v1516_v16  ;;  %v1606_v53 = vadd.f32 1e-12, %v1590_v28  ;;  %v6816_v8 = vadd.f32 %v1795_v22, %v6782_v31 }
 0x63a   : > { %v1652_v11 = vmul.f32 %v5423_v55, %v1651_v10  ;;  %v1658_v61 = vmul.f32 %v5425_v48, %v1605_v59  ;;  %vm1664_vm13 = vweird.f32 %v5425_v48 }
 0x63b   : > { %5426 = vrsqrt.f32 %v1606_v53  ;;  %v1548_v26 = vmul.f32 %v6804_v29, %v6804_v29  ;;  %8496 = vst [vmem:[#allocation5_spill] sm:$0xff] %v6816_v8  ;;  %vm1665_vm15 = vmor %vm1663_vm14, %vm1664_vm13  ;;  %vm1673_vm1 = vweird.f32 %v1606_v53 }
 0x63c   : > { %v1656_v44 = vsel %vm1655_vm12, %v5423_v55, %v1652_v11  ;;  %v1659_v47 = vmul.f32 %v5425_v48, %v1658_v61 }
 0x63d   : > { %v1780_v17 = vmul.f32 %v1656_v44, %v6504_v40  ;;  %1575 = vadd.xlane.f32.xlu1 %v1548_v26 }
 0x63e   : > { %v1660_v34 = vmul.f32 0.5, %v1659_v47  ;;  %v1498_v51 = vpop.xlane.xlu0 %1497  ;;  %v1566_v32 = vpop.xlane.xlu1 %1565 }
 0x63f   : > { %v1517_v15 = vmul.f32 %v1498_v51, %v5689_v13  ;;  %v1796_v20 = vmul.f32 %v1780_v17, %v6769_v38 }
 0x640   : > { %v1661_v60 = vsub.f32 1.5, %v1660_v34 }
 0x641   : > { %v5427_v30 = vpop.eup %5426  ;;  %v6813_v23 = vsub.f32 %v6539_v33, %v1517_v15  ;;  %v6819_v40 = vadd.f32 %v1796_v20, %v6782_v31 }
 0x642   : > { %v1662_v50 = vmul.f32 %v5425_v48, %v1661_v60  ;;  %v1668_v5 = vmul.f32 %v5427_v30, %v1606_v53  ;;  %vm1674_vm0 = vweird.f32 %v5427_v30 }
 0x643   : > { %8497 = vst [vmem:[#allocation6_spill] sm:$0xff] %v6819_v40  ;;  %v1826_v14 = vpack.c.bf16 %v6819_v40, %v6816_v8  ;;  %v1549_v7 = vmul.f32 %v6813_v23, %v6813_v23  ;;  %vm1675_vm2 = vmor %vm1673_vm1, %vm1674_vm0 }
 0x644   : > { %v1669_v39 = vmul.f32 %v5427_v30, %v1668_v5  ;;  %v1666_v33 = vsel %vm1665_vm15, %v5425_v48, %v1662_v50 }
 0x645   : > { %1949 = vmatmul.bf16.gmra.mxu2 %v1826_v14  ;;  %1577 = vadd.xlane.f32.xlu2 %v1549_v7  ;;  %v1781_v52 = vmul.f32 %v1666_v33, %v6514_v63 }
 0x646   : > { %v1670_v37 = vmul.f32 0.5, %v1669_v39  ;;  %1998 = vmatmul.bf16.gmra.mxu3 %v1826_v14  ;;  %2918 = vmatmul.bf16.gmra.mxu0 %v1826_v14  ;;  %v1500_v58 = vpop.xlane.xlu1 %1499 }
 0x647   : > { %2967 = vmatmul.bf16.gmra.mxu1 %v1826_v14  ;;  %v1518_v45 = vmul.f32 %v1500_v58, %v5689_v13  ;;  %v1797_v56 = vmul.f32 %v1781_v52, %v6769_v38 }
 0x648   : > { %v1671_v1 = vsub.f32 1.5, %v1670_v37 }
 0x649   : > { %v6828_v36 = vsub.f32 %v6544_v27, %v1518_v45  ;;  %v6840_v43 = vadd.f32 %v1797_v56, %v6782_v31 }
 0x64a   : > { %v1672_v4 = vmul.f32 %v5427_v30, %v1671_v1 }
 0x64b   : > { %v1550_v25 = vmul.f32 %v6828_v36, %v6828_v36  ;;  %8498 = vst [vmem:[#allocation7_spill] sm:$0xff] %v6840_v43 }
 0x64c   : > { %v1676_v55 = vsel %vm1675_vm2, %v5427_v30, %v1672_v4 }
 0x64d   : > { %v1782_v59 = vmul.f32 %v1676_v55, %v6524_v62  ;;  %1579 = vadd.xlane.f32.xlu0 %v1550_v25 }
 0x64e   : > { %v1502_v19 = vpop.xlane.xlu1 %1501 }
 0x64f   : > { %v1519_v49 = vmul.f32 %v1502_v19, %v5689_v13  ;;  %v1798_v63 = vmul.f32 %v1782_v59, %v6769_v38 }
 0x651   : > { %v6837_v27 = vsub.f32 %v6549_v9, %v1519_v49  ;;  %v6843_v35 = vadd.f32 %v1798_v63, %v6782_v31  ;;  %v1591_v9 = vmul.f32 %v1566_v32, %v5689_v13 }
 0x653   : > { %8499 = vst [vmem:[#allocation8_spill] sm:$0xff] %v6843_v35  ;;  %v1827_v62 = vpack.c.bf16 %v6843_v35, %v6840_v43  ;;  %v1551_v24 = vmul.f32 %v6837_v27, %v6837_v27  ;;  %v1607_v42 = vadd.f32 1e-12, %v1591_v9 }
 0x655   : > { %1954 = vmatmul.bf16.gmra.mxu2 %v1827_v62  ;;  %1581 = vadd.xlane.f32.xlu1 %v1551_v24  ;;  %5428 = vrsqrt.f32 %v1607_v42  ;;  %vm1683_vm4 = vweird.f32 %v1607_v42 }
 0x656   : > { %2003 = vmatmul.bf16.gmra.mxu3 %v1827_v62  ;;  %2923 = vmatmul.bf16.gmra.mxu0 %v1827_v62 }
 0x657   : > { %2972 = vmatmul.bf16.gmra.mxu1 %v1827_v62  ;;  %v4952_v62 = vld [vmem:[%s8437_s7 + $0x16] ss:$8 sm:$0x3] }
 0x65b   : > { %v5429_v0 = vpop.eup %5428 }
 0x65c   : > { %v1678_v18 = vmul.f32 %v5429_v0, %v1607_v42  ;;  %vm1684_vm3 = vweird.f32 %v5429_v0 }
 0x65d   : > { %vm1685_vm5 = vmor %vm1683_vm4, %vm1684_vm3 }
 0x65e   : > { %v1679_v16 = vmul.f32 %v5429_v0, %v1678_v18 }
 0x660   : > { %v1680_v6 = vmul.f32 0.5, %v1679_v16 }
 0x662   : > { %v1681_v53 = vsub.f32 1.5, %v1680_v6 }
 0x664   : > { %v1682_v47 = vmul.f32 %v5429_v0, %v1681_v53 }
 0x666   : > { %v1686_v34 = vsel %vm1685_vm5, %v5429_v0, %v1682_v47  ;;  %v6882_v0 = vperm.slane %v4952_v62, 0 }
 0x667   : > { %v1783_v5 = vmul.f32 %v1686_v34, %v6534_v2 }
 0x668   : > { %8502 = vst [vmem:[#allocation11_spill] sm:$0xff] %v6882_v0 }
 0x669   : > { %v1799_v2 = vmul.f32 %v1783_v5, %v6769_v38 }
 0x66b   : > { %v6871_v56 = vadd.f32 %v1799_v2, %v6782_v31 }
 0x66d   : > { %8500 = vst [vmem:[#allocation9_spill] sm:$0xff] %v6871_v56 }
 0x690   : > { %v1568_v28 = vpop.xlane.xlu2 %1567 }
 0x691   : > { %v1592_v10 = vmul.f32 %v1568_v28, %v5689_v13  ;;  %v6885_v28 = vperm.slane %v4952_v62, 1 }
 0x693   : > { %v1608_v48 = vadd.f32 1e-12, %v1592_v10  ;;  %8503 = vst [vmem:[#allocation12_spill] sm:$0xff] %v6885_v28  ;;  %v4887_v10 = vld [vmem:[%s8437_s7 + $0x6] ss:$8 sm:$0x3] }
 0x695   : > { %5430 = vrsqrt.f32 %v1608_v48  ;;  %vm1693_vm7 = vweird.f32 %v1608_v48 }
 0x698   : > { %v1570_v11 = vpop.xlane.xlu2 %1569 }
 0x699   : > { %v1593_v61 = vmul.f32 %v1570_v11, %v5689_v13 }
 0x69b   : > { %v5431_v26 = vpop.eup %5430  ;;  %v6852_v44 = vadd.f32 1e-12, %v1593_v61 }
 0x69c   : > { %v1688_v17 = vmul.f32 %v5431_v26, %v1608_v48  ;;  %vm1694_vm6 = vweird.f32 %v5431_v26 }
 0x69d   : > { %5432 = vrsqrt.f32 %v6852_v44  ;;  %vm1695_vm8 = vmor %vm1693_vm7, %vm1694_vm6  ;;  %vm1703_vm10 = vweird.f32 %v6852_v44 }
 0x69e   : > { %v1689_v22 = vmul.f32 %v5431_v26, %v1688_v17  ;;  %v6896_v17 = vperm.slane %v4887_v10, 0 }
 0x6a0   : > { %v1690_v51 = vmul.f32 0.5, %v1689_v22  ;;  %v1572_v32 = vpop.xlane.xlu0 %1571  ;;  %v1504_v15 = vpop.xlane.xlu2 %1503  ;;  %8504 = vst [vmem:[#allocation13_spill] sm:$0xff] %v6896_v17 }
 0x6a1   : > { %v1594_v20 = vmul.f32 %v1572_v32, %v5689_v13  ;;  %v1520_v60 = vmul.f32 %v1504_v15, %v5689_v13 }
 0x6a2   : > { %v1691_v30 = vsub.f32 1.5, %v1690_v51  ;;  %v6902_v51 = vperm.slane %v4887_v10, 1 }
 0x6a3   : > { %v5433_v50 = vpop.eup %5432  ;;  %v1610_v14 = vadd.f32 1e-12, %v1594_v20  ;;  %v6859_v7 = vsub.f32 %v6774_v12, %v1520_v60 }
 0x6a4   : > { %v1692_v39 = vmul.f32 %v5431_v26, %v1691_v30  ;;  %v1698_v33 = vmul.f32 %v5433_v50, %v6852_v44  ;;  %vm1704_vm9 = vweird.f32 %v5433_v50  ;;  %8505 = vst [vmem:[#allocation14_spill] sm:$0xff] %v6902_v51 }
 0x6a5   : > { %5434 = vrsqrt.f32 %v1610_v14  ;;  %v1552_v37 = vmul.f32 %v6859_v7, %v6859_v7  ;;  %vm1705_vm12 = vmor %vm1703_vm10, %vm1704_vm9  ;;  %vm1713_vm13 = vweird.f32 %v1610_v14 }
 0x6a6   : > { %v1696_v58 = vsel %vm1695_vm8, %v5431_v26, %v1692_v39  ;;  %v1699_v45 = vmul.f32 %v5433_v50, %v1698_v33 }
 0x6a7   : > { %v1784_v1 = vmul.f32 %v1696_v58, %v6748_v46  ;;  %1583 = vadd.xlane.f32.xlu2 %v1552_v37 }
 0x6a8   : > { %v1574_v52 = vpop.xlane.xlu0 %1573  ;;  %v1700_v4 = vmul.f32 0.5, %v1699_v45 }
 0x6a9   : > { %v1595_v12 = vmul.f32 %v1574_v52, %v5689_v13  ;;  %v1800_v25 = vmul.f32 %v1784_v1, %v6769_v38 }
 0x6aa   : > { %v1701_v46 = vsub.f32 1.5, %v1700_v4 }
 0x6ab   : > { %v5435_v55 = vpop.eup %5434  ;;  %v6868_v59 = vadd.f32 1e-12, %v1595_v12  ;;  %v6874_v19 = vadd.f32 %v1800_v25, %v6782_v31 }
 0x6ac   : > { %v1708_v49 = vmul.f32 %v5435_v55, %v1610_v14  ;;  %v1702_v18 = vmul.f32 %v5433_v50, %v1701_v46  ;;  %vm1714_vm11 = vweird.f32 %v5435_v55 }
 0x6ad   : > { %8501 = vst [vmem:[#allocation10_spill] sm:$0xff] %v6874_v19  ;;  %5436 = vrsqrt.f32 %v6868_v59  ;;  %v1828_v63 = vpack.c.bf16 %v6874_v19, %v6871_v56  ;;  %vm1715_vm14 = vmor %vm1713_vm13, %vm1714_vm11  ;;  %vm1723_vm15 = vweird.f32 %v6868_v59 }
 0x6ae   : > { %v1709_v24 = vmul.f32 %v5435_v55, %v1708_v49  ;;  %v1706_v22 = vsel %vm1705_vm12, %v5433_v50, %v1702_v18 }
 0x6af   : > { %1959 = vmatmul.bf16.gmra.mxu2 %v1828_v63  ;;  %2008 = vmatmul.bf16.gmra.mxu3 %v1828_v63  ;;  %v1785_v20 = vmul.f32 %v1706_v22, %v6755_v3 }
 0x6b0   : > { %v1710_v9 = vmul.f32 0.5, %v1709_v24  ;;  %2928 = vmatmul.bf16.gmra.mxu0 %v1828_v63  ;;  %2977 = vmatmul.bf16.gmra.mxu1 %v1828_v63  ;;  %v1576_v42 = vpop.xlane.xlu1 %1575 }
 0x6b1   : > { %v1596_v16 = vmul.f32 %v1576_v42, %v5689_v13 }
 0x6b2   : > { %v1711_v48 = vsub.f32 1.5, %v1710_v9 }
 0x6b3   : > { %v6890_v6 = vpop.eup %5436  ;;  %v6893_v53 = vadd.f32 1e-12, %v1596_v16  ;;  %v2914_v11 = vpop.f32.mrf.mxu0 }
 0x6b4   : > { %v1712_v61 = vmul.f32 %v5435_v55, %v1711_v48  ;;  %v2915_v26 = vadd.f32 %v2914_v11, %v6882_v0  ;;  %v2963_v47 = vpop.f32.mrf.mxu1  ;;  %v1718_v44 = vmul.f32 %v6890_v6, %v6868_v59  ;;  %vm1724_vm0 = vweird.f32 %v6890_v6 }
 0x6b5   : > { %5438 = vrsqrt.f32 %v6893_v53  ;;  %v2964_v34 = vadd.f32 %v2963_v47, %v6885_v28  ;;  %vm1733_vm1 = vweird.f32 %v6893_v53  ;;  %vm6968_vm2 = vmor %vm1723_vm15, %vm1724_vm0 }
 0x6b6   : > { %v1716_v32 = vsel %vm1715_vm14, %v5435_v55, %v1712_v61  ;;  %v1719_v58 = vmul.f32 %v6890_v6, %v1718_v44  ;;  %v1801_v55 = vmul.f32 %v1785_v20, %v6769_v38 }
 0x6b7   : > { %v3003_v15 = vpack.c.bf16 %v2964_v34, %v2915_v26  ;;  %v1786_v37 = vmul.f32 %v1716_v32, %v6764_v54 }
 0x6b8   : > { %v1945_v60 = vpop.f32.mrf.mxu2  ;;  %v1578_v30 = vpop.xlane.xlu2 %1577  ;;  %v1720_v49 = vmul.f32 0.5, %v1719_v58  ;;  %v6941_v44 = vadd.f32 %v1801_v55, %v6782_v31 }
 0x6b9   : > { %v6905_v5 = vunpack.c.l.bf16 %v3003_v15  ;;  %v6907_v50 = vunpack.c.h.bf16 %v3003_v15  ;;  %v1946_v14 = vadd.f32 %v1945_v60, %v6896_v17  ;;  %v1994_v39 = vpop.f32.mrf.mxu3  ;;  %v1597_v33 = vmul.f32 %v1578_v30, %v5689_v13 }
 0x6ba   : > { %v1995_v45 = vadd.f32 %v1994_v39, %v6902_v51  ;;  %v1802_v62 = vmul.f32 %v1786_v37, %v6769_v38  ;;  %v1721_v22 = vsub.f32 1.5, %v1720_v49  ;;  %8506 = vst [vmem:[#allocation15_spill] sm:$0xff] %v6941_v44 }
 0x6bb   : > { %v6914_v1 = vpop.eup %5438  ;;  %v3099_v3 = vmul.f32 %v6905_v5, %v6905_v5  ;;  %v3100_v2 = vmul.f32 %v6907_v50, %v6907_v50  ;;  %v6922_v25 = vadd.f32 1e-12, %v1597_v33  ;;  %v2916_v54 = vpop.f32.mrf.mxu0 }
 0x6bc   : > { %v1728_v52 = vmul.f32 %v6914_v1, %v6893_v53  ;;  %v2034_v4 = vpack.c.bf16 %v1995_v45, %v1946_v14  ;;  %v2965_v18 = vpop.f32.mrf.mxu1  ;;  %v2917_v10 = vadd.f32 %v2916_v54, %v6882_v0  ;;  %v6944_v32 = vadd.f32 %v1802_v62, %v6782_v31 }
 0x6bd   : > { %v3131_v12 = vpack.c.bf16 %v3100_v2, %v3099_v3  ;;  %5440 = vrsqrt.f32 %v6922_v25  ;;  %v2966_v34 = vadd.f32 %v2965_v18, %v6885_v28  ;;  %vm1734_vm3 = vweird.f32 %v6914_v1 }
 0x6be   : > { %v6925_v46 = vunpack.c.l.bf16 %v2034_v4  ;;  %v6927_v63 = vunpack.c.h.bf16 %v2034_v4  ;;  %v1729_v24 = vmul.f32 %v6914_v1, %v1728_v52  ;;  %8507 = vst [vmem:[#allocation16_spill] sm:$0xff] %v6944_v32  ;;  %v1829_v14 = vpack.c.bf16 %v6944_v32, %v6941_v44  ;;  %vm6997_vm4 = vmor %vm1733_vm1, %vm1734_vm3 }
 0x6bf   : > { %v3147_v9 = vunpack.c.l.bf16 %v3131_v12  ;;  %v3148_v42 = vunpack.c.h.bf16 %v3131_v12  ;;  %v3004_v30 = vpack.c.bf16 %v2966_v34, %v2917_v10  ;;  %v1722_v52 = vmul.f32 %v6890_v6, %v1721_v22 }
 0x6c0   : > { %v2130_v16 = vmul.f32 %v6925_v46, %v6925_v46  ;;  %v2131_v61 = vmul.f32 %v6927_v63, %v6927_v63  ;;  %v1947_v26 = vpop.f32.mrf.mxu2  ;;  %v1730_v15 = vmul.f32 0.5, %v1729_v24  ;;  %1964 = vmatmul.bf16.gmra.mxu2 %v1829_v14  ;;  %2013 = vmatmul.bf16.gmra.mxu3 %v1829_v14  ;;  %v3051_v12 = vmul.f32 0.5, %v6905_v5  ;;  %v1580_v18 = vpop.xlane.xlu0 %1579 }
 0x6c1   : > { %v3179_v48 = vmul.f32 %v3147_v9, %v6905_v5  ;;  %v3180_v11 = vmul.f32 %v3148_v42, %v6907_v50  ;;  %v1996_v47 = vpop.f32.mrf.mxu3  ;;  %v1948_v39 = vadd.f32 %v1947_v26, %v6896_v17  ;;  %v6956_v4 = vunpack.c.l.bf16 %v3004_v30  ;;  %2933 = vmatmul.bf16.gmra.mxu0 %v1829_v14  ;;  %2982 = vmatmul.bf16.gmra.mxu1 %v1829_v14 }
 0x6c2   : > { %v2162_v60 = vpack.c.bf16 %v2131_v61, %v2130_v16  ;;  %v1997_v33 = vadd.f32 %v1996_v47, %v6902_v51  ;;  %v1731_v62 = vsub.f32 1.5, %v1730_v15  ;;  %v3052_v24 = vmul.f32 0.5, %v6907_v50 }
 0x6c3   : > { %v3211_v20 = vpack.c.bf16 %v3180_v11, %v3179_v48  ;;  %v6951_v2 = vpop.eup %5440  ;;  %v6962_v42 = vunpack.c.h.bf16 %v3004_v30  ;;  %v3101_v11 = vmul.f32 %v6956_v4, %v6956_v4  ;;  %v1726_v26 = vsel %vm6968_vm2, %v6890_v6, %v1722_v52 }
 0x6c4   : > { %v2178_v45 = vunpack.c.l.bf16 %v2162_v60  ;;  %v2179_v3 = vunpack.c.h.bf16 %v2162_v60  ;;  %v1738_v48 = vmul.f32 %v6951_v2, %v6922_v25  ;;  %v2035_v61 = vpack.c.bf16 %v1997_v33, %v1948_v39 }
 0x6c5   : > { %v3227_v37 = vunpack.c.l.bf16 %v3211_v20  ;;  %v3228_v58 = vunpack.c.h.bf16 %v3211_v20  ;;  %v3102_v59 = vmul.f32 %v6962_v42, %v6962_v42  ;;  %v1598_v20 = vmul.f32 %v1580_v18, %v5689_v13 }
 0x6c6   : > { %v2210_v49 = vmul.f32 %v2178_v45, %v6925_v46  ;;  %v2211_v9 = vmul.f32 %v2179_v3, %v6927_v63  ;;  %v6982_v15 = vunpack.c.l.bf16 %v2035_v61  ;;  %v1732_v60 = vmul.f32 %v6914_v1, %v1731_v62 }
 0x6c7   : > { %v3259_v54 = vmul.f32 0.044677734, %v3227_v37  ;;  %v3260_v55 = vmul.f32 0.044677734, %v3228_v58  ;;  %v6986_v39 = vunpack.c.h.bf16 %v2035_v61  ;;  %v2082_v6 = vmul.f32 0.5, %v6925_v46 }
 0x6c8   : > { %v2242_v47 = vpack.c.bf16 %v2211_v9, %v2210_v49  ;;  %v2083_v33 = vmul.f32 0.5, %v6927_v63  ;;  %v1739_v37 = vmul.f32 %v6951_v2, %v1738_v48  ;;  %v3132_v58 = vpack.c.bf16 %v3102_v59, %v3101_v11 }
 0x6c9   : > { %v3291_v10 = vpack.c.bf16 %v3260_v55, %v3259_v54  ;;  %v2132_v9 = vmul.f32 %v6982_v15, %v6982_v15  ;;  %v7003_v18 = vadd.f32 1e-12, %v1598_v20  ;;  %v2133_v16 = vmul.f32 %v6986_v39, %v6986_v39 }
 0x6ca   : > { %v2258_v30 = vunpack.c.l.bf16 %v2242_v47  ;;  %v2259_v14 = vunpack.c.h.bf16 %v2242_v47  ;;  %v3149_v49 = vunpack.c.l.bf16 %v3132_v58  ;;  %v3150_v62 = vunpack.c.h.bf16 %v3132_v58 }
 0x6cb   : > { %v3307_v22 = vunpack.c.l.bf16 %v3291_v10  ;;  %v3308_v34 = vunpack.c.h.bf16 %v3291_v10  ;;  %v7011_v53 = vmul.f32 %v1726_v26, %v6788_v21  ;;  %v7013_v10 = vpack.c.bf16 %v3052_v24, %v3051_v12 }
 0x6cc   : > { %v2290_v52 = vmul.f32 0.044677734, %v2258_v30  ;;  %v2291_v54 = vmul.f32 0.044677734, %v2259_v14  ;;  %v1740_v48 = vmul.f32 0.5, %v1739_v37  ;;  %v3181_v11 = vmul.f32 %v3149_v49, %v6956_v4 }
 0x6cd   : > { %v3339_v45 = vadd.f32 %v3307_v22, %v6905_v5  ;;  %v3340_v3 = vadd.f32 %v3308_v34, %v6907_v50  ;;  %v1736_v5 = vsel %vm6997_vm4, %v6914_v1, %v1732_v60  ;;  %v7016_v47 = vpack.c.bf16 %v2083_v33, %v2082_v6  ;;  %v2919_v34 = vpop.f32.mrf.mxu0  ;;  %v2968_v1 = vpop.f32.mrf.mxu1 }
 0x6ce   : > { %v2322_v50 = vpack.c.bf16 %v2291_v54, %v2290_v52  ;;  %v3182_v59 = vmul.f32 %v3150_v62, %v6962_v42  ;;  %v2163_v22 = vpack.c.bf16 %v2133_v16, %v2132_v9  ;;  %v7020_v20 = vmul.f32 %v1736_v5, %v6804_v29 }
 0x6cf   : > { %v3371_v61 = vpack.c.bf16 %v3340_v3, %v3339_v45  ;;  %vm1744_vm5 = vweird.f32 %v6951_v2  ;;  %v3053_v21 = vmul.f32 0.5, %v6956_v4  ;;  %5442 = vrsqrt.f32 %v7003_v18 }
 0x6d0   : > { %v2338_v12 = vunpack.c.l.bf16 %v2322_v50  ;;  %v2339_v24 = vunpack.c.h.bf16 %v2322_v50  ;;  %vm1743_vm6 = vweird.f32 %v6922_v25  ;;  %v3212_v26 = vpack.c.bf16 %v3182_v59, %v3181_v11 }
 0x6d1   : > { %v2180_v60 = vunpack.c.l.bf16 %v2163_v22  ;;  %v1741_v30 = vsub.f32 1.5, %v1740_v48  ;;  %v2181_v14 = vunpack.c.h.bf16 %v2163_v22  ;;  %v2920_v6 = vadd.f32 %v2919_v34, %v6882_v0  ;;  %vm7050_vm7 = vmor %vm1743_vm6, %vm1744_vm5 }
 0x6d2   : > { %v2969_v33 = vadd.f32 %v2968_v1, %v6885_v28  ;;  %v3387_v29 = vunpack.c.l.bf16 %v3371_v61  ;;  %v3229_v37 = vunpack.c.l.bf16 %v3212_v26  ;;  %v3230_v58 = vunpack.c.h.bf16 %v3212_v26 }
 0x6d3   : > { %v2212_v45 = vmul.f32 %v2180_v60, %v6982_v15  ;;  %v3388_v3 = vunpack.c.h.bf16 %v3371_v61  ;;  %v3054_v52 = vmul.f32 0.5, %v6962_v42  ;;  %v2213_v54 = vmul.f32 %v2181_v14, %v6986_v39 }
 0x6d4   : > { %v3005_v55 = vpack.c.bf16 %v2969_v33, %v2920_v6  ;;  %v2370_v49 = vadd.f32 %v2338_v12, %v6925_v46  ;;  %v2371_v62 = vadd.f32 %v2339_v24, %v6927_v63  ;;  %v3261_v9 = vmul.f32 0.044677734, %v3229_v37  ;;  %v1950_v33 = vpop.f32.mrf.mxu2 }
 0x6d5   : > { %v3262_v5 = vmul.f32 0.044677734, %v3230_v58  ;;  %v7033_v50 = vpop.eup %5442  ;;  %v2084_v16 = vmul.f32 0.5, %v6982_v15  ;;  %v2243_v48 = vpack.c.bf16 %v2213_v54, %v2212_v45  ;;  %v3419_v61 = vmul.f32 0.796875, %v3387_v29 }
 0x6d6   : > { %v7036_v11 = vunpack.c.l.bf16 %v3005_v55  ;;  %v7038_v59 = vunpack.c.h.bf16 %v3005_v55  ;;  %v1742_v22 = vmul.f32 %v6951_v2, %v1741_v30  ;;  %v2085_v1 = vmul.f32 0.5, %v6986_v39 }
 0x6d7   : > { %v3292_v34 = vpack.c.bf16 %v3262_v5, %v3261_v9  ;;  %v3420_v46 = vmul.f32 0.796875, %v3388_v3  ;;  %v2260_v12 = vunpack.c.l.bf16 %v2243_v48  ;;  %v2261_v63 = vunpack.c.h.bf16 %v2243_v48  ;;  %v1999_v3 = vpop.f32.mrf.mxu3 }
 0x6d8   : > { %v1748_v24 = vmul.f32 %v7033_v50, %v7003_v18  ;;  %v2402_v26 = vpack.c.bf16 %v2371_v62, %v2370_v49  ;;  %v3103_v6 = vmul.f32 %v7036_v11, %v7036_v11  ;;  %v3104_v45 = vmul.f32 %v7038_v59, %v7038_v59 }
 0x6d9   : > { %v3309_v60 = vunpack.c.l.bf16 %v3292_v34  ;;  %v3310_v14 = vunpack.c.h.bf16 %v3292_v34  ;;  %v2292_v29 = vmul.f32 0.044677734, %v2260_v12  ;;  %v2293_v37 = vmul.f32 0.044677734, %v2261_v63  ;;  %v1582_v34 = vpop.xlane.xlu1 %1581 }
 0x6da   : > { %v1749_v58 = vmul.f32 %v7033_v50, %v1748_v24  ;;  %v1746_v54 = vsel %vm7050_vm7, %v6951_v2, %v1742_v22  ;;  %v7060_v55 = vpack.c.bf16 %v3054_v52, %v3053_v21  ;;  %v7064_v62 = vpack.c.bf16 %v2085_v1, %v2084_v16 }
 0x6db   : > { %v3341_v25 = vadd.f32 %v3309_v60, %v6956_v4  ;;  %v3342_v49 = vadd.f32 %v3310_v14, %v6962_v42  ;;  %v2323_v9 = vpack.c.bf16 %v2293_v37, %v2292_v29  ;;  %v3133_v5 = vpack.c.bf16 %v3104_v45, %v3103_v6 }
 0x6dc   : > { %v1951_v48 = vadd.f32 %v1950_v33, %v6896_v17  ;;  %v7067_v12 = vpack.c.bf16 %v3420_v46, %v3419_v61  ;;  %v2418_v63 = vunpack.c.l.bf16 %v2402_v26  ;;  %v2000_v30 = vadd.f32 %v1999_v3, %v6902_v51 }
 0x6dd   : > { %v3372_v24 = vpack.c.bf16 %v3342_v49, %v3341_v25  ;;  %v2419_v2 = vunpack.c.h.bf16 %v2402_v26  ;;  %v2340_v21 = vunpack.c.l.bf16 %v2323_v9  ;;  %v2341_v52 = vunpack.c.h.bf16 %v2323_v9 }
 0x6de   : > { %v1750_v22 = vmul.f32 0.5, %v1749_v58  ;;  %v3151_v60 = vunpack.c.l.bf16 %v3133_v5  ;;  %v3152_v42 = vunpack.c.h.bf16 %v3133_v5  ;;  %v1599_v16 = vmul.f32 %v1582_v34, %v5689_v13 }
 0x6df   : > { %v3389_v4 = vunpack.c.l.bf16 %v3372_v24  ;;  %v3390_v1 = vunpack.c.h.bf16 %v3372_v24  ;;  %v2372_v14 = vadd.f32 %v2340_v21, %v6982_v15  ;;  %v2373_v6 = vadd.f32 %v2341_v52, %v6986_v39  ;;  %v2921_v24 = vpop.f32.mrf.mxu0  ;;  %v2970_v52 = vpop.f32.mrf.mxu1 }
 0x6e0   : > { %v2036_v61 = vpack.c.bf16 %v2000_v30, %v1951_v48  ;;  %v3467_v46 = vunpack.c.l.bf16 %v7067_v12  ;;  %v7075_v33 = vmul.f32 %v1746_v54, %v6813_v23  ;;  %v3183_v26 = vmul.f32 %v3151_v60, %v7036_v11 }
 0x6e1   : > { %v3184_v29 = vmul.f32 %v3152_v42, %v7038_v59  ;;  %v2450_v37 = vmul.f32 0.796875, %v2418_v63  ;;  %v2403_v58 = vpack.c.bf16 %v2373_v6, %v2372_v14  ;;  %vm1753_vm8 = vweird.f32 %v7003_v18  ;;  %v2001_v18 = vpop.f32.mrf.mxu3 }
 0x6e2   : > { %v7080_v45 = vunpack.c.l.bf16 %v2036_v61  ;;  %v7082_v3 = vunpack.c.h.bf16 %v2036_v61  ;;  %v2451_v15 = vmul.f32 0.796875, %v2419_v2  ;;  %v1751_v39 = vsub.f32 1.5, %v1750_v22 }
 0x6e3   : > { %v3213_v25 = vpack.c.bf16 %v3184_v29, %v3183_v26  ;;  %v7084_v49 = vadd.f32 1e-12, %v1599_v16  ;;  %v3421_v9 = vmul.f32 0.796875, %v3389_v4  ;;  %v3422_v23 = vmul.f32 0.796875, %v3390_v1 }
 0x6e4   : > { %8514 = vst [vmem:[#allocation17_spill] sm:$0xff] %v7080_v45  ;;  %v2134_v54 = vmul.f32 %v7080_v45, %v7080_v45  ;;  %v2135_v5 = vmul.f32 %v7082_v3, %v7082_v3  ;;  %5444 = vtanh.f32 %v3467_v46  ;;  %v2420_v48 = vunpack.c.l.bf16 %v2403_v58 }
 0x6e5   : > { %8515 = vst [vmem:[#allocation18_spill] sm:$0xff] %v7082_v3  ;;  %v3231_v34 = vunpack.c.l.bf16 %v3213_v25  ;;  %v3232_v63 = vunpack.c.h.bf16 %v3213_v25  ;;  %v3468_v30 = vunpack.c.h.bf16 %v7067_v12  ;;  %v2421_v2 = vunpack.c.h.bf16 %v2403_v58 }
 0x6e6   : > { %v2164_v21 = vpack.c.bf16 %v2135_v5, %v2134_v54  ;;  %5446 = vrsqrt.f32 %v7084_v49  ;;  %v2482_v22 = vpack.c.bf16 %v2451_v15, %v2450_v37  ;;  %vm1754_vm9 = vweird.f32 %v7033_v50  ;;  %v1952_v15 = vpop.f32.mrf.mxu2 }
 0x6e7   : > { %v3263_v4 = vmul.f32 0.044677734, %v3231_v34  ;;  %v3264_v60 = vmul.f32 0.044677734, %v3232_v63  ;;  %v3452_v42 = vpack.c.bf16 %v3422_v23, %v3421_v9  ;;  %v1752_v16 = vmul.f32 %v7033_v50, %v1751_v39  ;;  %vm7106_vm10 = vmor %vm1753_vm8, %vm1754_vm9  ;;  %v2973_v39 = vpop.f32.mrf.mxu1 }
 0x6e8   : > { %v2182_v1 = vunpack.c.l.bf16 %v2164_v21  ;;  %v2183_v14 = vunpack.c.h.bf16 %v2164_v21  ;;  %v2452_v6 = vmul.f32 0.796875, %v2420_v48  ;;  %v2922_v46 = vadd.f32 %v2921_v24, %v6882_v0 }
 0x6e9   : > { %v3293_v61 = vpack.c.bf16 %v3264_v60, %v3263_v4  ;;  %v2971_v12 = vadd.f32 %v2970_v52, %v6885_v28  ;;  %v2453_v26 = vmul.f32 0.796875, %v2421_v2  ;;  %v1803_v58 = vmul.f32 %v7011_v53, %v6769_v38 }
 0x6ea   : > { %v2214_v29 = vmul.f32 %v2182_v1, %v7080_v45  ;;  %v2215_v37 = vmul.f32 %v2183_v14, %v7082_v3  ;;  %v7100_v25 = vpop.eup %5444  ;;  %v1804_v5 = vmul.f32 %v7020_v20, %v6769_v38  ;;  %v2498_v53 = vunpack.c.l.bf16 %v2482_v22 }
 0x6eb   : > { %v3311_v9 = vunpack.c.l.bf16 %v3293_v61  ;;  %v3312_v23 = vunpack.c.h.bf16 %v3293_v61  ;;  %v3006_v54 = vpack.c.bf16 %v2971_v12, %v2922_v46  ;;  %v2499_v34 = vunpack.c.h.bf16 %v2482_v22  ;;  %v2924_v61 = vpop.f32.mrf.mxu0 }
 0x6ec   : > { %v7112_v48 = vpop.eup %5446  ;;  %v1756_v63 = vsel %vm7106_vm10, %v7033_v50, %v1752_v16  ;;  %v2244_v24 = vpack.c.bf16 %v2215_v37, %v2214_v29  ;;  %v3469_v2 = vunpack.c.l.bf16 %v3452_v42  ;;  %v1953_v4 = vadd.f32 %v1952_v15, %v6896_v17 }
 0x6ed   : > { %v3343_v21 = vadd.f32 %v3311_v9, %v7036_v11  ;;  %v3344_v52 = vadd.f32 %v3312_v23, %v7038_v59  ;;  %v1758_v38 = vmul.f32 %v7112_v48, %v7084_v49  ;;  %v7122_v20 = vunpack.c.l.bf16 %v3006_v54 }
 0x6ee   : > { %v2262_v60 = vunpack.c.l.bf16 %v2244_v24  ;;  %v2263_v1 = vunpack.c.h.bf16 %v2244_v24  ;;  %v7124_v22 = vpack.c.bf16 %v2453_v26, %v2452_v6  ;;  %v7126_v14 = vunpack.c.h.bf16 %v3006_v54 }
 0x6ef   : > { %v7129_v50 = vadd.f32 %v1803_v58, %v6782_v31  ;;  %v7132_v16 = vadd.f32 %v1804_v5, %v6782_v31  ;;  %v3105_v29 = vmul.f32 %v7122_v20, %v7122_v20  ;;  %v2002_v37 = vadd.f32 %v2001_v18, %v6902_v51  ;;  %v2975_v32 = vpop.f32.mrf.mxu1 }
 0x6f0   : > { %v2294_v46 = vmul.f32 0.044677734, %v2262_v60  ;;  %v2295_v12 = vmul.f32 0.044677734, %v2263_v1  ;;  %5448 = vtanh.f32 %v3468_v30  ;;  %v3470_v15 = vunpack.c.h.bf16 %v3452_v42 }
 0x6f1   : > { %8518 = vst [vmem:[#allocation19_spill] sm:$0xff] %v7129_v50  ;;  %v3373_v6 = vpack.c.bf16 %v3344_v52, %v3343_v21  ;;  %v3106_v26 = vmul.f32 %v7126_v14, %v7126_v14  ;;  %5450 = vtanh.f32 %v2498_v53  ;;  %v1759_v58 = vmul.f32 %v7112_v48, %v1758_v38  ;;  %v1955_v52 = vpop.f32.mrf.mxu2 }
 0x6f2   : > { %8519 = vst [vmem:[#allocation20_spill] sm:$0xff] %v7132_v16  ;;  %v1830_v31 = vpack.c.bf16 %v7132_v16, %v7129_v50  ;;  %v2037_v9 = vpack.c.bf16 %v2002_v37, %v1953_v4  ;;  %5452 = vtanh.f32 %v2499_v34  ;;  %v7143_v23 = vmul.f32 %v1756_v63, %v6828_v36  ;;  %v2004_v4 = vpop.f32.mrf.mxu3 }
 0x6f3   : > { %v2324_v54 = vpack.c.bf16 %v2295_v12, %v2294_v46  ;;  %v3134_v5 = vpack.c.bf16 %v3106_v26, %v3105_v29  ;;  %5454 = vtanh.f32 %v3469_v2  ;;  %v2500_v30 = vunpack.c.l.bf16 %v7124_v22 }
 0x6f4   : > { %1969 = vmatmul.bf16.gmra.mxu2 %v1830_v31  ;;  %2018 = vmatmul.bf16.gmra.mxu3 %v1830_v31  ;;  %v7146_v42 = vunpack.c.l.bf16 %v2037_v9  ;;  %v7148_v53 = vunpack.c.h.bf16 %v2037_v9  ;;  %5456 = vtanh.f32 %v3470_v15  ;;  %v3391_v24 = vunpack.c.l.bf16 %v3373_v6 }
 0x6f5   : > { %v3153_v18 = vunpack.c.l.bf16 %v3134_v5  ;;  %v3154_v21 = vunpack.c.h.bf16 %v3134_v5  ;;  %2938 = vmatmul.bf16.gmra.mxu0 %v1830_v31  ;;  %2987 = vmatmul.bf16.gmra.mxu1 %v1830_v31  ;;  %v3392_v34 = vunpack.c.h.bf16 %v3373_v6  ;;  %v1760_v36 = vmul.f32 0.5, %v1759_v58  ;;  %v2926_v5 = vpop.f32.mrf.mxu0 }
 0x6f6   : > { %v2136_v63 = vmul.f32 %v7146_v42, %v7146_v42  ;;  %v2137_v2 = vmul.f32 %v7148_v53, %v7148_v53  ;;  %v7154_v60 = vpop.eup %5448  ;;  %v2501_v1 = vunpack.c.h.bf16 %v7124_v22  ;;  %v2342_v38 = vunpack.c.l.bf16 %v2324_v54 }
 0x6f7   : > { %v3185_v46 = vmul.f32 %v3153_v18, %v7122_v20  ;;  %v2925_v12 = vadd.f32 %v2924_v61, %v6882_v0  ;;  %v7159_v29 = vpop.eup %5450  ;;  %5458 = vtanh.f32 %v2500_v30  ;;  %v2343_v37 = vunpack.c.h.bf16 %v2324_v54 }
 0x6f8   : > { %v3186_v15 = vmul.f32 %v3154_v21, %v7126_v14  ;;  %v2165_v6 = vpack.c.bf16 %v2137_v2, %v2136_v63  ;;  %v7162_v26 = vpop.eup %5452  ;;  %v3423_v58 = vmul.f32 0.796875, %v3391_v24  ;;  %v2974_v31 = vadd.f32 %v2973_v39, %v6885_v28 }
 0x6f9   : > { %v1956_v9 = vadd.f32 %v1955_v52, %v6896_v17  ;;  %v2005_v22 = vadd.f32 %v2004_v4, %v6902_v51  ;;  %v7167_v18 = vpop.eup %5454  ;;  %v3424_v61 = vmul.f32 0.796875, %v3392_v34  ;;  %v1761_v16 = vsub.f32 1.5, %v1760_v36 }
 0x6fa   : > { %v3214_v50 = vpack.c.bf16 %v3186_v15, %v3185_v46  ;;  %v2184_v30 = vunpack.c.l.bf16 %v2165_v6  ;;  %v7169_v54 = vpop.eup %5456  ;;  %v2374_v21 = vadd.f32 %v2342_v38, %v7080_v45  ;;  %v2185_v63 = vunpack.c.h.bf16 %v2165_v6 }
 0x6fb   : > { %v3007_v2 = vpack.c.bf16 %v2974_v31, %v2925_v12  ;;  %v2038_v24 = vpack.c.bf16 %v2005_v22, %v1956_v9  ;;  %v2375_v39 = vadd.f32 %v2343_v37, %v7082_v3  ;;  %v2927_v4 = vadd.f32 %v2926_v5, %v6882_v0  ;;  %v2006_v3 = vpop.f32.mrf.mxu3 }
 0x6fc   : > { %v3233_v52 = vunpack.c.l.bf16 %v3214_v50  ;;  %v3234_v44 = vunpack.c.h.bf16 %v3214_v50  ;;  %v2216_v19 = vmul.f32 %v2184_v30, %v7146_v42  ;;  %v2217_v34 = vmul.f32 %v2185_v63, %v7148_v53 }
 0x6fd   : > { %v7176_v36 = vunpack.c.l.bf16 %v3007_v2  ;;  %v7178_v46 = vunpack.c.h.bf16 %v3007_v2  ;;  %v7180_v15 = vpop.eup %5458  ;;  %vm1763_vm11 = vweird.f32 %v7084_v49  ;;  %v7183_v6 = vunpack.c.l.bf16 %v2038_v24 }
 0x6fe   : > { %v3265_v38 = vmul.f32 0.044677734, %v3233_v52  ;;  %v3266_v12 = vmul.f32 0.044677734, %v3234_v44  ;;  %v2976_v50 = vadd.f32 %v2975_v32, %v6885_v28  ;;  %v2245_v37 = vpack.c.bf16 %v2217_v34, %v2216_v19 }
 0x6ff   : > { %v3107_v31 = vmul.f32 %v7176_v36, %v7176_v36  ;;  %v3108_v9 = vmul.f32 %v7178_v46, %v7178_v46  ;;  %v7190_v22 = vunpack.c.h.bf16 %v2038_v24  ;;  %5460 = vtanh.f32 %v2501_v1 }
 0x700   : > { %v2404_v5 = vpack.c.bf16 %v2375_v39, %v2374_v21  ;;  %v3294_v30 = vpack.c.bf16 %v3266_v12, %v3265_v38  ;;  %v2138_v63 = vmul.f32 %v7183_v6, %v7183_v6  ;;  %v2264_v44 = vunpack.c.l.bf16 %v2245_v37 }
 0x701   : > { %8520 = vst [vmem:[#allocation21_spill] sm:$0xff] %v7190_v22  ;;  %v2265_v2 = vunpack.c.h.bf16 %v2245_v37  ;;  %v3135_v52 = vpack.c.bf16 %v3108_v9, %v3107_v31  ;;  %v2139_v19 = vmul.f32 %v7190_v22, %v7190_v22  ;;  %v7196_v32 = vpack.c.bf16 %v3424_v61, %v3423_v58 }
 0x702   : > { %v7199_v34 = vmul.f32 %v7112_v48, %v1761_v16  ;;  %vm1764_vm12 = vweird.f32 %v7112_v48  ;;  %v3008_v24 = vpack.c.bf16 %v2976_v50, %v2927_v4  ;;  %v2296_v1 = vmul.f32 0.044677734, %v2264_v44 }
 0x703   : > { %v2297_v21 = vmul.f32 0.044677734, %v2265_v2  ;;  %v3155_v39 = vunpack.c.l.bf16 %v3135_v52  ;;  %v3156_v38 = vunpack.c.h.bf16 %v3135_v52  ;;  %v2422_v12 = vunpack.c.l.bf16 %v2404_v5  ;;  %vm7217_vm13 = vmor %vm1763_vm11, %vm1764_vm12 }
 0x704   : > { %v2423_v56 = vunpack.c.h.bf16 %v2404_v5  ;;  %v2166_v35 = vpack.c.bf16 %v2139_v19, %v2138_v63  ;;  %v7202_v37 = vunpack.c.l.bf16 %v3008_v24  ;;  %v3313_v31 = vunpack.c.l.bf16 %v3294_v30  ;;  %v7235_v19 = vld [vmem:[%s8437_s7 + $0x4] ss:$0 sm:$0xff] }
 0x705   : > { %v3187_v9 = vmul.f32 %v3155_v39, %v7176_v36  ;;  %v3188_v58 = vmul.f32 %v3156_v38, %v7178_v46  ;;  %v7206_v61 = vunpack.c.h.bf16 %v3008_v24  ;;  %v7208_v16 = vpop.eup %5460  ;;  %v3314_v43 = vunpack.c.h.bf16 %v3294_v30 }
 0x706   : > { %v2186_v4 = vunpack.c.l.bf16 %v2166_v35  ;;  %v2187_v50 = vunpack.c.h.bf16 %v2166_v35  ;;  %v3109_v44 = vmul.f32 %v7202_v37, %v7202_v37  ;;  %v2325_v2 = vpack.c.bf16 %v2297_v21, %v2296_v1 }
 0x707   : > { %v3215_v52 = vpack.c.bf16 %v3188_v58, %v3187_v9  ;;  %v3110_v30 = vmul.f32 %v7206_v61, %v7206_v61  ;;  %v2454_v39 = vmul.f32 0.796875, %v2422_v12  ;;  %v2455_v38 = vmul.f32 0.796875, %v2423_v56 }
 0x708   : > { %v2218_v24 = vmul.f32 %v2186_v4, %v7183_v6  ;;  %v2219_v49 = vmul.f32 %v2187_v50, %v7190_v22  ;;  %v3345_v1 = vadd.f32 %v3313_v31, %v7122_v20  ;;  %v3346_v21 = vadd.f32 %v3314_v43, %v7126_v14 }
 0x709   : > { %v3235_v5 = vunpack.c.l.bf16 %v3215_v52  ;;  %v3236_v40 = vunpack.c.h.bf16 %v3215_v52  ;;  %v3136_v58 = vpack.c.bf16 %v3110_v30, %v3109_v44  ;;  %v2344_v35 = vunpack.c.l.bf16 %v2325_v2 }
 0x70a   : > { %v2246_v9 = vpack.c.bf16 %v2219_v49, %v2218_v24  ;;  %v1805_v12 = vmul.f32 %v7235_v19, %v7075_v33  ;;  %v1806_v31 = vmul.f32 %v7235_v19, %v7143_v23  ;;  %v7241_v43 = vpack.c.bf16 %v2455_v38, %v2454_v39  ;;  %v7250_v23 = vld [vmem:[%s8437_s7 + $0x5] ss:$0 sm:$0xff] }
 0x70b   : > { %v3267_v8 = vmul.f32 0.044677734, %v3235_v5  ;;  %v3268_v41 = vmul.f32 0.044677734, %v3236_v40  ;;  %v3157_v50 = vunpack.c.l.bf16 %v3136_v58  ;;  %v2345_v44 = vunpack.c.h.bf16 %v2325_v2  ;;  %v1957_v40 = vpop.f32.mrf.mxu2 }
 0x70c   : > { %v2266_v56 = vunpack.c.l.bf16 %v2246_v9  ;;  %v2267_v4 = vunpack.c.h.bf16 %v2246_v9  ;;  %v3158_v5 = vunpack.c.h.bf16 %v3136_v58  ;;  %v7243_v30 = vpack.c.bf16 %v3346_v21, %v3345_v1 }
 0x70d   : > { %v3295_v52 = vpack.c.bf16 %v3268_v41, %v3267_v8  ;;  %v3189_v57 = vmul.f32 %v3157_v50, %v7202_v37  ;;  %v2376_v33 = vadd.f32 %v2344_v35, %v7146_v42  ;;  %v7253_v41 = vadd.f32 %v7250_v23, %v1805_v12  ;;  %v5268_v12 = vld [vmem:[%s8435_s5 + $0xb8] sm:$0xff] }
 0x70e   : > { %v2298_v24 = vmul.f32 0.044677734, %v2266_v56  ;;  %v2299_v49 = vmul.f32 0.044677734, %v2267_v4  ;;  %v3190_v2 = vmul.f32 %v3158_v5, %v7206_v61  ;;  %v7257_v39 = vadd.f32 %v7250_v23, %v1806_v31  ;;  %v5276_v56 = vld [vmem:[%s8435_s5 + $0xf8] sm:$0xff]  ;;  %3867 = vmatpush.bf16.msra.mxu2 %v5268_v12 }
 0x70f   : > { %v3315_v9 = vunpack.c.l.bf16 %v3295_v52  ;;  %v3316_v45 = vunpack.c.h.bf16 %v3295_v52  ;;  %8523 = vst [vmem:[#allocation22_spill] sm:$0xff] %v7253_v41  ;;  %v1958_v38 = vadd.f32 %v1957_v40, %v6896_v17  ;;  %v2377_v35 = vadd.f32 %v2345_v44, %v7148_v53  ;;  %3916 = vmatpush.bf16.msrb.mxu3 %v5276_v56 }
 0x710   : > { %v2326_v8 = vpack.c.bf16 %v2299_v49, %v2298_v24  ;;  %8524 = vst [vmem:[#allocation23_spill] sm:$0xff] %v7257_v39  ;;  %v2007_v58 = vadd.f32 %v2006_v3, %v6902_v51  ;;  %v3216_v31 = vpack.c.bf16 %v3190_v2, %v3189_v57  ;;  %v1831_v44 = vpack.c.bf16 %v7257_v39, %v7253_v41  ;;  %v5244_v3 = vld [vmem:[%s8435_s5 + $0x78] sm:$0xff]  ;;  %v5267_v57 = vld [vmem:[%s8435_s5 + $0xb0] sm:$0xff] }
 0x711   : > { %v3347_v1 = vadd.f32 %v3315_v9, %v7176_v36  ;;  %v3348_v21 = vadd.f32 %v3316_v45, %v7178_v46  ;;  %v5236_v45 = vld [vmem:[%s8435_s5 + $0x38] sm:$0xff]  ;;  %v3393_v52 = vunpack.c.l.bf16 %v7243_v30  ;;  %v3394_v5 = vunpack.c.h.bf16 %v7243_v30  ;;  %v5275_v49 = vld [vmem:[%s8435_s5 + $0xf0] sm:$0xff]  ;;  %4110 = vmatpush.bf16.msrb.mxu1 %v5244_v3 }
 0x712   : > { %v2346_v4 = vunpack.c.l.bf16 %v2326_v8  ;;  %v2347_v50 = vunpack.c.h.bf16 %v2326_v8  ;;  %v2039_v24 = vpack.c.bf16 %v2007_v58, %v1958_v38  ;;  %v3237_v2 = vunpack.c.l.bf16 %v3216_v31  ;;  %1974 = vmatmul.bf16.gmra.mxu2 %v1831_v44  ;;  %2023 = vmatmul.bf16.gmra.mxu3 %v1831_v44 }
 0x713   : > { %v3375_v40 = vpack.c.bf16 %v3348_v21, %v3347_v1  ;;  %v3238_v39 = vunpack.c.h.bf16 %v3216_v31  ;;  %v8525_v30 = vsel %vm7217_vm13, %v7112_v48, %v7199_v34  ;;  %v7296_v1 = vpack.c.bf16 %v2377_v35, %v2376_v33  ;;  %2943 = vmatmul.bf16.gmra.mxu0 %v1831_v44  ;;  %2992 = vmatmul.bf16.gmra.mxu1 %v1831_v44  ;;  %v5243_v48 = vld [vmem:[%s8435_s5 + $0x70] sm:$0xff]  ;;  %v5274_v31 = vld [vmem:[%s8435_s5 + $0xe8] sm:$0xff] }
 0x714   : > { %v2378_v9 = vadd.f32 %v2346_v4, %v7183_v6  ;;  %v2379_v8 = vadd.f32 %v2347_v50, %v7190_v22  ;;  %v7294_v38 = vmul.f32 %v8525_v30, %v6837_v27  ;;  %v7298_v21 = vunpack.c.l.bf16 %v2039_v24  ;;  %4061 = vmatpush.bf16.msrb.mxu0 %v5236_v45  ;;  %v5235_v27 = vld [vmem:[%s8435_s5 + $0x30] sm:$0xff]  ;;  %3868 = vmatpush.bf16.msra.mxu2 %v5267_v57 }
 0x715   : > { %v7300_v58 = vunpack.c.h.bf16 %v2039_v24  ;;  %v3269_v4 = vmul.f32 0.044677734, %v3237_v2  ;;  %v3270_v50 = vmul.f32 0.044677734, %v3238_v39  ;;  %v3395_v34 = vunpack.c.l.bf16 %v3375_v40  ;;  %3917 = vmatpush.bf16.msrb.mxu3 %v5275_v49  ;;  %v5266_v39 = vld [vmem:[%s8435_s5 + $0xa8] sm:$0xff]  ;;  %4111 = vmatpush.bf16.msrb.mxu1 %v5243_v48 }
 0x716   : > { %8526 = vst [vmem:[#allocation24_spill] sm:$0xff] %v7298_v21  ;;  %v2406_v56 = vpack.c.bf16 %v2379_v8, %v2378_v9  ;;  %v3396_v63 = vunpack.c.h.bf16 %v3375_v40  ;;  %v2140_v33 = vmul.f32 %v7298_v21, %v7298_v21  ;;  %v3425_v45 = vmul.f32 0.796875, %v3393_v52  ;;  %v5234_v52 = vld [vmem:[%s8435_s5 + $0x28] sm:$0xff] }
 0x717   : > { %8527 = vst [vmem:[#allocation25_spill] sm:$0xff] %v7300_v58  ;;  %v2141_v35 = vmul.f32 %v7300_v58, %v7300_v58  ;;  %v3426_v3 = vmul.f32 0.796875, %v3394_v5  ;;  %v3296_v40 = vpack.c.bf16 %v3270_v50, %v3269_v4  ;;  %v2424_v9 = vunpack.c.l.bf16 %v7296_v1  ;;  %v5242_v5 = vld [vmem:[%s8435_s5 + $0x68] sm:$0xff] }
 0x718   : > { %v2425_v8 = vunpack.c.h.bf16 %v7296_v1  ;;  %v3531_v49 = vpack.c.bf16 %v7154_v60, %v7100_v25  ;;  %v2426_v2 = vunpack.c.l.bf16 %v2406_v56  ;;  %v2427_v30 = vunpack.c.h.bf16 %v2406_v56  ;;  %4062 = vmatpush.bf16.msrb.mxu0 %v5235_v27  ;;  %3869 = vmatpush.bf16.msra.mxu2 %v5266_v39  ;;  %v5265_v25 = vld [vmem:[%s8435_s5 + $0xa0] sm:$0xff] }
 0x719   : > { %v2167_v57 = vpack.c.bf16 %v2141_v35, %v2140_v33  ;;  %v3317_v12 = vunpack.c.l.bf16 %v3296_v40  ;;  %v3318_v41 = vunpack.c.h.bf16 %v3296_v40  ;;  %v3427_v4 = vmul.f32 0.796875, %v3395_v34  ;;  %3918 = vmatpush.bf16.msrb.mxu3 %v5274_v31  ;;  %v5273_v60 = vld [vmem:[%s8435_s5 + $0xe0] sm:$0xff]  ;;  %4112 = vmatpush.bf16.msrb.mxu1 %v5242_v5 }
 0x71a   : > { %v1584_v44 = vpop.xlane.xlu2 %1583  ;;  %v3428_v1 = vmul.f32 0.796875, %v3396_v63  ;;  %v3532_v34 = vpack.c.bf16 %v7169_v54, %v7167_v18  ;;  %v3547_v39 = vunpack.c.l.bf16 %v3531_v49  ;;  %v3548_v31 = vunpack.c.h.bf16 %v3531_v49  ;;  %v5241_v18 = vld [vmem:[%s8435_s5 + $0x60] sm:$0xff]  ;;  %v5264_v49 = vld [vmem:[%s8435_s5 + $0x98] sm:$0xff] }
 0x71b   : > { %v1600_v24 = vmul.f32 %v1584_v44, %v5689_v13  ;;  %v2188_v50 = vunpack.c.l.bf16 %v2167_v57  ;;  %v2189_v33 = vunpack.c.h.bf16 %v2167_v57  ;;  %v3349_v56 = vadd.f32 %v3317_v12, %v7202_v37 }
 0x71c   : > { %v3350_v27 = vadd.f32 %v3318_v41, %v7206_v61  ;;  %v2458_v44 = vmul.f32 0.796875, %v2426_v2  ;;  %v2459_v40 = vmul.f32 0.796875, %v2427_v30  ;;  %4063 = vmatpush.bf16.msrb.mxu0 %v5234_v52  ;;  %v5233_v41 = vld [vmem:[%s8435_s5 + $0x20] sm:$0xff]  ;;  %v2456_v54 = vmul.f32 0.796875, %v2424_v9  ;;  %3870 = vmatpush.bf16.msra.mxu2 %v5265_v25  ;;  %v5272_v2 = vld [vmem:[%s8435_s5 + $0xd8] sm:$0xff] }
 0x71d   : > { %v7338_v48 = vadd.f32 1e-12, %v1600_v24  ;;  %v2220_v63 = vmul.f32 %v2188_v50, %v7298_v21  ;;  %v2221_v35 = vmul.f32 %v2189_v33, %v7300_v58  ;;  %v2457_v12 = vmul.f32 0.796875, %v2425_v8  ;;  %3919 = vmatpush.bf16.msrb.mxu3 %v5273_v60  ;;  %4113 = vmatpush.bf16.msrb.mxu1 %v5241_v18 }
 0x71e   : > { %v3376_v57 = vpack.c.bf16 %v3350_v27, %v3349_v56  ;;  %v1807_v30 = vmul.f32 %v7235_v19, %v7294_v38  ;;  %v3549_v52 = vunpack.c.l.bf16 %v3532_v34  ;;  %v3550_v5 = vunpack.c.h.bf16 %v3532_v34 }
 0x71f   : > { %5462 = vrsqrt.f32 %v7338_v48  ;;  %v2247_v24 = vpack.c.bf16 %v2221_v35, %v2220_v63  ;;  %v3579_v50 = vadd.f32 1.0, %v3547_v39  ;;  %v3580_v33 = vadd.f32 1.0, %v3548_v31 }
 0x720   : > { %v3397_v9 = vunpack.c.l.bf16 %v3376_v57  ;;  %v3398_v8 = vunpack.c.h.bf16 %v3376_v57  ;;  %v7360_v27 = vpack.c.bf16 %v3426_v3, %v3425_v45  ;;  %v7362_v63 = vpack.c.bf16 %v3428_v1, %v3427_v4  ;;  %4064 = vmatpush.bf16.msrb.mxu0 %v5233_v41  ;;  %3871 = vmatpush.bf16.msra.mxu2 %v5264_v49 }
 0x721   : > { %v2268_v56 = vunpack.c.l.bf16 %v2247_v24  ;;  %v2269_v25 = vunpack.c.h.bf16 %v2247_v24  ;;  %v7364_v35 = vpack.c.bf16 %v2459_v40, %v2458_v44  ;;  %v7366_v13 = vpack.c.bf16 %v2457_v12, %v2456_v54  ;;  %3920 = vmatpush.bf16.msrb.mxu3 %v5272_v2 }
 0x722   : > { %v3627_v39 = vunpack.c.l.bf16 %v7013_v10  ;;  %v7370_v57 = vadd.f32 %v7250_v23, %v1807_v30  ;;  %v3581_v45 = vadd.f32 1.0, %v3549_v52  ;;  %v3582_v3 = vadd.f32 1.0, %v3550_v5 }
 0x723   : > { %8528 = vst [vmem:[#allocation26_spill] sm:$0xff] %v7364_v35  ;;  %v2300_v38 = vmul.f32 0.044677734, %v2268_v56  ;;  %v2301_v34 = vmul.f32 0.044677734, %v2269_v25  ;;  %v7372_v4 = vpack.c.bf16 %v3580_v33, %v3579_v50  ;;  %v3429_v1 = vmul.f32 0.796875, %v3397_v9 }
 0x724   : > { %8529 = vst [vmem:[#allocation27_spill] sm:$0xff] %v7370_v57  ;;  %v3430_v44 = vmul.f32 0.796875, %v3398_v8  ;;  %vm1773_vm14 = vweird.f32 %v7338_v48  ;;  %v7380_v52 = vpack.c.bf16 %v3582_v3, %v3581_v45  ;;  %v3629_v5 = vunpack.c.l.bf16 %v7060_v55 }
 0x725   : > { %v5463_v31 = vpop.eup %5462  ;;  %v2327_v40 = vpack.c.bf16 %v2301_v34, %v2300_v38  ;;  %v3659_v50 = vunpack.c.l.bf16 %v7372_v4  ;;  %v3628_v33 = vunpack.c.h.bf16 %v7013_v10  ;;  %v3055_v45 = vmul.f32 0.5, %v7036_v11 }
 0x726   : > { %v1768_v41 = vmul.f32 %v5463_v31, %v7338_v48  ;;  %v7385_v9 = vpack.c.bf16 %v3430_v44, %v3429_v1  ;;  %vm1774_vm15 = vweird.f32 %v5463_v31  ;;  %v3056_v3 = vmul.f32 0.5, %v7038_v59 }
 0x727   : > { %v2348_v49 = vunpack.c.l.bf16 %v2327_v40  ;;  %v2349_v2 = vunpack.c.h.bf16 %v2327_v40  ;;  %v2562_v1 = vpack.c.bf16 %v7162_v26, %v7159_v29  ;;  %v7396_v44 = vmul.f32 %v3659_v50, %v3627_v39  ;;  %vm1775_vm0 = vmor %vm1773_vm14, %vm1774_vm15 }
 0x728   : > { %v1769_v30 = vmul.f32 %v5463_v31, %v1768_v41  ;;  %v3058_v59 = vmul.f32 0.5, %v7126_v14  ;;  %v7408_v39 = vpack.c.bf16 %v3056_v3, %v3055_v45 }
 0x729   : > { %v2380_v8 = vadd.f32 %v2348_v49, %v7298_v21  ;;  %v2381_v56 = vadd.f32 %v2349_v2, %v7300_v58  ;;  %v2578_v14 = vunpack.c.l.bf16 %v2562_v1 }
 0x72a   : > { %v1770_v25 = vmul.f32 0.5, %v1769_v30  ;;  %v3057_v30 = vmul.f32 0.5, %v7122_v20 }
 0x72b   : > { %v2407_v12 = vpack.c.bf16 %v2381_v56, %v2380_v8 }
 0x72c   : > { %v1771_v41 = vsub.f32 1.5, %v1770_v25  ;;  %v3661_v25 = vunpack.c.l.bf16 %v7380_v52  ;;  %v7420_v3 = vpack.c.bf16 %v3058_v59, %v3057_v30 }
 0x72d   : > { %v2929_v38 = vpop.f32.mrf.mxu0  ;;  %v2978_v34 = vpop.f32.mrf.mxu1 }
 0x72e   : > { %v2930_v24 = vadd.f32 %v2929_v38, %v6882_v0  ;;  %v2979_v10 = vadd.f32 %v2978_v34, %v6885_v28  ;;  %v1772_v11 = vmul.f32 %v5463_v31, %v1771_v41 }
 0x730   : > { %v3009_v54 = vpack.c.bf16 %v2979_v10, %v2930_v24  ;;  %v1776_v50 = vsel %vm1775_vm0, %v5463_v31, %v1772_v11  ;;  %v3660_v24 = vunpack.c.h.bf16 %v7372_v4  ;;  %v2428_v10 = vunpack.c.l.bf16 %v2407_v12 }
 0x731   : > { %v1792_v56 = vmul.f32 %v1776_v50, %v6859_v7  ;;  %v2579_v31 = vunpack.c.h.bf16 %v2562_v1  ;;  %v2429_v11 = vunpack.c.h.bf16 %v2407_v12  ;;  %v5232_v7 = vld [vmem:[%s8435_s5 + $0x18] sm:$0xff] }
 0x732   : > { %v7410_v38 = vunpack.c.l.bf16 %v3009_v54  ;;  %v1960_v20 = vpop.f32.mrf.mxu2  ;;  %v2009_v8 = vpop.f32.mrf.mxu3  ;;  %v7414_v48 = vunpack.c.h.bf16 %v3009_v54  ;;  %v5240_v12 = vld [vmem:[%s8435_s5 + $0x58] sm:$0xff]  ;;  %v7435_v30 = vmul.f32 %v3660_v24, %v3628_v33  ;;  %4065 = vmatpush.bf16.msrb.mxu0 %v5232_v7 }
 0x733   : > { %v1961_v34 = vadd.f32 %v1960_v20, %v6896_v17  ;;  %v2010_v41 = vadd.f32 %v2009_v8, %v6902_v51  ;;  %v7427_v20 = vmul.f32 %v3661_v25, %v3629_v5  ;;  %v1808_v1 = vmul.f32 %v7235_v19, %v1792_v56  ;;  %4114 = vmatpush.bf16.msrb.mxu1 %v5240_v12 }
 0x734   : > { %v3111_v45 = vmul.f32 %v7410_v38, %v7410_v38  ;;  %v3112_v4 = vmul.f32 %v7414_v48, %v7414_v48  ;;  %v2610_v5 = vadd.f32 1.0, %v2578_v14  ;;  %v7441_v25 = vmul.f32 0.796875, %v2428_v10 }
 0x735   : > { %v2040_v18 = vpack.c.bf16 %v2010_v41, %v1961_v34  ;;  %v2931_v54 = vpop.f32.mrf.mxu0  ;;  %v2980_v50 = vpop.f32.mrf.mxu1  ;;  %v2611_v26 = vadd.f32 1.0, %v2579_v31  ;;  %v7461_v7 = vmul.f32 0.796875, %v2429_v11 }
 0x736   : > { %v2932_v8 = vadd.f32 %v2931_v54, %v6882_v0  ;;  %v2981_v60 = vadd.f32 %v2980_v50, %v6885_v28  ;;  %v3137_v59 = vpack.c.bf16 %v3112_v4, %v3111_v45  ;;  %v7444_v50 = vadd.f32 %v7250_v23, %v1808_v1 }
 0x737   : > { %v7437_v34 = vunpack.c.l.bf16 %v2040_v18  ;;  %v7439_v41 = vunpack.c.h.bf16 %v2040_v18  ;;  %v2563_v23 = vpack.c.bf16 %v7208_v16, %v7180_v15  ;;  %v5263_v15 = vld [vmem:[%s8435_s5 + $0x90] sm:$0xff] }
 0x738   : > { %v3010_v54 = vpack.c.bf16 %v2981_v60, %v2932_v8  ;;  %8531 = vst [vmem:[#allocation29_spill] sm:$0xff] %v7444_v50  ;;  %v3159_v29 = vunpack.c.l.bf16 %v3137_v59  ;;  %v3160_v2 = vunpack.c.h.bf16 %v3137_v59  ;;  %v1832_v60 = vpack.c.bf16 %v7444_v50, %v7370_v57  ;;  %v5271_v16 = vld [vmem:[%s8435_s5 + $0xd0] sm:$0xff]  ;;  %3872 = vmatpush.bf16.msra.mxu2 %v5263_v15 }
 0x739   : > { %8530 = vst [vmem:[#allocation28_spill] sm:$0xff] %v7439_v41  ;;  %v2142_v19 = vmul.f32 %v7437_v34, %v7437_v34  ;;  %v2143_v33 = vmul.f32 %v7439_v41, %v7439_v41  ;;  %v7474_v59 = vpack.c.bf16 %v2611_v26, %v2610_v5  ;;  %3921 = vmatpush.bf16.msrb.mxu3 %v5271_v16 }
 0x73a   : > { %v7450_v18 = vunpack.c.l.bf16 %v3010_v54  ;;  %v7452_v24 = vunpack.c.h.bf16 %v3010_v54  ;;  %v1962_v14 = vpop.f32.mrf.mxu2  ;;  %v2011_v56 = vpop.f32.mrf.mxu3  ;;  %v3191_v10 = vmul.f32 %v3159_v29, %v7410_v38  ;;  %v3192_v45 = vmul.f32 %v3160_v2, %v7414_v48  ;;  %1979 = vmatmul.bf16.gmra.mxu2 %v1832_v60  ;;  %2028 = vmatmul.bf16.gmra.mxu3 %v1832_v60 }
 0x73b   : > { %v2168_v31 = vpack.c.bf16 %v2143_v33, %v2142_v19  ;;  %v1963_v4 = vadd.f32 %v1962_v14, %v6896_v17  ;;  %v2012_v1 = vadd.f32 %v2011_v56, %v6902_v51  ;;  %2948 = vmatmul.bf16.gmra.mxu0 %v1832_v60  ;;  %2997 = vmatmul.bf16.gmra.mxu1 %v1832_v60  ;;  %v2580_v33 = vunpack.c.l.bf16 %v2563_v23 }
 0x73c   : > { %v3113_v8 = vmul.f32 %v7450_v18, %v7450_v18  ;;  %v3114_v12 = vmul.f32 %v7452_v24, %v7452_v24  ;;  %v3217_v2 = vpack.c.bf16 %v3192_v45, %v3191_v10  ;;  %v2581_v14 = vunpack.c.h.bf16 %v2563_v23 }
 0x73d   : > { %v2190_v29 = vunpack.c.l.bf16 %v2168_v31  ;;  %v2191_v11 = vunpack.c.h.bf16 %v2168_v31  ;;  %v2041_v19 = vpack.c.bf16 %v2012_v1, %v1963_v4 }
 0x73e   : > { %v3138_v54 = vpack.c.bf16 %v3114_v12, %v3113_v8  ;;  %v3239_v56 = vunpack.c.l.bf16 %v3217_v2  ;;  %v3240_v49 = vunpack.c.h.bf16 %v3217_v2  ;;  %v2983_v22 = vpop.f32.mrf.mxu1 }
 0x73f   : > { %v2222_v40 = vmul.f32 %v2190_v29, %v7437_v34  ;;  %v2223_v50 = vmul.f32 %v2191_v11, %v7439_v41  ;;  %v7478_v45 = vunpack.c.l.bf16 %v2041_v19  ;;  %v7480_v31 = vunpack.c.h.bf16 %v2041_v19 }
 0x740   : > { %v3161_v57 = vunpack.c.l.bf16 %v3138_v54  ;;  %v3162_v10 = vunpack.c.h.bf16 %v3138_v54  ;;  %v3271_v26 = vmul.f32 0.044677734, %v3239_v56  ;;  %v3272_v5 = vmul.f32 0.044677734, %v3240_v49 }
 0x741   : > { %8532 = vst [vmem:[#allocation30_spill] sm:$0xff] %v7478_v45  ;;  %v2248_v60 = vpack.c.bf16 %v2223_v50, %v2222_v40  ;;  %v2144_v12 = vmul.f32 %v7478_v45, %v7478_v45  ;;  %v2145_v1 = vmul.f32 %v7480_v31, %v7480_v31  ;;  %v3662_v29 = vunpack.c.h.bf16 %v7380_v52  ;;  %v2934_v40 = vpop.f32.mrf.mxu0 }
 0x742   : > { %v3193_v8 = vmul.f32 %v3161_v57, %v7450_v18  ;;  %v3194_v23 = vmul.f32 %v3162_v10, %v7452_v24  ;;  %v3297_v15 = vpack.c.bf16 %v3272_v5, %v3271_v26  ;;  %v2612_v50 = vadd.f32 1.0, %v2580_v33 }
 0x743   : > { %v2270_v16 = vunpack.c.l.bf16 %v2248_v60  ;;  %v2271_v2 = vunpack.c.h.bf16 %v2248_v60  ;;  %v2169_v49 = vpack.c.bf16 %v2145_v1, %v2144_v12  ;;  %v2613_v54 = vadd.f32 1.0, %v2581_v14 }
 0x744   : > { %v3218_v11 = vpack.c.bf16 %v3194_v23, %v3193_v8  ;;  %v3319_v19 = vunpack.c.l.bf16 %v3297_v15  ;;  %v3320_v57 = vunpack.c.h.bf16 %v3297_v15  ;;  %v2935_v52 = vadd.f32 %v2934_v40, %v6882_v0 }
 0x745   : > { %v2302_v56 = vmul.f32 0.044677734, %v2270_v16  ;;  %v2303_v10 = vmul.f32 0.044677734, %v2271_v2  ;;  %v2192_v58 = vunpack.c.l.bf16 %v2169_v49  ;;  %v2193_v21 = vunpack.c.h.bf16 %v2169_v49 }
 0x746   : > { %v3241_v4 = vunpack.c.l.bf16 %v3218_v11  ;;  %v3242_v35 = vunpack.c.h.bf16 %v3218_v11  ;;  %v3351_v26 = vadd.f32 %v3319_v19, %v7410_v38  ;;  %v3352_v5 = vadd.f32 %v3320_v57, %v7414_v48 }
 0x747   : > { %v2328_v60 = vpack.c.bf16 %v2303_v10, %v2302_v56  ;;  %v2224_v33 = vmul.f32 %v2192_v58, %v7478_v45  ;;  %v2225_v14 = vmul.f32 %v2193_v21, %v7480_v31  ;;  %v2984_v16 = vadd.f32 %v2983_v22, %v6885_v28 }
 0x748   : > { %v3273_v8 = vmul.f32 0.044677734, %v3241_v4  ;;  %v3274_v23 = vmul.f32 0.044677734, %v3242_v35  ;;  %v3377_v12 = vpack.c.bf16 %v3352_v5, %v3351_v26  ;;  %v8533_v49 = vunpack.c.h.bf16 %v7060_v55 }
 0x749   : > { %v2350_v1 = vunpack.c.l.bf16 %v2328_v60  ;;  %v2351_v15 = vunpack.c.h.bf16 %v2328_v60  ;;  %v2249_v11 = vpack.c.bf16 %v2225_v14, %v2224_v33  ;;  %v7500_v57 = vpack.c.bf16 %v2613_v54, %v2612_v50  ;;  %v5231_v14 = vld [vmem:[%s8435_s5 + $0x10] sm:$0xff] }
 0x74a   : > { %v3298_v2 = vpack.c.bf16 %v3274_v23, %v3273_v8  ;;  %v7498_v19 = vmul.f32 %v3662_v29, %v8533_v49  ;;  %v3399_v40 = vunpack.c.l.bf16 %v3377_v12  ;;  %v3400_v4 = vunpack.c.h.bf16 %v3377_v12  ;;  %v1965_v12 = vpop.f32.mrf.mxu2  ;;  %4066 = vmatpush.bf16.msrb.mxu0 %v5231_v14 }
 0x74b   : > { %v2382_v35 = vadd.f32 %v2350_v1, %v7437_v34  ;;  %v2383_v58 = vadd.f32 %v2351_v15, %v7439_v41  ;;  %v2272_v10 = vunpack.c.l.bf16 %v2249_v11  ;;  %v2273_v26 = vunpack.c.h.bf16 %v2249_v11 }
 0x74c   : > { %v3321_v21 = vunpack.c.l.bf16 %v3298_v2  ;;  %v3322_v56 = vunpack.c.h.bf16 %v3298_v2  ;;  %v3431_v5 = vmul.f32 0.796875, %v3399_v40  ;;  %v3432_v22 = vmul.f32 0.796875, %v3400_v4 }
 0x74d   : > { %v2408_v60 = vpack.c.bf16 %v2383_v58, %v2382_v35  ;;  %v3011_v8 = vpack.c.bf16 %v2984_v16, %v2935_v52  ;;  %v2304_v50 = vmul.f32 0.044677734, %v2272_v10  ;;  %v2305_v54 = vmul.f32 0.044677734, %v2273_v26  ;;  %v5239_v52 = vld [vmem:[%s8435_s5 + $0x50] sm:$0xff] }
 0x74e   : > { %v3353_v55 = vadd.f32 %v3321_v21, %v7450_v18  ;;  %v3354_v29 = vadd.f32 %v3322_v56, %v7452_v24  ;;  %v7508_v23 = vpack.c.bf16 %v7461_v7, %v7441_v25  ;;  %v2692_v1 = vunpack.c.l.bf16 %v7500_v57  ;;  %v2014_v7 = vpop.f32.mrf.mxu3  ;;  %4115 = vmatpush.bf16.msrb.mxu1 %v5239_v52 }
 0x74f   : > { %v7510_v33 = vunpack.c.l.bf16 %v3011_v8  ;;  %v2691_v15 = vunpack.c.h.bf16 %v7474_v59  ;;  %v2430_v16 = vunpack.c.l.bf16 %v2408_v60  ;;  %v2431_v2 = vunpack.c.h.bf16 %v2408_v60 }
 0x750   : > { %v2329_v11 = vpack.c.bf16 %v2305_v54, %v2304_v50  ;;  %v7520_v25 = vunpack.c.h.bf16 %v3011_v8  ;;  %v7522_v49 = vpack.c.bf16 %v3432_v22, %v3431_v5  ;;  %v1966_v40 = vadd.f32 %v1965_v12, %v6896_v17 }
 0x751   : > { %8534 = vst [vmem:[#allocation31_spill] sm:$0xff] %v7510_v33  ;;  %v7528_v58 = vpack.c.bf16 %v3354_v29, %v3353_v55  ;;  %v8536_v56 = vunpack.c.l.bf16 %v7016_v47  ;;  %v8537_v10 = vunpack.c.l.bf16 %v7474_v59  ;;  %v2693_v5 = vunpack.c.h.bf16 %v7500_v57 }
 0x752   : > { %8535 = vst [vmem:[#allocation32_spill] sm:$0xff] %v7520_v25  ;;  %v3115_v22 = vmul.f32 %v7510_v33, %v7510_v33  ;;  %v3116_v60 = vmul.f32 %v7520_v25, %v7520_v25  ;;  %v2015_v8 = vadd.f32 %v2014_v7, %v6902_v51  ;;  %v8538_v55 = vunpack.c.l.bf16 %v7064_v62  ;;  %v5262_v7 = vld [vmem:[%s8435_s5 + $0x88] sm:$0xff]  ;;  %v1967_v41 = vpop.f32.mrf.mxu2 }
 0x753   : > { %v7536_v26 = vmul.f32 %v8537_v10, %v8536_v56  ;;  %v2462_v50 = vmul.f32 0.796875, %v2430_v16  ;;  %v2463_v54 = vmul.f32 0.796875, %v2431_v2  ;;  %v2352_v14 = vunpack.c.l.bf16 %v2329_v11  ;;  %v2985_v16 = vpop.f32.mrf.mxu1  ;;  %3873 = vmatpush.bf16.msra.mxu2 %v5262_v7 }
 0x754   : > { %v7546_v29 = vmul.f32 %v2692_v1, %v8538_v55  ;;  %v8539_v59 = vunpack.c.h.bf16 %v7016_v47  ;;  %v3139_v56 = vpack.c.bf16 %v3116_v60, %v3115_v22  ;;  %v2042_v10 = vpack.c.bf16 %v2015_v8, %v1966_v40  ;;  %v5270_v1 = vld [vmem:[%s8435_s5 + $0xc8] sm:$0xff] }
 0x755   : > { %v5230_v47 = vld [vmem:[%s8435_s5 + $0x8] sm:$0xff]  ;;  %v3401_v2 = vunpack.c.l.bf16 %v7528_v58  ;;  %v2353_v55 = vunpack.c.h.bf16 %v2329_v11  ;;  %v2986_v60 = vadd.f32 %v2985_v16, %v6885_v28  ;;  %3922 = vmatpush.bf16.msrb.mxu3 %v5270_v1  ;;  %v7573_v35 = vpack.c.bf16 %v2463_v54, %v2462_v50  ;;  %v5229_v50 = vld [vmem:[%s8435_s5] sm:$0xff] }
 0x756   : > { %v7550_v52 = vmul.f32 %v2691_v15, %v8539_v59  ;;  %v2936_v15 = vpop.f32.mrf.mxu0  ;;  %v5238_v40 = vld [vmem:[%s8435_s5 + $0x48] sm:$0xff]  ;;  %v3163_v8 = vunpack.c.l.bf16 %v3139_v56  ;;  %v3164_v59 = vunpack.c.h.bf16 %v3139_v56  ;;  %v7569_v12 = vunpack.c.l.bf16 %v2042_v10  ;;  %4067 = vmatpush.bf16.msrb.mxu0 %v5230_v47  ;;  %v5261_v56 = vld [vmem:[%s8435_s5 + $0x80] sm:$0xff] }
 0x757   : > { %v2937_v22 = vadd.f32 %v2936_v15, %v6882_v0  ;;  %v7571_v57 = vunpack.c.h.bf16 %v2042_v10  ;;  %v3402_v11 = vunpack.c.h.bf16 %v7528_v58  ;;  %v7577_v21 = vadd.f32 %v2352_v14, %v7478_v45  ;;  %4116 = vmatpush.bf16.msrb.mxu1 %v5238_v40  ;;  %v5269_v10 = vld [vmem:[%s8435_s5 + $0xc0] sm:$0xff]  ;;  %3874 = vmatpush.bf16.msra.mxu2 %v5261_v56 }
 0x758   : > { %8540 = vst [vmem:[#allocation33_spill] sm:$0xff] %v7569_v12  ;;  %v3195_v58 = vmul.f32 %v3163_v8, %v7510_v33  ;;  %v3196_v54 = vmul.f32 %v3164_v59, %v7520_v25  ;;  %v2146_v14 = vmul.f32 %v7569_v12, %v7569_v12  ;;  %v5237_v1 = vld [vmem:[%s8435_s5 + $0x40] sm:$0xff]  ;;  %v2385_v47 = vadd.f32 %v2353_v55, %v7480_v31 }
 0x759   : > { %8541 = vst [vmem:[#allocation34_spill] sm:$0xff] %v7571_v57  ;;  %v3012_v15 = vpack.c.bf16 %v2986_v60, %v2937_v22  ;;  %v2147_v7 = vmul.f32 %v7571_v57, %v7571_v57  ;;  %v2754_v22 = vpack.c.bf16 %v7546_v29, %v7536_v26  ;;  %v7604_v60 = vmul.f32 0.796875, %v3401_v2  ;;  %3923 = vmatpush.bf16.msrb.mxu3 %v5269_v10 }
 0x75a   : > { %v3219_v8 = vpack.c.bf16 %v3196_v54, %v3195_v58  ;;  %v8542_v4 = vunpack.c.h.bf16 %v7064_v62  ;;  %4068 = vmatpush.bf16.msrb.mxu0 %v5229_v50  ;;  %v3473_v26 = vunpack.c.l.bf16 %v7360_v27  ;;  %v3474_v29 = vunpack.c.h.bf16 %v7360_v27  ;;  %v2016_v54 = vpop.f32.mrf.mxu3 }
 0x75b   : > { %v7598_v16 = vunpack.c.l.bf16 %v3012_v15  ;;  %v7600_v40 = vunpack.c.h.bf16 %v3012_v15  ;;  %v2170_v59 = vpack.c.bf16 %v2147_v7, %v2146_v14  ;;  %4117 = vmatpush.bf16.msrb.mxu1 %v5237_v1  ;;  %v1968_v14 = vadd.f32 %v1967_v41, %v6896_v17 }
 0x75c   : > { %v2725_v45 = vmul.f32 %v2693_v5, %v8542_v4  ;;  %v3243_v2 = vunpack.c.l.bf16 %v3219_v8  ;;  %v3244_v58 = vunpack.c.h.bf16 %v3219_v8  ;;  %v8543_v4 = vpack.c.bf16 %v7427_v20, %v7396_v44 }
 0x75d   : > { %v3117_v55 = vmul.f32 %v7598_v16, %v7598_v16  ;;  %v3118_v15 = vmul.f32 %v7600_v40, %v7600_v40  ;;  %v2194_v56 = vunpack.c.l.bf16 %v2170_v59  ;;  %v2195_v10 = vunpack.c.h.bf16 %v2170_v59  ;;  %4069 = vmatmul.bf16.vlgmr.msrb.gmra.mxu0 %v2754_v22 }
 0x75e   : > { %3875 = vmatmul.bf16.vlgmr.msra.gmra.mxu2 %v8543_v4  ;;  %v8544_v5 = vpack.c.bf16 %v7498_v19, %v7435_v30  ;;  %v2755_v50 = vpack.c.bf16 %v2725_v45, %v7550_v52  ;;  %v8545_v27 = vunpack.c.l.bf16 %v7196_v32  ;;  %v3275_v7 = vmul.f32 0.044677734, %v3243_v2 }
 0x75f   : > { %v3140_v62 = vpack.c.bf16 %v3118_v15, %v3117_v55  ;;  %v3276_v1 = vmul.f32 0.044677734, %v3244_v58  ;;  %v2226_v8 = vmul.f32 %v2194_v56, %v7569_v12  ;;  %v2227_v59 = vmul.f32 %v2195_v10, %v7571_v57 }
 0x760   : > { %3924 = vmatmul.bf16.vlgmr.msrb.gmra.mxu3 %v8544_v5  ;;  %5464 = vtanh.f32 %v8545_v27  ;;  %4118 = vmatmul.bf16.vlgmr.msrb.gmra.mxu1 %v2755_v50  ;;  %v2017_v30 = vadd.f32 %v2016_v54, %v6902_v51  ;;  %v8546_v19 = vunpack.c.h.bf16 %v7196_v32  ;;  %v7629_v45 = vmul.f32 0.796875, %v3402_v11 }
 0x761   : > { %v3165_v44 = vunpack.c.l.bf16 %v3140_v62  ;;  %v3166_v20 = vunpack.c.h.bf16 %v3140_v62  ;;  %v3299_v41 = vpack.c.bf16 %v3276_v1, %v3275_v7  ;;  %v2250_v52 = vpack.c.bf16 %v2227_v59, %v2226_v8 }
 0x762   : > { %5466 = vtanh.f32 %v8546_v19  ;;  %v2043_v2 = vpack.c.bf16 %v2017_v30, %v1968_v14  ;;  %v2409_v54 = vpack.c.bf16 %v2385_v47, %v7577_v21 }
 0x763   : > { %5468 = vtanh.f32 %v3473_v26  ;;  %v3197_v55 = vmul.f32 %v3165_v44, %v7598_v16  ;;  %v3198_v15 = vmul.f32 %v3166_v20, %v7600_v40  ;;  %v3323_v22 = vunpack.c.l.bf16 %v3299_v41 }
 0x764   : > { %5470 = vtanh.f32 %v3474_v29  ;;  %v3324_v58 = vunpack.c.h.bf16 %v3299_v41  ;;  %v2274_v56 = vunpack.c.l.bf16 %v2250_v52  ;;  %v2275_v10 = vunpack.c.h.bf16 %v2250_v52 }
 0x765   : > { %v3220_v32 = vpack.c.bf16 %v3198_v15, %v3197_v55  ;;  %v7634_v4 = vunpack.c.l.bf16 %v2043_v2  ;;  %v7636_v11 = vunpack.c.h.bf16 %v2043_v2  ;;  %v3355_v26 = vadd.f32 %v3323_v22, %v7510_v33 }
 0x766   : > { %v5465_v62 = vpop.eup %5464  ;;  %v3356_v5 = vadd.f32 %v3324_v58, %v7520_v25  ;;  %v2306_v50 = vmul.f32 0.044677734, %v2274_v56  ;;  %v2307_v27 = vmul.f32 0.044677734, %v2275_v10  ;;  %v2432_v19 = vunpack.c.l.bf16 %v2409_v54 }
 0x767   : > { %8547 = vst [vmem:[#allocation35_spill] sm:$0xff] %v7634_v4  ;;  %v3245_v29 = vunpack.c.l.bf16 %v3220_v32  ;;  %v3246_v7 = vunpack.c.h.bf16 %v3220_v32  ;;  %v2148_v1 = vmul.f32 %v7634_v4, %v7634_v4  ;;  %v2149_v21 = vmul.f32 %v7636_v11, %v7636_v11 }
 0x768   : > { %8548 = vst [vmem:[#allocation36_spill] sm:$0xff] %v7636_v11  ;;  %v5467_v14 = vpop.eup %5466  ;;  %v3379_v44 = vpack.c.bf16 %v3356_v5, %v3355_v26  ;;  %v2330_v20 = vpack.c.bf16 %v2307_v27, %v2306_v50  ;;  %v2433_v15 = vunpack.c.h.bf16 %v2409_v54  ;;  %v2464_v54 = vmul.f32 0.796875, %v2432_v19 }
 0x769   : > { %v5469_v47 = vpop.eup %5468  ;;  %v3277_v41 = vmul.f32 0.044677734, %v3245_v29  ;;  %v3278_v52 = vmul.f32 0.044677734, %v3246_v7  ;;  %v2171_v55 = vpack.c.bf16 %v2149_v21, %v2148_v1  ;;  %v3533_v58 = vpack.c.bf16 %v5467_v14, %v5465_v62 }
 0x76a   : > { %v5471_v30 = vpop.eup %5470  ;;  %v2354_v2 = vunpack.c.l.bf16 %v2330_v20  ;;  %v2355_v22 = vunpack.c.h.bf16 %v2330_v20  ;;  %v3403_v56 = vunpack.c.l.bf16 %v3379_v44  ;;  %v3404_v33 = vunpack.c.h.bf16 %v3379_v44 }
 0x76b   : > { %v3300_v10 = vpack.c.bf16 %v3278_v52, %v3277_v41  ;;  %v2196_v32 = vunpack.c.l.bf16 %v2171_v55  ;;  %v2197_v25 = vunpack.c.h.bf16 %v2171_v55  ;;  %v3534_v26 = vpack.c.bf16 %v5471_v30, %v5469_v47 }
 0x76c   : > { %v2386_v8 = vadd.f32 %v2354_v2, %v7569_v12  ;;  %v2387_v59 = vadd.f32 %v2355_v22, %v7571_v57  ;;  %v3551_v1 = vunpack.c.l.bf16 %v3533_v58  ;;  %v3552_v62 = vunpack.c.h.bf16 %v3533_v58 }
 0x76d   : > { %v3325_v5 = vunpack.c.l.bf16 %v3300_v10  ;;  %v3326_v50 = vunpack.c.h.bf16 %v3300_v10  ;;  %v2228_v27 = vmul.f32 %v2196_v32, %v7634_v4  ;;  %v2229_v29 = vmul.f32 %v2197_v25, %v7636_v11 }
 0x76e   : > { %v2410_v7 = vpack.c.bf16 %v2387_v59, %v2386_v8  ;;  %v2465_v14 = vmul.f32 0.796875, %v2433_v15  ;;  %v3435_v41 = vmul.f32 0.796875, %v3403_v56  ;;  %v3436_v52 = vmul.f32 0.796875, %v3404_v33 }
 0x76f   : > { %v3357_v21 = vadd.f32 %v3325_v5, %v7598_v16  ;;  %v3358_v44 = vadd.f32 %v3326_v50, %v7600_v40  ;;  %v2251_v20 = vpack.c.bf16 %v2229_v29, %v2228_v27  ;;  %v3553_v47 = vunpack.c.l.bf16 %v3534_v26 }
 0x770   : > { %v2434_v55 = vunpack.c.l.bf16 %v2410_v7  ;;  %v2435_v30 = vunpack.c.h.bf16 %v2410_v7  ;;  %v3554_v10 = vunpack.c.h.bf16 %v3534_v26  ;;  %v7654_v25 = vpack.c.bf16 %v7629_v45, %v7604_v60 }
 0x771   : > { %v2276_v2 = vunpack.c.l.bf16 %v2251_v20  ;;  %v2277_v22 = vunpack.c.h.bf16 %v2251_v20  ;;  %v3380_v8 = vpack.c.bf16 %v3358_v44, %v3357_v21  ;;  %v3583_v59 = vadd.f32 1.0, %v3551_v1 }
 0x772   : > { %v3584_v19 = vadd.f32 1.0, %v3552_v62  ;;  %v7656_v15 = vpack.c.bf16 %v2465_v14, %v2464_v54  ;;  %v3633_v56 = vunpack.c.l.bf16 %v7420_v3  ;;  %v7659_v33 = vpack.c.bf16 %v3436_v52, %v3435_v41  ;;  %v2939_v1 = vpop.f32.mrf.mxu0  ;;  %v2988_v62 = vpop.f32.mrf.mxu1 }
 0x773   : > { %v2308_v58 = vmul.f32 0.044677734, %v2276_v2  ;;  %v2309_v32 = vmul.f32 0.044677734, %v2277_v22  ;;  %v3585_v5 = vadd.f32 1.0, %v3553_v47  ;;  %v3586_v50 = vadd.f32 1.0, %v3554_v10  ;;  %v8549_v2 = vld [vmem:[#allocation17_spill] sm:$0xff] }
 0x774   : > { %v3613_v27 = vpack.c.bf16 %v3584_v19, %v3583_v59  ;;  %v2466_v29 = vmul.f32 0.796875, %v2434_v55  ;;  %v2467_v26 = vmul.f32 0.796875, %v2435_v30  ;;  %v3632_v60 = vunpack.c.h.bf16 %v7408_v39 }
 0x775   : > { %v2331_v7 = vpack.c.bf16 %v2309_v32, %v2308_v58  ;;  %v3405_v45 = vunpack.c.l.bf16 %v3380_v8  ;;  %v3406_v21 = vunpack.c.h.bf16 %v3380_v8  ;;  %v3614_v54 = vpack.c.bf16 %v3586_v50, %v3585_v5 }
 0x776   : > { %v3634_v14 = vunpack.c.h.bf16 %v7420_v3  ;;  %v2940_v41 = vadd.f32 %v2939_v1, %v6882_v0  ;;  %v3663_v52 = vunpack.c.l.bf16 %v3613_v27  ;;  %v2989_v55 = vadd.f32 %v2988_v62, %v6885_v28 }
 0x777   : > { %v2356_v44 = vunpack.c.l.bf16 %v2331_v7  ;;  %v2357_v20 = vunpack.c.h.bf16 %v2331_v7  ;;  %v3665_v30 = vunpack.c.l.bf16 %v3614_v54  ;;  %v7667_v22 = vmul.f32 0.5, %v8549_v2  ;;  %v1970_v62 = vpop.f32.mrf.mxu2  ;;  %v2019_v47 = vpop.f32.mrf.mxu3 }
 0x778   : > { %v7670_v8 = vpack.c.bf16 %v2467_v26, %v2466_v29  ;;  %v3013_v19 = vpack.c.bf16 %v2989_v55, %v2940_v41  ;;  %v3664_v32 = vunpack.c.h.bf16 %v3613_v27  ;;  %v3666_v5 = vunpack.c.h.bf16 %v3614_v54 }
 0x779   : > { %v2388_v59 = vadd.f32 %v2356_v44, %v7634_v4  ;;  %v2389_v3 = vadd.f32 %v2357_v20, %v7636_v11  ;;  %v3697_v58 = vmul.f32 %v3665_v30, %v3633_v56  ;;  %v3437_v50 = vmul.f32 0.796875, %v3405_v45  ;;  %v8552_v45 = vld [vmem:[#allocation18_spill] sm:$0xff] }
 0x77a   : > { %8550 = vst [vmem:[#allocation17_spill] sm:$0xff] %v7670_v8  ;;  %v3438_v7 = vmul.f32 0.796875, %v3406_v21  ;;  %v8551_v2 = vunpack.c.l.bf16 %v7408_v39  ;;  %v7676_v12 = vunpack.c.l.bf16 %v3013_v19  ;;  %v7678_v29 = vunpack.c.h.bf16 %v3013_v19  ;;  %v2990_v55 = vpop.f32.mrf.mxu1 }
 0x77b   : > { %v2411_v1 = vpack.c.bf16 %v2389_v3, %v2388_v59  ;;  %v1971_v26 = vadd.f32 %v1970_v62, %v6896_v17  ;;  %v2020_v44 = vadd.f32 %v2019_v47, %v6902_v51  ;;  %v3698_v54 = vmul.f32 %v3666_v5, %v3634_v14 }
 0x77c   : > { %v3695_v57 = vmul.f32 %v3663_v52, %v8551_v2  ;;  %v7684_v21 = vmul.f32 0.5, %v8552_v45  ;;  %v3119_v20 = vmul.f32 %v7676_v12, %v7676_v12  ;;  %v3120_v39 = vmul.f32 %v7678_v29, %v7678_v29  ;;  %v2941_v52 = vpop.f32.mrf.mxu0 }
 0x77d   : > { %v2044_v41 = vpack.c.bf16 %v2020_v44, %v1971_v26  ;;  %v3696_v30 = vmul.f32 %v3664_v32, %v3632_v60  ;;  %v2436_v47 = vunpack.c.l.bf16 %v2411_v1  ;;  %v2942_v3 = vadd.f32 %v2941_v52, %v6882_v0 }
 0x77e   : > { %v3725_v27 = vpack.c.bf16 %v3697_v58, %v3695_v57  ;;  %v2991_v57 = vadd.f32 %v2990_v55, %v6885_v28  ;;  %v3141_v14 = vpack.c.bf16 %v3120_v39, %v3119_v20  ;;  %v7697_v62 = vpack.c.bf16 %v3438_v7, %v3437_v50 }
 0x77f   : > { %v7693_v19 = vunpack.c.l.bf16 %v2044_v41  ;;  %v7695_v58 = vunpack.c.h.bf16 %v2044_v41  ;;  %v3726_v5 = vpack.c.bf16 %v3698_v54, %v3696_v30  ;;  %v2437_v2 = vunpack.c.h.bf16 %v2411_v1 }
 0x780   : > { %3880 = vmatmul.bf16.gmra.mxu2 %v3725_v27  ;;  %v3014_v26 = vpack.c.bf16 %v2991_v57, %v2942_v3  ;;  %v2504_v60 = vunpack.c.l.bf16 %v7366_v13  ;;  %v3167_v32 = vunpack.c.l.bf16 %v3141_v14  ;;  %v3168_v44 = vunpack.c.h.bf16 %v3141_v14 }
 0x781   : > { %8553 = vst [vmem:[#allocation18_spill] sm:$0xff] %v7693_v19  ;;  %v2150_v45 = vmul.f32 %v7693_v19, %v7693_v19  ;;  %v2151_v27 = vmul.f32 %v7695_v58, %v7695_v58  ;;  %3929 = vmatmul.bf16.gmra.mxu3 %v3726_v5  ;;  %v2468_v20 = vmul.f32 0.796875, %v2436_v47  ;;  %v2505_v50 = vunpack.c.h.bf16 %v7366_v13 }
 0x782   : > { %8554 = vst [vmem:[#allocation37_spill] sm:$0xff] %v7695_v58  ;;  %v7704_v39 = vunpack.c.l.bf16 %v3014_v26  ;;  %v7706_v41 = vunpack.c.h.bf16 %v3014_v26  ;;  %v3199_v7 = vmul.f32 %v3167_v32, %v7676_v12  ;;  %v3200_v1 = vmul.f32 %v3168_v44, %v7678_v29 }
 0x783   : > { %v2172_v54 = vpack.c.bf16 %v2151_v27, %v2150_v45  ;;  %v8557_v52 = vunpack.c.l.bf16 %v7241_v43  ;;  %v2469_v55 = vmul.f32 0.796875, %v2437_v2  ;;  %v8558_v3 = vunpack.c.h.bf16 %v7241_v43 }
 0x784   : > { %8555 = vst [vmem:[#allocation38_spill] sm:$0xff] %v7704_v39  ;;  %v3121_v30 = vmul.f32 %v7704_v39, %v7704_v39  ;;  %v3122_v47 = vmul.f32 %v7706_v41, %v7706_v41  ;;  %v3221_v57 = vpack.c.bf16 %v3200_v1, %v3199_v7  ;;  %v2088_v26 = vmul.f32 0.5, %v7146_v42 }
 0x785   : > { %8556 = vst [vmem:[#allocation39_spill] sm:$0xff] %v7706_v41  ;;  %5472 = vtanh.f32 %v8557_v52  ;;  %v2198_v13 = vunpack.c.l.bf16 %v2172_v54  ;;  %v2199_v14 = vunpack.c.h.bf16 %v2172_v54  ;;  %v2089_v32 = vmul.f32 0.5, %v7148_v53  ;;  %v1972_v53 = vpop.f32.mrf.mxu2 }
 0x786   : > { %5474 = vtanh.f32 %v8558_v3  ;;  %v3142_v5 = vpack.c.bf16 %v3122_v47, %v3121_v30  ;;  %v3247_v2 = vunpack.c.l.bf16 %v3221_v57  ;;  %v3248_v44 = vunpack.c.h.bf16 %v3221_v57 }
 0x787   : > { %5476 = vtanh.f32 %v2504_v60  ;;  %v2230_v45 = vmul.f32 %v2198_v13, %v7693_v19  ;;  %v2231_v27 = vmul.f32 %v2199_v14, %v7695_v58  ;;  %v7724_v43 = vpack.c.bf16 %v2469_v55, %v2468_v20 }
 0x788   : > { %5478 = vtanh.f32 %v2505_v50  ;;  %v3169_v7 = vunpack.c.l.bf16 %v3142_v5  ;;  %v3170_v1 = vunpack.c.h.bf16 %v3142_v5  ;;  %v3279_v30 = vmul.f32 0.044677734, %v3247_v2  ;;  %v2021_v50 = vpop.f32.mrf.mxu3 }
 0x789   : > { %v3280_v42 = vmul.f32 0.044677734, %v3248_v44  ;;  %v2252_v47 = vpack.c.bf16 %v2231_v27, %v2230_v45  ;;  %v7731_v14 = vpack.c.bf16 %v7684_v21, %v7667_v22  ;;  %v7733_v20 = vpack.c.bf16 %v2089_v32, %v2088_v26 }
 0x78a   : > { %v3201_v57 = vmul.f32 %v3169_v7, %v7704_v39  ;;  %v3202_v13 = vmul.f32 %v3170_v1, %v7706_v41  ;;  %v1973_v60 = vadd.f32 %v1972_v53, %v6896_v17  ;;  %v2022_v7 = vadd.f32 %v2021_v50, %v6902_v51 }
 0x78b   : > { %v5473_v54 = vpop.eup %5472  ;;  %v3301_v5 = vpack.c.bf16 %v3280_v42, %v3279_v30  ;;  %v2278_v59 = vunpack.c.l.bf16 %v2252_v47  ;;  %v2279_v56 = vunpack.c.h.bf16 %v2252_v47 }
 0x78c   : > { %v5475_v3 = vpop.eup %5474  ;;  %v3222_v27 = vpack.c.bf16 %v3202_v13, %v3201_v57 }
 0x78d   : > { %v5477_v55 = vpop.eup %5476  ;;  %v2564_v2 = vpack.c.bf16 %v5475_v3, %v5473_v54  ;;  %v3327_v1 = vunpack.c.l.bf16 %v3301_v5  ;;  %v3328_v52 = vunpack.c.h.bf16 %v3301_v5  ;;  %v2310_v10 = vmul.f32 0.044677734, %v2278_v59 }
 0x78e   : > { %v5479_v44 = vpop.eup %5478  ;;  %v2311_v22 = vmul.f32 0.044677734, %v2279_v56  ;;  %v3249_v21 = vunpack.c.l.bf16 %v3222_v27  ;;  %v3250_v26 = vunpack.c.h.bf16 %v3222_v27 }
 0x78f   : > { %v2565_v32 = vpack.c.bf16 %v5479_v44, %v5477_v55  ;;  %v2582_v11 = vunpack.c.l.bf16 %v2564_v2  ;;  %v3359_v30 = vadd.f32 %v3327_v1, %v7676_v12  ;;  %v3360_v54 = vadd.f32 %v3328_v52, %v7678_v29 }
 0x790   : > { %v2332_v42 = vpack.c.bf16 %v2311_v22, %v2310_v10  ;;  %v2583_v47 = vunpack.c.h.bf16 %v2564_v2  ;;  %v3281_v3 = vmul.f32 0.044677734, %v3249_v21  ;;  %v3282_v57 = vmul.f32 0.044677734, %v3250_v26 }
 0x791   : > { %v2584_v13 = vunpack.c.l.bf16 %v2565_v32  ;;  %v2585_v53 = vunpack.c.h.bf16 %v2565_v32  ;;  %v3381_v45 = vpack.c.bf16 %v3360_v54, %v3359_v30  ;;  %v2614_v5 = vadd.f32 1.0, %v2582_v11 }
 0x792   : > { %v2358_v50 = vunpack.c.l.bf16 %v2332_v42  ;;  %v2359_v4 = vunpack.c.h.bf16 %v2332_v42  ;;  %v3302_v59 = vpack.c.bf16 %v3282_v57, %v3281_v3  ;;  %v2615_v56 = vadd.f32 1.0, %v2583_v47 }
 0x793   : > { %v2616_v8 = vadd.f32 1.0, %v2584_v13  ;;  %v2617_v27 = vadd.f32 1.0, %v2585_v53  ;;  %v2662_v52 = vunpack.c.l.bf16 %v7731_v14  ;;  %v2045_v10 = vpack.c.bf16 %v2022_v7, %v1973_v60 }
 0x794   : > { %v2390_v55 = vadd.f32 %v2358_v50, %v7693_v19  ;;  %v2391_v44 = vadd.f32 %v2359_v4, %v7695_v58  ;;  %v3329_v2 = vunpack.c.l.bf16 %v3302_v59  ;;  %v3330_v1 = vunpack.c.h.bf16 %v3302_v59 }
 0x795   : > { %v2644_v22 = vpack.c.bf16 %v2615_v56, %v2614_v5  ;;  %v2645_v21 = vpack.c.bf16 %v2617_v27, %v2616_v8  ;;  %v3407_v26 = vunpack.c.l.bf16 %v3381_v45  ;;  %v3408_v32 = vunpack.c.h.bf16 %v3381_v45  ;;  %v2944_v56 = vpop.f32.mrf.mxu0  ;;  %v2993_v27 = vpop.f32.mrf.mxu1 }
 0x796   : > { %v2412_v30 = vpack.c.bf16 %v2391_v44, %v2390_v55  ;;  %v2664_v11 = vunpack.c.l.bf16 %v7733_v20  ;;  %v3361_v54 = vadd.f32 %v3329_v2, %v7704_v39  ;;  %v3362_v42 = vadd.f32 %v3330_v1, %v7706_v41 }
 0x797   : > { %v2694_v47 = vunpack.c.l.bf16 %v2644_v22  ;;  %v2696_v3 = vunpack.c.l.bf16 %v2645_v21  ;;  %v2663_v57 = vunpack.c.h.bf16 %v7731_v14  ;;  %v2695_v60 = vunpack.c.h.bf16 %v2644_v22 }
 0x798   : > { %v7748_v7 = vunpack.c.l.bf16 %v2045_v10  ;;  %v3382_v13 = vpack.c.bf16 %v3362_v42, %v3361_v54  ;;  %v2697_v45 = vunpack.c.h.bf16 %v2645_v21  ;;  %v3439_v50 = vmul.f32 0.796875, %v3407_v26 }
 0x799   : > { %v2726_v8 = vmul.f32 %v2694_v47, %v2662_v52  ;;  %v2728_v53 = vmul.f32 %v2696_v3, %v2664_v11  ;;  %v3440_v5 = vmul.f32 0.796875, %v3408_v32  ;;  %v2665_v59 = vunpack.c.h.bf16 %v7733_v20 }
 0x79a   : > { %v7752_v55 = vmul.f32 0.5, %v7176_v36  ;;  %v2438_v44 = vunpack.c.l.bf16 %v2412_v30  ;;  %v2439_v2 = vunpack.c.h.bf16 %v2412_v30  ;;  %v3409_v1 = vunpack.c.l.bf16 %v3382_v13 }
 0x79b   : > { %v2756_v14 = vpack.c.bf16 %v2728_v53, %v2726_v8  ;;  %v2727_v22 = vmul.f32 %v2695_v60, %v2663_v57  ;;  %v2729_v4 = vmul.f32 %v2697_v45, %v2665_v59  ;;  %v7754_v58 = vunpack.c.h.bf16 %v2045_v10  ;;  %v1975_v57 = vpop.f32.mrf.mxu2  ;;  %v2024_v60 = vpop.f32.mrf.mxu3 }
 0x79c   : > { %v2152_v52 = vmul.f32 %v7748_v7, %v7748_v7  ;;  %v3410_v21 = vunpack.c.h.bf16 %v3382_v13  ;;  %v2945_v20 = vadd.f32 %v2944_v56, %v6882_v0  ;;  %v2994_v26 = vadd.f32 %v2993_v27, %v6885_v28 }
 0x79d   : > { %4074 = vmatmul.bf16.gmra.mxu0 %v2756_v14  ;;  %v7761_v36 = vmul.f32 0.5, %v7178_v46  ;;  %v2757_v32 = vpack.c.bf16 %v2729_v4, %v2727_v22  ;;  %v2153_v30 = vmul.f32 %v7754_v58, %v7754_v58  ;;  %v7766_v11 = vmul.f32 0.5, %v7202_v37  ;;  %v2946_v56 = vpop.f32.mrf.mxu0  ;;  %v2995_v27 = vpop.f32.mrf.mxu1 }
 0x79e   : > { %v7769_v10 = vmul.f32 0.5, %v7206_v61  ;;  %v7771_v54 = vpack.c.bf16 %v3440_v5, %v3439_v50  ;;  %v2470_v42 = vmul.f32 0.796875, %v2438_v44  ;;  %v2471_v47 = vmul.f32 0.796875, %v2439_v2 }
 0x79f   : > { %v3015_v3 = vpack.c.bf16 %v2994_v26, %v2945_v20  ;;  %v3441_v13 = vmul.f32 0.796875, %v3409_v1  ;;  %4123 = vmatmul.bf16.gmra.mxu1 %v2757_v32  ;;  %v2173_v46 = vpack.c.bf16 %v2153_v30, %v2152_v52  ;;  %v1976_v4 = vadd.f32 %v1975_v57, %v6896_v17 }
 0x7a0   : > { %v2025_v8 = vadd.f32 %v2024_v60, %v6902_v51  ;;  %v3442_v53 = vmul.f32 0.796875, %v3410_v21  ;;  %v8559_v61 = vunpack.c.l.bf16 %v7362_v63  ;;  %v3477_v44 = vunpack.c.l.bf16 %v7385_v9 }
 0x7a1   : > { %v7775_v37 = vunpack.c.l.bf16 %v3015_v3  ;;  %v7777_v45 = vunpack.c.h.bf16 %v3015_v3  ;;  %v2200_v50 = vunpack.c.l.bf16 %v2173_v46  ;;  %v2201_v5 = vunpack.c.h.bf16 %v2173_v46 }
 0x7a2   : > { %5480 = vtanh.f32 %v8559_v61  ;;  %v2046_v59 = vpack.c.bf16 %v2025_v8, %v1976_v4  ;;  %v2947_v14 = vadd.f32 %v2946_v56, %v6882_v0  ;;  %v2996_v22 = vadd.f32 %v2995_v27, %v6885_v28 }
 0x7a3   : > { %v3123_v2 = vmul.f32 %v7775_v37, %v7775_v37  ;;  %v3124_v1 = vmul.f32 %v7777_v45, %v7777_v45  ;;  %v2232_v52 = vmul.f32 %v2200_v50, %v7748_v7  ;;  %v2233_v21 = vmul.f32 %v2201_v5, %v7754_v58 }
 0x7a4   : > { %v7790_v20 = vunpack.c.l.bf16 %v2046_v59  ;;  %v7792_v26 = vunpack.c.h.bf16 %v2046_v59  ;;  %v3016_v30 = vpack.c.bf16 %v2996_v22, %v2947_v14  ;;  %v3478_v3 = vunpack.c.h.bf16 %v7385_v9 }
 0x7a5   : > { %v3143_v32 = vpack.c.bf16 %v3124_v1, %v3123_v2  ;;  %v8561_v57 = vunpack.c.h.bf16 %v7362_v63  ;;  %v2253_v60 = vpack.c.bf16 %v2233_v21, %v2232_v52 }
 0x7a6   : > { %8560 = vst [vmem:[#allocation40_spill] sm:$0xff] %v7792_v26  ;;  %v2154_v46 = vmul.f32 %v7790_v20, %v7790_v20  ;;  %v2155_v4 = vmul.f32 %v7792_v26, %v7792_v26  ;;  %v7801_v5 = vunpack.c.l.bf16 %v3016_v30  ;;  %v7803_v59 = vunpack.c.h.bf16 %v3016_v30 }
 0x7a7   : > { %5482 = vtanh.f32 %v8561_v57  ;;  %v3171_v61 = vunpack.c.l.bf16 %v3143_v32  ;;  %v3172_v50 = vunpack.c.h.bf16 %v3143_v32  ;;  %v2280_v56 = vunpack.c.l.bf16 %v2253_v60 }
 0x7a8   : > { %5484 = vtanh.f32 %v3477_v44  ;;  %v5481_v8 = vpop.eup %5480  ;;  %v2281_v9 = vunpack.c.h.bf16 %v2253_v60  ;;  %v2174_v27 = vpack.c.bf16 %v2155_v4, %v2154_v46  ;;  %v3125_v1 = vmul.f32 %v7801_v5, %v7801_v5 }
 0x7a9   : > { %5486 = vtanh.f32 %v3478_v3  ;;  %v3203_v63 = vmul.f32 %v3171_v61, %v7775_v37  ;;  %v3204_v2 = vmul.f32 %v3172_v50, %v7777_v45  ;;  %v3126_v44 = vmul.f32 %v7803_v59, %v7803_v59 }
 0x7aa   : > { %v2312_v14 = vmul.f32 0.044677734, %v2280_v56  ;;  %v2313_v22 = vmul.f32 0.044677734, %v2281_v9  ;;  %v2202_v52 = vunpack.c.l.bf16 %v2174_v27  ;;  %v2203_v21 = vunpack.c.h.bf16 %v2174_v27 }
 0x7ab   : > { %v7812_v57 = vpack.c.bf16 %v2471_v47, %v2470_v42  ;;  %v3223_v3 = vpack.c.bf16 %v3204_v2, %v3203_v63  ;;  %v3144_v60 = vpack.c.bf16 %v3126_v44, %v3125_v1  ;;  %v7814_v4 = vpack.c.bf16 %v3442_v53, %v3441_v13 }
 0x7ac   : > { %v2333_v61 = vpack.c.bf16 %v2313_v22, %v2312_v14  ;;  %v2234_v50 = vmul.f32 %v2202_v52, %v7790_v20  ;;  %v2235_v28 = vmul.f32 %v2203_v21, %v7792_v26  ;;  %v7824_v21 = vpack.c.bf16 %v7761_v36, %v7752_v55 }
 0x7ad   : > { %v5483_v32 = vpop.eup %5482  ;;  %v3251_v0 = vunpack.c.l.bf16 %v3223_v3  ;;  %v3252_v56 = vunpack.c.h.bf16 %v3223_v3  ;;  %v3173_v9 = vunpack.c.l.bf16 %v3144_v60  ;;  %v3174_v19 = vunpack.c.h.bf16 %v3144_v60 }
 0x7ae   : > { %v5485_v46 = vpop.eup %5484  ;;  %v2360_v41 = vunpack.c.l.bf16 %v2333_v61  ;;  %v2361_v39 = vunpack.c.h.bf16 %v2333_v61  ;;  %v2254_v30 = vpack.c.bf16 %v2235_v28, %v2234_v50  ;;  %v3535_v42 = vpack.c.bf16 %v5483_v32, %v5481_v8 }
 0x7af   : > { %v5487_v27 = vpop.eup %5486  ;;  %v3283_v47 = vmul.f32 0.044677734, %v3251_v0  ;;  %v3284_v63 = vmul.f32 0.044677734, %v3252_v56  ;;  %v3205_v2 = vmul.f32 %v3173_v9, %v7801_v5  ;;  %v3206_v13 = vmul.f32 %v3174_v19, %v7803_v59 }
 0x7b0   : > { %v2392_v53 = vadd.f32 %v2360_v41, %v7748_v7  ;;  %v2393_v1 = vadd.f32 %v2361_v39, %v7754_v58  ;;  %v2282_v44 = vunpack.c.l.bf16 %v2254_v30  ;;  %v2283_v14 = vunpack.c.h.bf16 %v2254_v30 }
 0x7b1   : > { %v3303_v22 = vpack.c.bf16 %v3284_v63, %v3283_v47  ;;  %v3224_v52 = vpack.c.bf16 %v3206_v13, %v3205_v2  ;;  %v3536_v28 = vpack.c.bf16 %v5487_v27, %v5485_v46  ;;  %v3555_v3 = vunpack.c.l.bf16 %v3535_v42 }
 0x7b2   : > { %v2413_v8 = vpack.c.bf16 %v2393_v1, %v2392_v53  ;;  %v2314_v0 = vmul.f32 0.044677734, %v2282_v44  ;;  %v2315_v32 = vmul.f32 0.044677734, %v2283_v14  ;;  %v3088_v39 = vpack.c.bf16 %v7769_v10, %v7766_v11 }
 0x7b3   : > { %v3331_v60 = vunpack.c.l.bf16 %v3303_v22  ;;  %v3332_v61 = vunpack.c.h.bf16 %v3303_v22  ;;  %v3253_v19 = vunpack.c.l.bf16 %v3224_v52  ;;  %v3254_v50 = vunpack.c.h.bf16 %v3224_v52 }
 0x7b4   : > { %v2334_v41 = vpack.c.bf16 %v2315_v32, %v2314_v0  ;;  %v3556_v30 = vunpack.c.h.bf16 %v3535_v42  ;;  %v3557_v56 = vunpack.c.l.bf16 %v3536_v28  ;;  %v2440_v27 = vunpack.c.l.bf16 %v2413_v8 }
 0x7b5   : > { %v3363_v9 = vadd.f32 %v3331_v60, %v7775_v37  ;;  %v3364_v55 = vadd.f32 %v3332_v61, %v7777_v45  ;;  %v3285_v36 = vmul.f32 0.044677734, %v3253_v19  ;;  %v3286_v46 = vmul.f32 0.044677734, %v3254_v50 }
 0x7b6   : > { %v2441_v47 = vunpack.c.h.bf16 %v2413_v8  ;;  %v2362_v63 = vunpack.c.l.bf16 %v2334_v41  ;;  %v2363_v2 = vunpack.c.h.bf16 %v2334_v41  ;;  %v3558_v1 = vunpack.c.h.bf16 %v3536_v28 }
 0x7b7   : > { %v3383_v13 = vpack.c.bf16 %v3364_v55, %v3363_v9  ;;  %v3304_v53 = vpack.c.bf16 %v3286_v46, %v3285_v36  ;;  %v3587_v44 = vadd.f32 1.0, %v3555_v3  ;;  %v3588_v10 = vadd.f32 1.0, %v3556_v30 }
 0x7b8   : > { %v2394_v14 = vadd.f32 %v2362_v63, %v7790_v20  ;;  %v2395_v11 = vadd.f32 %v2363_v2, %v7792_v26  ;;  %v3589_v42 = vadd.f32 1.0, %v3557_v56  ;;  %v2472_v60 = vmul.f32 0.796875, %v2440_v27 }
 0x7b9   : > { %v3411_v22 = vunpack.c.l.bf16 %v3383_v13  ;;  %v3412_v52 = vunpack.c.h.bf16 %v3383_v13  ;;  %v3333_v0 = vunpack.c.l.bf16 %v3304_v53  ;;  %v3334_v32 = vunpack.c.h.bf16 %v3304_v53 }
 0x7ba   : > { %v2473_v61 = vmul.f32 0.796875, %v2441_v47  ;;  %v2414_v19 = vpack.c.bf16 %v2395_v11, %v2394_v14  ;;  %v3590_v8 = vadd.f32 1.0, %v3558_v1  ;;  %v3615_v30 = vpack.c.bf16 %v3588_v10, %v3587_v44 }
 0x7bb   : > { %v3443_v50 = vmul.f32 0.796875, %v3411_v22  ;;  %v3444_v41 = vmul.f32 0.796875, %v3412_v52  ;;  %v3365_v9 = vadd.f32 %v3333_v0, %v7801_v5  ;;  %v3366_v28 = vadd.f32 %v3334_v32, %v7803_v59 }
 0x7bc   : > { %v3616_v56 = vpack.c.bf16 %v3590_v8, %v3589_v42  ;;  %v2442_v46 = vunpack.c.l.bf16 %v2414_v19  ;;  %v2443_v63 = vunpack.c.h.bf16 %v2414_v19  ;;  %v3635_v27 = vunpack.c.l.bf16 %v7824_v21 }
 0x7bd   : > { %v3384_v47 = vpack.c.bf16 %v3366_v28, %v3365_v9  ;;  %v3637_v2 = vunpack.c.l.bf16 %v3088_v39  ;;  %v3667_v13 = vunpack.c.l.bf16 %v3615_v30  ;;  %v7840_v11 = vpack.c.bf16 %v2473_v61, %v2472_v60  ;;  %v8562_v60 = vld [vmem:[#allocation21_spill] sm:$0xff] }
 0x7be   : > { %v3669_v53 = vunpack.c.l.bf16 %v3616_v56  ;;  %v7842_v22 = vpack.c.bf16 %v3444_v41, %v3443_v50  ;;  %v3636_v42 = vunpack.c.h.bf16 %v7824_v21  ;;  %v3668_v52 = vunpack.c.h.bf16 %v3615_v30  ;;  %v8563_v50 = vld [vmem:[#allocation24_spill] sm:$0xff]  ;;  %v8564_v21 = vld [vmem:[#allocation25_spill] sm:$0xff] }
 0x7bf   : > { %v3699_v44 = vmul.f32 %v3667_v13, %v3635_v27  ;;  %v2474_v0 = vmul.f32 0.796875, %v2442_v46  ;;  %v2475_v32 = vmul.f32 0.796875, %v2443_v63  ;;  %v3638_v19 = vunpack.c.h.bf16 %v3088_v39  ;;  %v1977_v27 = vpop.f32.mrf.mxu2 }
 0x7c0   : > { %v3701_v10 = vmul.f32 %v3669_v53, %v3637_v2  ;;  %v3670_v8 = vunpack.c.h.bf16 %v3616_v56  ;;  %v3413_v9 = vunpack.c.l.bf16 %v3384_v47  ;;  %v3414_v28 = vunpack.c.h.bf16 %v3384_v47  ;;  %v2026_v2 = vpop.f32.mrf.mxu3  ;;  %v8565_v56 = vld [vmem:[#allocation26_spill] sm:$0xff] }
 0x7c1   : > { %v2090_v55 = vmul.f32 0.5, %v7183_v6  ;;  %v3700_v1 = vmul.f32 %v3668_v52, %v3636_v42  ;;  %v2091_v61 = vmul.f32 0.5, %v8562_v60  ;;  %v2092_v41 = vmul.f32 0.5, %v8563_v50 }
 0x7c2   : > { %v3727_v36 = vpack.c.bf16 %v3701_v10, %v3699_v44  ;;  %v3702_v14 = vmul.f32 %v3670_v8, %v3638_v19  ;;  %v2093_v30 = vmul.f32 0.5, %v8564_v21  ;;  %v2508_v46 = vunpack.c.l.bf16 %v7508_v23 }
 0x7c3   : > { %v2509_v39 = vunpack.c.h.bf16 %v7508_v23  ;;  %v8566_v63 = vunpack.c.l.bf16 %v8565_v56  ;;  %v1978_v10 = vadd.f32 %v1977_v27, %v6896_v17  ;;  %v2027_v42 = vadd.f32 %v2026_v2, %v6902_v51 }
 0x7c4   : > { %3885 = vmatmul.bf16.gmra.mxu2 %v3727_v36  ;;  %v3728_v53 = vpack.c.bf16 %v3702_v14, %v3700_v1  ;;  %v8567_v36 = vunpack.c.h.bf16 %v8565_v56  ;;  %v3445_v23 = vmul.f32 0.796875, %v3413_v9  ;;  %v3446_v52 = vmul.f32 0.796875, %v3414_v28 }
 0x7c5   : > { %5488 = vtanh.f32 %v8566_v63  ;;  %v7861_v19 = vpack.c.bf16 %v2091_v61, %v2090_v55  ;;  %v7863_v8 = vpack.c.bf16 %v2475_v32, %v2474_v0  ;;  %v7865_v60 = vpack.c.bf16 %v2093_v30, %v2092_v41 }
 0x7c6   : > { %5490 = vtanh.f32 %v8567_v36  ;;  %3934 = vmatmul.bf16.gmra.mxu3 %v3728_v53  ;;  %v2047_v1 = vpack.c.bf16 %v2027_v42, %v1978_v10  ;;  %v3063_v14 = vmul.f32 0.5, %v7410_v38  ;;  %v3064_v50 = vmul.f32 0.5, %v7414_v48 }
 0x7c7   : > { %5492 = vtanh.f32 %v2508_v46  ;;  %v3065_v27 = vmul.f32 0.5, %v7450_v18  ;;  %v3066_v2 = vmul.f32 0.5, %v7452_v24  ;;  %v3481_v0 = vunpack.c.l.bf16 %v7654_v25 }
 0x7c8   : > { %5494 = vtanh.f32 %v2509_v39  ;;  %v7871_v28 = vunpack.c.l.bf16 %v2047_v1  ;;  %v7873_v55 = vunpack.c.h.bf16 %v2047_v1  ;;  %v3482_v32 = vunpack.c.h.bf16 %v7654_v25 }
 0x7c9   : > { %v7877_v61 = vpack.c.bf16 %v3446_v52, %v3445_v23  ;;  %v2666_v41 = vunpack.c.l.bf16 %v7861_v19  ;;  %v7880_v38 = vpack.c.bf16 %v3064_v50, %v3063_v14  ;;  %v8568_v48 = vunpack.c.l.bf16 %v7522_v49 }
 0x7ca   : > { %v2156_v24 = vmul.f32 %v7871_v28, %v7871_v28  ;;  %v2157_v21 = vmul.f32 %v7873_v55, %v7873_v55  ;;  %v7888_v30 = vpack.c.bf16 %v3066_v2, %v3065_v27  ;;  %v8569_v25 = vunpack.c.h.bf16 %v7522_v49  ;;  %v8570_v49 = vld [vmem:[#allocation28_spill] sm:$0xff] }
 0x7cb   : > { %v5489_v9 = vpop.eup %5488  ;;  %5496 = vtanh.f32 %v8568_v48  ;;  %v2668_v56 = vunpack.c.l.bf16 %v7865_v60  ;;  %v2667_v63 = vunpack.c.h.bf16 %v7861_v19  ;;  %v2669_v36 = vunpack.c.h.bf16 %v7865_v60 }
 0x7cc   : > { %v5491_v18 = vpop.eup %5490  ;;  %5498 = vtanh.f32 %v8569_v25  ;;  %v2175_v10 = vpack.c.bf16 %v2157_v21, %v2156_v24  ;;  %v7896_v42 = vmul.f32 0.5, %v7437_v34  ;;  %v7899_v14 = vmul.f32 0.5, %v8570_v49 }
 0x7cd   : > { %v5493_v46 = vpop.eup %5492  ;;  %v2566_v39 = vpack.c.bf16 %v5491_v18, %v5489_v9  ;;  %5500 = vtanh.f32 %v3481_v0  ;;  %v3640_v21 = vunpack.c.h.bf16 %v7880_v38  ;;  %v3642_v25 = vunpack.c.h.bf16 %v7888_v30 }
 0x7ce   : > { %v5495_v53 = vpop.eup %5494  ;;  %5502 = vtanh.f32 %v3482_v32  ;;  %v2204_v50 = vunpack.c.l.bf16 %v2175_v10  ;;  %v2205_v27 = vunpack.c.h.bf16 %v2175_v10 }
 0x7cf   : > { %v2567_v23 = vpack.c.bf16 %v5495_v53, %v5493_v46  ;;  %v2586_v52 = vunpack.c.l.bf16 %v2566_v39  ;;  %v2587_v1 = vunpack.c.h.bf16 %v2566_v39 }
 0x7d0   : > { %v2236_v34 = vmul.f32 %v2204_v50, %v7871_v28  ;;  %v2237_v24 = vmul.f32 %v2205_v27, %v7873_v55 }
 0x7d1   : > { %v5497_v9 = vpop.eup %5496  ;;  %v2588_v0 = vunpack.c.l.bf16 %v2567_v23  ;;  %v2589_v60 = vunpack.c.h.bf16 %v2567_v23  ;;  %v2618_v48 = vadd.f32 1.0, %v2586_v52  ;;  %v2619_v32 = vadd.f32 1.0, %v2587_v1 }
 0x7d2   : > { %v5499_v18 = vpop.eup %5498  ;;  %v2255_v13 = vpack.c.bf16 %v2237_v24, %v2236_v34  ;;  %v2512_v23 = vunpack.c.l.bf16 %v7656_v15  ;;  %v2513_v52 = vunpack.c.h.bf16 %v7656_v15  ;;  %v8571_v1 = vunpack.c.l.bf16 %v7573_v35 }
 0x7d3   : > { %v5501_v46 = vpop.eup %5500  ;;  %v2620_v39 = vadd.f32 1.0, %v2588_v0  ;;  %v2621_v53 = vadd.f32 1.0, %v2589_v60  ;;  %v2646_v10 = vpack.c.bf16 %v2619_v32, %v2618_v48  ;;  %v3537_v49 = vpack.c.bf16 %v5499_v18, %v5497_v9 }
 0x7d4   : > { %v5503_v44 = vpop.eup %5502  ;;  %5504 = vtanh.f32 %v8571_v1  ;;  %v2284_v3 = vunpack.c.l.bf16 %v2255_v13  ;;  %v2285_v19 = vunpack.c.h.bf16 %v2255_v13  ;;  %v8572_v13 = vunpack.c.h.bf16 %v7573_v35 }
 0x7d5   : > { %v2647_v50 = vpack.c.bf16 %v2621_v53, %v2620_v39  ;;  %v2698_v27 = vunpack.c.l.bf16 %v2646_v10  ;;  %v2699_v47 = vunpack.c.h.bf16 %v2646_v10  ;;  %v3538_v6 = vpack.c.bf16 %v5503_v44, %v5501_v46 }
 0x7d6   : > { %v3559_v2 = vunpack.c.l.bf16 %v3537_v49  ;;  %v3560_v0 = vunpack.c.h.bf16 %v3537_v49  ;;  %v2316_v18 = vmul.f32 0.044677734, %v2284_v3  ;;  %v2317_v34 = vmul.f32 0.044677734, %v2285_v19 }
 0x7d7   : > { %v2700_v60 = vunpack.c.l.bf16 %v2647_v50  ;;  %v2730_v48 = vmul.f32 %v2698_v27, %v2666_v41  ;;  %v2701_v9 = vunpack.c.h.bf16 %v2647_v50  ;;  %v2731_v32 = vmul.f32 %v2699_v47, %v2667_v63 }
 0x7d8   : > { %v3561_v24 = vunpack.c.l.bf16 %v3538_v6  ;;  %v3562_v51 = vunpack.c.h.bf16 %v3538_v6  ;;  %v3591_v26 = vadd.f32 1.0, %v3559_v2  ;;  %v3592_v1 = vadd.f32 1.0, %v3560_v0 }
 0x7d9   : > { %v2732_v15 = vmul.f32 %v2700_v60, %v2668_v56  ;;  %v2733_v17 = vmul.f32 %v2701_v9, %v2669_v36  ;;  %v2335_v53 = vpack.c.bf16 %v2317_v34, %v2316_v18  ;;  %5506 = vtanh.f32 %v8572_v13  ;;  %v8573_v36 = vld [vmem:[#allocation30_spill] sm:$0xff] }
 0x7da   : > { %v5505_v39 = vpop.eup %5504  ;;  %v3593_v10 = vadd.f32 1.0, %v3561_v24  ;;  %v3594_v44 = vadd.f32 1.0, %v3562_v51  ;;  %v3617_v41 = vpack.c.bf16 %v3592_v1, %v3591_v26  ;;  %5508 = vtanh.f32 %v2512_v23 }
 0x7db   : > { %v2758_v46 = vpack.c.bf16 %v2732_v15, %v2730_v48  ;;  %v2759_v49 = vpack.c.bf16 %v2733_v17, %v2731_v32  ;;  %v2364_v47 = vunpack.c.l.bf16 %v2335_v53  ;;  %v2365_v3 = vunpack.c.h.bf16 %v2335_v53 }
 0x7dc   : > { %v3618_v63 = vpack.c.bf16 %v3594_v44, %v3593_v10  ;;  %5510 = vtanh.f32 %v2513_v52  ;;  %v3671_v6 = vunpack.c.l.bf16 %v3617_v41  ;;  %v3672_v56 = vunpack.c.h.bf16 %v3617_v41 }
 0x7dd   : > { %4079 = vmatmul.bf16.gmra.mxu0 %v2758_v46  ;;  %4128 = vmatmul.bf16.gmra.mxu1 %v2759_v49  ;;  %v2096_v2 = vmul.f32 0.5, %v8573_v36  ;;  %v2097_v19 = vmul.f32 0.5, %v7480_v31  ;;  %v2396_v51 = vadd.f32 %v2364_v47, %v7871_v28  ;;  %v2397_v35 = vadd.f32 %v2365_v3, %v7873_v55  ;;  %v8578_v3 = vld [vmem:[#allocation32_spill] sm:$0xff] }
 0x7de   : > { %v3673_v50 = vunpack.c.l.bf16 %v3618_v63  ;;  %v3674_v17 = vunpack.c.h.bf16 %v3618_v63  ;;  %v2522_v26 = vunpack.c.l.bf16 %v7863_v8  ;;  %v2523_v23 = vunpack.c.h.bf16 %v7863_v8 }
 0x7df   : > { %v3493_v52 = vunpack.c.l.bf16 %v7877_v61  ;;  %v8574_v27 = vunpack.c.l.bf16 %v7880_v38  ;;  %v5507_v60 = vpop.eup %5506  ;;  %v2415_v48 = vpack.c.bf16 %v2397_v35, %v2396_v51  ;;  %v8575_v9 = vunpack.c.l.bf16 %v7888_v30 }
 0x7e0   : > { %v3704_v32 = vmul.f32 %v3672_v56, %v3640_v21  ;;  %v3706_v18 = vmul.f32 %v3674_v17, %v3642_v25  ;;  %v5509_v34 = vpop.eup %5508  ;;  %v3494_v24 = vunpack.c.h.bf16 %v7877_v61  ;;  %v2120_v15 = vpack.c.bf16 %v7899_v14, %v7896_v42  ;;  %v8577_v21 = vld [vmem:[#allocation31_spill] sm:$0xff] }
 0x7e1   : > { %v3703_v0 = vmul.f32 %v3671_v6, %v8574_v27  ;;  %v3705_v31 = vmul.f32 %v3673_v50, %v8575_v9  ;;  %v2121_v1 = vpack.c.bf16 %v2097_v19, %v2096_v2  ;;  %v2568_v53 = vpack.c.bf16 %v5507_v60, %v5505_v39 }
 0x7e2   : > { %v5511_v10 = vpop.eup %5510  ;;  %v2444_v44 = vunpack.c.l.bf16 %v2415_v48  ;;  %v2445_v13 = vunpack.c.h.bf16 %v2415_v48  ;;  %v3730_v46 = vpack.c.bf16 %v3706_v18, %v3704_v32  ;;  %v8576_v30 = vunpack.c.l.bf16 %v7659_v33 }
 0x7e3   : > { %v3729_v38 = vpack.c.bf16 %v3705_v31, %v3703_v0  ;;  %v2569_v49 = vpack.c.bf16 %v5511_v10, %v5509_v34  ;;  %v2590_v41 = vunpack.c.l.bf16 %v2568_v53  ;;  %v2591_v47 = vunpack.c.h.bf16 %v2568_v53 }
 0x7e4   : > { %5512 = vtanh.f32 %v8576_v30  ;;  %3939 = vmatmul.bf16.gmra.mxu3 %v3730_v46  ;;  %v3067_v25 = vmul.f32 0.5, %v8577_v21  ;;  %v3068_v63 = vmul.f32 0.5, %v8578_v3  ;;  %v3069_v42 = vmul.f32 0.5, %v7598_v16  ;;  %v8587_v3 = vld [vmem:[#allocation36_spill] sm:$0xff] }
 0x7e5   : > { %3890 = vmatmul.bf16.gmra.mxu2 %v3729_v38  ;;  %v8579_v14 = vunpack.c.h.bf16 %v7659_v33  ;;  %v2592_v39 = vunpack.c.l.bf16 %v2569_v49  ;;  %v2593_v6 = vunpack.c.h.bf16 %v2569_v49  ;;  %v2622_v56 = vadd.f32 1.0, %v2590_v41  ;;  %v8583_v38 = vld [vmem:[#allocation17_spill] sm:$0xff]  ;;  %v8586_v41 = vld [vmem:[#allocation35_spill] sm:$0xff] }
 0x7e6   : > { %v2623_v36 = vadd.f32 1.0, %v2591_v47  ;;  %v2476_v2 = vmul.f32 0.796875, %v2444_v44  ;;  %v2477_v19 = vmul.f32 0.796875, %v2445_v13  ;;  %v3070_v51 = vmul.f32 0.5, %v7600_v40  ;;  %v8582_v44 = vld [vmem:[#allocation33_spill] sm:$0xff] }
 0x7e7   : > { %5514 = vtanh.f32 %v8579_v14  ;;  %v8580_v35 = vunpack.c.l.bf16 %v7697_v62  ;;  %v2624_v50 = vadd.f32 1.0, %v2592_v39  ;;  %v2625_v17 = vadd.f32 1.0, %v2593_v6 }
 0x7e8   : > { %v2648_v27 = vpack.c.bf16 %v2623_v36, %v2622_v56  ;;  %v8581_v0 = vunpack.c.h.bf16 %v7697_v62  ;;  %v2670_v16 = vunpack.c.l.bf16 %v2120_v15  ;;  %v2672_v33 = vunpack.c.l.bf16 %v2121_v1 }
 0x7e9   : > { %5516 = vtanh.f32 %v8580_v35  ;;  %v2671_v60 = vunpack.c.h.bf16 %v2120_v15  ;;  %v2673_v48 = vunpack.c.h.bf16 %v2121_v1  ;;  %v2649_v31 = vpack.c.bf16 %v2625_v17, %v2624_v50  ;;  %v8585_v15 = vld [vmem:[#allocation34_spill] sm:$0xff] }
 0x7ea   : > { %5518 = vtanh.f32 %v8581_v0  ;;  %v5513_v9 = vpop.eup %5512  ;;  %v2702_v32 = vunpack.c.l.bf16 %v2648_v27  ;;  %v2703_v18 = vunpack.c.h.bf16 %v2648_v27  ;;  %v7939_v34 = vpack.c.bf16 %v3068_v63, %v3067_v25 }
 0x7eb   : > { %v7941_v53 = vpack.c.bf16 %v2477_v19, %v2476_v2  ;;  %v7943_v10 = vpack.c.bf16 %v3070_v51, %v3069_v42  ;;  %v2098_v13 = vmul.f32 0.5, %v8582_v44  ;;  %v8584_v62 = vunpack.c.l.bf16 %v8583_v38 }
 0x7ec   : > { %v2704_v46 = vunpack.c.l.bf16 %v2649_v31  ;;  %v2705_v49 = vunpack.c.h.bf16 %v2649_v31  ;;  %v2099_v1 = vmul.f32 0.5, %v8585_v15  ;;  %v2100_v47 = vmul.f32 0.5, %v8586_v41 }
 0x7ed   : > { %v5515_v40 = vpop.eup %5514  ;;  %5520 = vtanh.f32 %v8584_v62  ;;  %v2734_v21 = vmul.f32 %v2702_v32, %v2670_v16  ;;  %v2101_v63 = vmul.f32 0.5, %v8587_v3  ;;  %v8588_v14 = vunpack.c.h.bf16 %v8583_v38 }
 0x7ee   : > { %v3539_v25 = vpack.c.bf16 %v5515_v40, %v5513_v9  ;;  %v2736_v39 = vmul.f32 %v2704_v46, %v2672_v33  ;;  %v2735_v6 = vmul.f32 %v2703_v18, %v2671_v60  ;;  %v2737_v56 = vmul.f32 %v2705_v49, %v2673_v48 }
 0x7ef   : > { %v5517_v30 = vpop.eup %5516  ;;  %5522 = vtanh.f32 %v8588_v14  ;;  %v8589_v36 = vunpack.c.l.bf16 %v7724_v43  ;;  %v8590_v35 = vunpack.c.h.bf16 %v7724_v43  ;;  %v3643_v27 = vunpack.c.l.bf16 %v7939_v34 }
 0x7f0   : > { %v5519_v42 = vpop.eup %5518  ;;  %v3563_v19 = vunpack.c.l.bf16 %v3539_v25  ;;  %v3564_v51 = vunpack.c.h.bf16 %v3539_v25  ;;  %v2760_v50 = vpack.c.bf16 %v2736_v39, %v2734_v21  ;;  %v2761_v17 = vpack.c.bf16 %v2737_v56, %v2735_v6  ;;  %v8592_v21 = vld [vmem:[#allocation38_spill] sm:$0xff]  ;;  %v8594_v56 = vld [vmem:[#allocation39_spill] sm:$0xff] }
 0x7f1   : > { %5524 = vtanh.f32 %v8589_v36  ;;  %v3540_v2 = vpack.c.bf16 %v5519_v42, %v5517_v30  ;;  %v7958_v0 = vpack.c.bf16 %v2099_v1, %v2098_v13  ;;  %v3645_v31 = vunpack.c.l.bf16 %v7943_v10 }
 0x7f2   : > { %5526 = vtanh.f32 %v8590_v35  ;;  %v3595_v60 = vadd.f32 1.0, %v3563_v19  ;;  %v3596_v48 = vadd.f32 1.0, %v3564_v51  ;;  %4084 = vmatmul.bf16.gmra.mxu0 %v2760_v50  ;;  %4133 = vmatmul.bf16.gmra.mxu1 %v2761_v17  ;;  %v3644_v32 = vunpack.c.h.bf16 %v7939_v34 }
 0x7f3   : > { %v5521_v16 = vpop.eup %5520  ;;  %v3565_v9 = vunpack.c.l.bf16 %v3540_v2  ;;  %v3566_v33 = vunpack.c.h.bf16 %v3540_v2  ;;  %v3646_v43 = vunpack.c.h.bf16 %v7943_v10  ;;  %v7963_v18 = vpack.c.bf16 %v2101_v63, %v2100_v47 }
 0x7f4   : > { %v3619_v13 = vpack.c.bf16 %v3596_v48, %v3595_v60  ;;  %v3071_v62 = vmul.f32 0.5, %v7676_v12  ;;  %v2674_v15 = vunpack.c.l.bf16 %v7958_v0  ;;  %v3072_v1 = vmul.f32 0.5, %v7678_v29 }
 0x7f5   : > { %v5523_v40 = vpop.eup %5522  ;;  %v3597_v44 = vadd.f32 1.0, %v3565_v9  ;;  %v3598_v38 = vadd.f32 1.0, %v3566_v33  ;;  %v8591_v41 = vunpack.c.l.bf16 %v7771_v54  ;;  %v3073_v25 = vmul.f32 0.5, %v8592_v21  ;;  %v8598_v21 = vld [vmem:[#allocation37_spill] sm:$0xff] }
 0x7f6   : > { %v2570_v49 = vpack.c.bf16 %v5523_v40, %v5521_v16  ;;  %v3675_v10 = vunpack.c.l.bf16 %v3619_v13  ;;  %v3676_v47 = vunpack.c.h.bf16 %v3619_v13  ;;  %v8593_v12 = vunpack.c.h.bf16 %v7771_v54 }
 0x7f7   : > { %v5525_v46 = vpop.eup %5524  ;;  %5528 = vtanh.f32 %v8591_v41  ;;  %v3620_v30 = vpack.c.bf16 %v3598_v38, %v3597_v44  ;;  %v3074_v29 = vmul.f32 0.5, %v8594_v56  ;;  %v8595_v16 = vunpack.c.l.bf16 %v7814_v4 }
 0x7f8   : > { %v5527_v34 = vpop.eup %5526  ;;  %v2594_v63 = vunpack.c.l.bf16 %v2570_v49  ;;  %v2595_v14 = vunpack.c.h.bf16 %v2570_v49  ;;  %5530 = vtanh.f32 %v8593_v12  ;;  %v3707_v39 = vmul.f32 %v3675_v10, %v3643_v27 }
 0x7f9   : > { %v2571_v3 = vpack.c.bf16 %v5527_v34, %v5525_v46  ;;  %v3677_v42 = vunpack.c.l.bf16 %v3620_v30  ;;  %v3678_v6 = vunpack.c.h.bf16 %v3620_v30  ;;  %v3708_v50 = vmul.f32 %v3676_v47, %v3644_v32  ;;  %v8597_v34 = vld [vmem:[#allocation18_spill] sm:$0xff] }
 0x7fa   : > { %v2626_v19 = vadd.f32 1.0, %v2594_v63  ;;  %v2627_v51 = vadd.f32 1.0, %v2595_v14  ;;  %5532 = vtanh.f32 %v8595_v16  ;;  %v8596_v48 = vunpack.c.h.bf16 %v7814_v4 }
 0x7fb   : > { %v2596_v36 = vunpack.c.l.bf16 %v2571_v3  ;;  %v2597_v2 = vunpack.c.h.bf16 %v2571_v3  ;;  %v3709_v35 = vmul.f32 %v3677_v42, %v3645_v31  ;;  %v3710_v17 = vmul.f32 %v3678_v6, %v3646_v43 }
 0x7fc   : > { %v2650_v54 = vpack.c.bf16 %v2627_v51, %v2626_v19  ;;  %5534 = vtanh.f32 %v8596_v48  ;;  %v2676_v44 = vunpack.c.l.bf16 %v7963_v18  ;;  %v2675_v38 = vunpack.c.h.bf16 %v7958_v0 }
 0x7fd   : > { %v5529_v9 = vpop.eup %5528  ;;  %v2628_v33 = vadd.f32 1.0, %v2596_v36  ;;  %v2629_v60 = vadd.f32 1.0, %v2597_v2  ;;  %v3731_v27 = vpack.c.bf16 %v3709_v35, %v3707_v39  ;;  %v3732_v40 = vpack.c.bf16 %v3710_v17, %v3708_v50 }
 0x7fe   : > { %v5531_v13 = vpop.eup %5530  ;;  %v2706_v32 = vunpack.c.l.bf16 %v2650_v54  ;;  %v2677_v43 = vunpack.c.h.bf16 %v7963_v18  ;;  %v2707_v46 = vunpack.c.h.bf16 %v2650_v54  ;;  %v7981_v49 = vpack.c.bf16 %v3072_v1, %v3071_v62 }
 0x7ff   : > { %v2651_v31 = vpack.c.bf16 %v2629_v60, %v2628_v33  ;;  %3895 = vmatmul.bf16.gmra.mxu2 %v3731_v27  ;;  %3944 = vmatmul.bf16.gmra.mxu3 %v3732_v40  ;;  %v7983_v41 = vpack.c.bf16 %v3074_v29, %v3073_v25  ;;  %v3541_v4 = vpack.c.bf16 %v5531_v13, %v5529_v9  ;;  %v2102_v30 = vmul.f32 0.5, %v8597_v34 }
 0x800   : > { %v2103_v3 = vmul.f32 0.5, %v8598_v21  ;;  %v2104_v0 = vmul.f32 0.5, %v7748_v7  ;;  %v5533_v63 = vpop.eup %5532  ;;  %v2738_v14 = vmul.f32 %v2706_v32, %v2674_v15  ;;  %v2105_v42 = vmul.f32 0.5, %v7754_v58 }
 0x801   : > { %v2708_v10 = vunpack.c.l.bf16 %v2651_v31  ;;  %v2709_v47 = vunpack.c.h.bf16 %v2651_v31  ;;  %v3567_v12 = vunpack.c.l.bf16 %v3541_v4  ;;  %v3568_v18 = vunpack.c.h.bf16 %v3541_v4 }
 0x802   : > { %v5535_v39 = vpop.eup %5534  ;;  %v2739_v1 = vmul.f32 %v2707_v46, %v2675_v38  ;;  %v8599_v6 = vunpack.c.l.bf16 %v7812_v57  ;;  %v8600_v2 = vunpack.c.h.bf16 %v7812_v57  ;;  %v7993_v15 = vpack.c.bf16 %v2103_v3, %v2102_v30 }
 0x803   : > { %v2740_v62 = vmul.f32 %v2708_v10, %v2676_v44  ;;  %v2741_v25 = vmul.f32 %v2709_v47, %v2677_v43  ;;  %v3542_v56 = vpack.c.bf16 %v5535_v39, %v5533_v63  ;;  %v3599_v29 = vadd.f32 1.0, %v3567_v12 }
 0x804   : > { %5536 = vtanh.f32 %v8599_v6  ;;  %v3600_v36 = vadd.f32 1.0, %v3568_v18  ;;  %v8601_v51 = vunpack.c.l.bf16 %v7840_v11  ;;  %v8602_v17 = vunpack.c.h.bf16 %v7840_v11 }
 0x805   : > { %5538 = vtanh.f32 %v8600_v2  ;;  %v2762_v7 = vpack.c.bf16 %v2740_v62, %v2738_v14  ;;  %v2763_v19 = vpack.c.bf16 %v2741_v25, %v2739_v1  ;;  %v3569_v58 = vunpack.c.l.bf16 %v3542_v56 }
 0x806   : > { %5540 = vtanh.f32 %v8601_v51  ;;  %v3570_v35 = vunpack.c.h.bf16 %v3542_v56  ;;  %v3621_v50 = vpack.c.bf16 %v3600_v36, %v3599_v29  ;;  %v2524_v16 = vunpack.c.l.bf16 %v7941_v53 }
 0x807   : > { %5542 = vtanh.f32 %v8602_v17  ;;  %v2525_v9 = vunpack.c.h.bf16 %v7941_v53  ;;  %4089 = vmatmul.bf16.gmra.mxu0 %v2762_v7  ;;  %4138 = vmatmul.bf16.gmra.mxu1 %v2763_v19  ;;  %v3647_v57 = vunpack.c.l.bf16 %v7981_v49  ;;  %v8002_v33 = vpack.c.bf16 %v2105_v42, %v2104_v0 }
 0x808   : > { %v3601_v60 = vadd.f32 1.0, %v3569_v58  ;;  %v3602_v54 = vadd.f32 1.0, %v3570_v35  ;;  %v3649_v48 = vunpack.c.l.bf16 %v7983_v41  ;;  %v3648_v27 = vunpack.c.h.bf16 %v7981_v49 }
 0x809   : > { %v3650_v11 = vunpack.c.h.bf16 %v7983_v41  ;;  %v2678_v44 = vunpack.c.l.bf16 %v7993_v15  ;;  %v3075_v38 = vmul.f32 0.5, %v7775_v37  ;;  %v8603_v13 = vunpack.c.l.bf16 %v7842_v22 }
 0x80a   : > { %v5537_v40 = vpop.eup %5536  ;;  %v3622_v32 = vpack.c.bf16 %v3602_v54, %v3601_v60  ;;  %v3679_v43 = vunpack.c.l.bf16 %v3621_v50  ;;  %v3680_v46 = vunpack.c.h.bf16 %v3621_v50  ;;  %v8604_v4 = vunpack.c.h.bf16 %v7842_v22  ;;  %v8605_v60 = vld [vmem:[#allocation40_spill] sm:$0xff] }
 0x80b   : > { %5544 = vtanh.f32 %v8603_v13  ;;  %v5539_v31 = vpop.eup %5538  ;;  %v2680_v49 = vunpack.c.l.bf16 %v8002_v33  ;;  %v3076_v41 = vmul.f32 0.5, %v7777_v45  ;;  %v3077_v21 = vmul.f32 0.5, %v7801_v5 }
 0x80c   : > { %5546 = vtanh.f32 %v8604_v4  ;;  %v5541_v34 = vpop.eup %5540  ;;  %v2572_v30 = vpack.c.bf16 %v5539_v31, %v5537_v40  ;;  %v3681_v10 = vunpack.c.l.bf16 %v3622_v32  ;;  %v3682_v47 = vunpack.c.h.bf16 %v3622_v32  ;;  %v2949_v31 = vpop.f32.mrf.mxu0 }
 0x80d   : > { %5548 = vtanh.f32 %v3493_v52  ;;  %v5543_v37 = vpop.eup %5542  ;;  %v3078_v63 = vmul.f32 0.5, %v7803_v59  ;;  %v3711_v14 = vmul.f32 %v3679_v43, %v3647_v57  ;;  %v3712_v18 = vmul.f32 %v3680_v46, %v3648_v27 }
 0x80e   : > { %5550 = vtanh.f32 %v3494_v24  ;;  %v2573_v3 = vpack.c.bf16 %v5543_v37, %v5541_v34  ;;  %v2598_v22 = vunpack.c.l.bf16 %v2572_v30  ;;  %v2599_v0 = vunpack.c.h.bf16 %v2572_v30  ;;  %v8606_v37 = vld [vmem:[#allocation11_spill] sm:$0xff] }
 0x80f   : > { %v3713_v12 = vmul.f32 %v3681_v10, %v3649_v48  ;;  %v3714_v45 = vmul.f32 %v3682_v47, %v3650_v11  ;;  %v2679_v61 = vunpack.c.h.bf16 %v7993_v15  ;;  %v2681_v24 = vunpack.c.h.bf16 %v8002_v33 }
 0x810   : > { %v2600_v39 = vunpack.c.l.bf16 %v2573_v3  ;;  %v2601_v52 = vunpack.c.h.bf16 %v2573_v3  ;;  %v2630_v62 = vadd.f32 1.0, %v2598_v22  ;;  %v2631_v1 = vadd.f32 1.0, %v2599_v0 }
 0x811   : > { %v5545_v42 = vpop.eup %5544  ;;  %v3733_v6 = vpack.c.bf16 %v3713_v12, %v3711_v14  ;;  %v3734_v5 = vpack.c.bf16 %v3714_v45, %v3712_v18  ;;  %v3095_v19 = vpack.c.bf16 %v3076_v41, %v3075_v38  ;;  %v3096_v51 = vpack.c.bf16 %v3078_v63, %v3077_v21  ;;  %v8607_v14 = vld [vmem:[#allocation12_spill] sm:$0xff] }
 0x812   : > { %v5547_v25 = vpop.eup %5546  ;;  %v2632_v29 = vadd.f32 1.0, %v2600_v39  ;;  %v2633_v36 = vadd.f32 1.0, %v2601_v52  ;;  %v2652_v59 = vpack.c.bf16 %v2631_v1, %v2630_v62  ;;  %v2106_v58 = vmul.f32 0.5, %v7790_v20 }
 0x813   : > { %v5549_v56 = vpop.eup %5548  ;;  %v3543_v2 = vpack.c.bf16 %v5547_v25, %v5545_v42  ;;  %3900 = vmatmul.bf16.gmra.mxu2 %v3733_v6  ;;  %3949 = vmatmul.bf16.gmra.mxu3 %v3734_v5  ;;  %5552 = vtanh.f32 %v2522_v26  ;;  %v2107_v54 = vmul.f32 0.5, %v8605_v60  ;;  %v2108_v11 = vmul.f32 0.5, %v7871_v28  ;;  %v8609_v60 = vld [vmem:[#allocation14_spill] sm:$0xff] }
 0x814   : > { %v5551_v7 = vpop.eup %5550  ;;  %v2653_v35 = vpack.c.bf16 %v2633_v36, %v2632_v29  ;;  %v2710_v50 = vunpack.c.l.bf16 %v2652_v59  ;;  %v2711_v15 = vunpack.c.h.bf16 %v2652_v59  ;;  %5554 = vtanh.f32 %v2523_v23 }
 0x815   : > { %v3544_v17 = vpack.c.bf16 %v5551_v7, %v5549_v56  ;;  %v3571_v57 = vunpack.c.l.bf16 %v3543_v2  ;;  %v3572_v33 = vunpack.c.h.bf16 %v3543_v2  ;;  %5556 = vtanh.f32 %v2524_v16  ;;  %v2029_v2 = vpop.f32.mrf.mxu3 }
 0x816   : > { %v2712_v48 = vunpack.c.l.bf16 %v2653_v35  ;;  %v2742_v27 = vmul.f32 %v2710_v50, %v2678_v44  ;;  %v2713_v40 = vunpack.c.h.bf16 %v2653_v35  ;;  %v2743_v43 = vmul.f32 %v2711_v15, %v2679_v61  ;;  %v2998_v44 = vpop.f32.mrf.mxu1 }
 0x817   : > { %v3573_v20 = vunpack.c.l.bf16 %v3544_v17  ;;  %v3574_v38 = vunpack.c.h.bf16 %v3544_v17  ;;  %v3603_v13 = vadd.f32 1.0, %v3571_v57  ;;  %v3604_v26 = vadd.f32 1.0, %v3572_v33 }
 0x818   : > { %v2744_v32 = vmul.f32 %v2712_v48, %v2680_v49  ;;  %v2745_v46 = vmul.f32 %v2713_v40, %v2681_v24  ;;  %5558 = vtanh.f32 %v2525_v9  ;;  %v2109_v41 = vmul.f32 0.5, %v7873_v55  ;;  %v1980_v24 = vpop.f32.mrf.mxu2 }
 0x819   : > { %v5553_v4 = vpop.eup %5552  ;;  %v3605_v34 = vadd.f32 1.0, %v3573_v20  ;;  %v3606_v8 = vadd.f32 1.0, %v3574_v38  ;;  %v3623_v23 = vpack.c.bf16 %v3604_v26, %v3603_v13  ;;  %v2950_v10 = vadd.f32 %v2949_v31, %v8606_v37  ;;  %v2951_v31 = vpop.f32.mrf.mxu0 }
 0x81a   : > { %v2764_v28 = vpack.c.bf16 %v2744_v32, %v2742_v27  ;;  %v2765_v30 = vpack.c.bf16 %v2745_v46, %v2743_v43  ;;  %v5555_v49 = vpop.eup %5554  ;;  %v3651_v21 = vunpack.c.l.bf16 %v3095_v19  ;;  %v3653_v16 = vunpack.c.l.bf16 %v3096_v51 }
 0x81b   : > { %v3624_v47 = vpack.c.bf16 %v3606_v8, %v3605_v34  ;;  %v3683_v3 = vunpack.c.l.bf16 %v3623_v23  ;;  %v3684_v22 = vunpack.c.h.bf16 %v3623_v23  ;;  %v3652_v0 = vunpack.c.h.bf16 %v3095_v19  ;;  %v5557_v42 = vpop.eup %5556 }
 0x81c   : > { %4094 = vmatmul.bf16.gmra.mxu0 %v2764_v28  ;;  %4143 = vmatmul.bf16.gmra.mxu1 %v2765_v30  ;;  %v2574_v63 = vpack.c.bf16 %v5555_v49, %v5553_v4  ;;  %v2999_v53 = vadd.f32 %v2998_v44, %v8607_v14  ;;  %v3654_v12 = vunpack.c.h.bf16 %v3096_v51  ;;  %v2126_v45 = vpack.c.bf16 %v2107_v54, %v2106_v58  ;;  %v8608_v58 = vld [vmem:[#allocation13_spill] sm:$0xff] }
 0x81d   : > { %v3685_v9 = vunpack.c.l.bf16 %v3624_v47  ;;  %v3686_v18 = vunpack.c.h.bf16 %v3624_v47  ;;  %v2127_v55 = vpack.c.bf16 %v2109_v41, %v2108_v11  ;;  %v3715_v25 = vmul.f32 %v3683_v3, %v3651_v21 }
 0x81e   : > { %v2602_v39 = vunpack.c.l.bf16 %v2574_v63  ;;  %v2603_v52 = vunpack.c.h.bf16 %v2574_v63  ;;  %v3017_v62 = vpack.c.bf16 %v2999_v53, %v2950_v10  ;;  %v5559_v1 = vpop.eup %5558  ;;  %v3716_v5 = vmul.f32 %v3684_v22, %v3652_v0  ;;  %v3000_v32 = vpop.f32.mrf.mxu1 }
 0x81f   : > { %v3717_v6 = vmul.f32 %v3685_v9, %v3653_v16  ;;  %v3718_v61 = vmul.f32 %v3686_v18, %v3654_v12  ;;  %v2575_v56 = vpack.c.bf16 %v5559_v1, %v5557_v42  ;;  %v1981_v35 = vadd.f32 %v1980_v24, %v8608_v58  ;;  %v2031_v9 = vpop.f32.mrf.mxu3 }
 0x820   : > { %v2634_v29 = vadd.f32 1.0, %v2602_v39  ;;  %v2635_v36 = vadd.f32 1.0, %v2603_v52  ;;  %v8037_v59 = vunpack.c.l.bf16 %v3017_v62  ;;  %v8039_v51 = vunpack.c.h.bf16 %v3017_v62  ;;  %v1982_v53 = vpop.f32.mrf.mxu2 }
 0x821   : > { %v3735_v7 = vpack.c.bf16 %v3717_v6, %v3715_v25  ;;  %v3736_v19 = vpack.c.bf16 %v3718_v61, %v3716_v5  ;;  %v2604_v50 = vunpack.c.l.bf16 %v2575_v56  ;;  %v2605_v15 = vunpack.c.h.bf16 %v2575_v56  ;;  %v4070_v56 = vpop.f32.mrf.mxu0 }
 0x822   : > { %v2654_v17 = vpack.c.bf16 %v2635_v36, %v2634_v29  ;;  %v3127_v57 = vmul.f32 %v8037_v59, %v8037_v59  ;;  %v3128_v33 = vmul.f32 %v8039_v51, %v8039_v51  ;;  %v2030_v54 = vadd.f32 %v2029_v2, %v8609_v60 }
 0x823   : > { %3905 = vmatmul.bf16.gmra.mxu2 %v3735_v7  ;;  %3954 = vmatmul.bf16.gmra.mxu3 %v3736_v19  ;;  %v2636_v48 = vadd.f32 1.0, %v2604_v50  ;;  %v2637_v27 = vadd.f32 1.0, %v2605_v15  ;;  %v2682_v40 = vunpack.c.l.bf16 %v2126_v45  ;;  %v2684_v20 = vunpack.c.l.bf16 %v2127_v55 }
 0x824   : > { %v2714_v11 = vunpack.c.l.bf16 %v2654_v17  ;;  %v2683_v38 = vunpack.c.h.bf16 %v2126_v45  ;;  %v3145_v13 = vpack.c.bf16 %v3128_v33, %v3127_v57  ;;  %v2048_v26 = vpack.c.bf16 %v2030_v54, %v1981_v35 }
 0x825   : > { %v2655_v43 = vpack.c.bf16 %v2637_v27, %v2636_v48  ;;  %v2685_v46 = vunpack.c.h.bf16 %v2127_v55  ;;  %v2715_v4 = vunpack.c.h.bf16 %v2654_v17  ;;  %v2952_v34 = vadd.f32 %v2951_v31, %v8606_v37 }
 0x826   : > { %v3175_v8 = vunpack.c.l.bf16 %v3145_v13  ;;  %v3176_v23 = vunpack.c.h.bf16 %v3145_v13  ;;  %v8048_v44 = vunpack.c.l.bf16 %v2048_v26  ;;  %v8050_v28 = vunpack.c.h.bf16 %v2048_v26  ;;  %v4119_v19 = vpop.f32.mrf.mxu1 }
 0x827   : > { %v2716_v30 = vunpack.c.l.bf16 %v2655_v43  ;;  %v2746_v41 = vmul.f32 %v2714_v11, %v2682_v40  ;;  %v2717_v10 = vunpack.c.h.bf16 %v2655_v43  ;;  %v3001_v49 = vadd.f32 %v3000_v32, %v8607_v14  ;;  %v3925_v48 = vpop.f32.mrf.mxu3 }
 0x828   : > { %v3207_v47 = vmul.f32 %v3175_v8, %v8037_v59  ;;  %v3208_v21 = vmul.f32 %v3176_v23, %v8039_v51  ;;  %v2158_v3 = vmul.f32 %v8048_v44, %v8048_v44  ;;  %v2159_v37 = vmul.f32 %v8050_v28, %v8050_v28  ;;  %v3876_v54 = vpop.f32.mrf.mxu2 }
 0x829   : > { %v2748_v22 = vmul.f32 %v2716_v30, %v2684_v20  ;;  %v2747_v16 = vmul.f32 %v2715_v4, %v2683_v38  ;;  %v2749_v0 = vmul.f32 %v2717_v10, %v2685_v46  ;;  %v3018_v63 = vpack.c.bf16 %v3001_v49, %v2952_v34  ;;  %v4072_v30 = vpop.f32.mrf.mxu0 }
 0x82a   : > { %v3225_v12 = vpack.c.bf16 %v3208_v21, %v3207_v47  ;;  %v2176_v18 = vpack.c.bf16 %v2159_v37, %v2158_v3  ;;  %v1983_v14 = vadd.f32 %v1982_v53, %v8608_v58  ;;  %v2032_v45 = vadd.f32 %v2031_v9, %v8609_v60  ;;  %v8086_v53 = vld [vmem:[%s8437_s7 + $0x7] ss:$0 sm:$0xff] }
 0x82b   : > { %v2766_v42 = vpack.c.bf16 %v2748_v22, %v2746_v41  ;;  %v2767_v55 = vpack.c.bf16 %v2749_v0, %v2747_v16  ;;  %v8061_v39 = vunpack.c.l.bf16 %v3018_v63  ;;  %v8063_v52 = vunpack.c.h.bf16 %v3018_v63 }
 0x82c   : > { %v3255_v62 = vunpack.c.l.bf16 %v3225_v12  ;;  %v3256_v1 = vunpack.c.h.bf16 %v3225_v12  ;;  %v2206_v25 = vunpack.c.l.bf16 %v2176_v18  ;;  %v2207_v6 = vunpack.c.h.bf16 %v2176_v18 }
 0x82d   : > { %4099 = vmatmul.bf16.gmra.mxu0 %v2766_v42  ;;  %4148 = vmatmul.bf16.gmra.mxu1 %v2767_v55  ;;  %v3129_v5 = vmul.f32 %v8061_v39, %v8061_v39  ;;  %v3130_v61 = vmul.f32 %v8063_v52, %v8063_v52  ;;  %v2049_v24 = vpack.c.bf16 %v2032_v45, %v1983_v14 }
 0x82e   : > { %v3287_v29 = vmul.f32 0.044677734, %v3255_v62  ;;  %v3288_v36 = vmul.f32 0.044677734, %v3256_v1  ;;  %v2238_v2 = vmul.f32 %v2206_v25, %v8048_v44  ;;  %v2239_v7 = vmul.f32 %v2207_v6, %v8050_v28  ;;  %v4121_v21 = vpop.f32.mrf.mxu1 }
 0x82f   : > { %v3146_v58 = vpack.c.bf16 %v3130_v61, %v3129_v5  ;;  %v8071_v35 = vunpack.c.l.bf16 %v2049_v24  ;;  %v8073_v50 = vunpack.c.h.bf16 %v2049_v24  ;;  %v3926_v26 = vadd.f32 %v3925_v48, %v3876_v54  ;;  %v3927_v63 = vpop.f32.mrf.mxu3 }
 0x830   : > { %v2256_v15 = vpack.c.bf16 %v2239_v7, %v2238_v2  ;;  %v3305_v27 = vpack.c.bf16 %v3288_v36, %v3287_v29  ;;  %v3878_v0 = vpop.f32.mrf.mxu2 }
 0x831   : > { %v3177_v17 = vunpack.c.l.bf16 %v3146_v58  ;;  %v3178_v57 = vunpack.c.h.bf16 %v3146_v58  ;;  %v2160_v33 = vmul.f32 %v8071_v35, %v8071_v35  ;;  %v2161_v60 = vmul.f32 %v8073_v50, %v8073_v50  ;;  %v8610_v58 = vld [vmem:[#allocation3_spill] sm:$0xff] }
 0x832   : > { %v2286_v40 = vunpack.c.l.bf16 %v2256_v15  ;;  %v2287_v11 = vunpack.c.h.bf16 %v2256_v15  ;;  %v4071_v46 = vadd.f32 %v4070_v56, %v3926_v26  ;;  %v3335_v4 = vunpack.c.l.bf16 %v3305_v27 }
 0x833   : > { %v3209_v20 = vmul.f32 %v3177_v17, %v8061_v39  ;;  %v3210_v38 = vmul.f32 %v3178_v57, %v8063_v52  ;;  %v2177_v13 = vpack.c.bf16 %v2161_v60, %v2160_v33  ;;  %v3336_v34 = vunpack.c.h.bf16 %v3305_v27 }
 0x834   : > { %v2318_v8 = vmul.f32 0.044677734, %v2286_v40  ;;  %v2319_v23 = vmul.f32 0.044677734, %v2287_v11  ;;  %v4120_v16 = vadd.f32 %v4119_v19, %v4071_v46  ;;  %v3367_v9 = vadd.f32 %v3335_v4, %v8037_v59  ;;  %v4075_v19 = vpop.f32.mrf.mxu0 }
 0x835   : > { %v3226_v31 = vpack.c.bf16 %v3210_v38, %v3209_v20  ;;  %v2208_v32 = vunpack.c.l.bf16 %v2177_v13  ;;  %v2209_v43 = vunpack.c.h.bf16 %v2177_v13  ;;  %v3368_v12 = vadd.f32 %v3336_v34, %v8039_v51 }
 0x836   : > { %v2336_v18 = vpack.c.bf16 %v2319_v23, %v2318_v8  ;;  %v3928_v55 = vadd.f32 %v3927_v63, %v3878_v0  ;;  %v4160_v62 = vadd.f32 %v8086_v53, %v4120_v16  ;;  %v4124_v13 = vpop.f32.mrf.mxu1  ;;  %v8611_v8 = vld [vmem:[#allocation4_spill] sm:$0xff]  ;;  %v8612_v0 = vld [vmem:[#allocation5_spill] sm:$0xff] }
 0x837   : > { %v3257_v41 = vunpack.c.l.bf16 %v3226_v31  ;;  %v3258_v10 = vunpack.c.h.bf16 %v3226_v31  ;;  %v2240_v49 = vmul.f32 %v2208_v32, %v8071_v35  ;;  %v2241_v47 = vmul.f32 %v2209_v43, %v8073_v50  ;;  %v3930_v48 = vpop.f32.mrf.mxu3 }
 0x838   : > { %v3385_v61 = vpack.c.bf16 %v3368_v12, %v3367_v9  ;;  %v2366_v24 = vunpack.c.l.bf16 %v2336_v18  ;;  %v2367_v56 = vunpack.c.h.bf16 %v2336_v18  ;;  %v4073_v7 = vadd.f32 %v4072_v30, %v3928_v55  ;;  %v3881_v54 = vpop.f32.mrf.mxu2 }
 0x839   : > { %v3289_v3 = vmul.f32 0.044677734, %v3257_v41  ;;  %v3290_v37 = vmul.f32 0.044677734, %v3258_v10  ;;  %v2257_v22 = vpack.c.bf16 %v2241_v47, %v2240_v49  ;;  %v8094_v15 = vadd.f32 %v4160_v62, %v8610_v58 }
 0x83a   : > { %v4122_v60 = vadd.f32 %v4121_v21, %v4073_v7  ;;  %v3931_v27 = vadd.f32 %v3930_v48, %v3881_v54  ;;  %v3415_v40 = vunpack.c.l.bf16 %v3385_v61  ;;  %v3416_v11 = vunpack.c.h.bf16 %v3385_v61 }
 0x83b   : > { %v3306_v14 = vpack.c.bf16 %v3290_v37, %v3289_v3  ;;  %v2288_v45 = vunpack.c.l.bf16 %v2257_v22  ;;  %v2289_v42 = vunpack.c.h.bf16 %v2257_v22  ;;  %4194 = vadd.xlane.f32.xlu0 %v8094_v15  ;;  %v2398_v20 = vadd.f32 %v2366_v24, %v8048_v44 }
 0x83c   : > { %v2399_v38 = vadd.f32 %v2367_v56, %v8050_v28  ;;  %v4076_v26 = vadd.f32 %v4075_v19, %v3931_v27  ;;  %v4161_v31 = vadd.f32 %v8086_v53, %v4122_v60  ;;  %v3447_v30 = vmul.f32 0.796875, %v3415_v40  ;;  %v8613_v19 = vld [vmem:[#allocation6_spill] sm:$0xff] }
 0x83d   : > { %v3337_v1 = vunpack.c.l.bf16 %v3306_v14  ;;  %v3338_v25 = vunpack.c.h.bf16 %v3306_v14  ;;  %v2320_v6 = vmul.f32 0.044677734, %v2288_v45  ;;  %v2321_v5 = vmul.f32 0.044677734, %v2289_v42  ;;  %v4077_v14 = vpop.f32.mrf.mxu0 }
 0x83e   : > { %v4125_v34 = vadd.f32 %v4124_v13, %v4076_v26  ;;  %v8103_v23 = vadd.f32 %v4161_v31, %v8611_v8  ;;  %v3448_v41 = vmul.f32 0.796875, %v3416_v11  ;;  %v2416_v10 = vpack.c.bf16 %v2399_v38, %v2398_v20 }
 0x83f   : > { %v3369_v29 = vadd.f32 %v3337_v1, %v8061_v39  ;;  %v3370_v36 = vadd.f32 %v3338_v25, %v8063_v52  ;;  %v2337_v2 = vpack.c.bf16 %v2321_v5, %v2320_v6  ;;  %v3932_v22 = vpop.f32.mrf.mxu3  ;;  %v4126_v1 = vpop.f32.mrf.mxu1  ;;  %v3079_v20 = vmul.f32 0.5, %v8037_v59 }
 0x840   : > { %4196 = vadd.xlane.f32.xlu1 %v8103_v23  ;;  %v4162_v49 = vadd.f32 %v8086_v53, %v4125_v34  ;;  %v3883_v37 = vpop.f32.mrf.mxu2  ;;  %v3465_v9 = vpack.c.bf16 %v3448_v41, %v3447_v30  ;;  %v2446_v12 = vunpack.c.l.bf16 %v2416_v10  ;;  %v2447_v18 = vunpack.c.h.bf16 %v2416_v10 }
 0x841   : > { %v3386_v17 = vpack.c.bf16 %v3370_v36, %v3369_v29  ;;  %v2368_v57 = vunpack.c.l.bf16 %v2337_v2  ;;  %v2369_v33 = vunpack.c.h.bf16 %v2337_v2  ;;  %v3933_v16 = vadd.f32 %v3932_v22, %v3883_v37 }
 0x842   : > { %v8108_v63 = vadd.f32 %v4162_v49, %v8612_v0  ;;  %v3495_v6 = vunpack.c.l.bf16 %v3465_v9  ;;  %v2478_v5 = vmul.f32 0.796875, %v2446_v12  ;;  %v2479_v61 = vmul.f32 0.796875, %v2447_v18 }
 0x843   : > { %v3417_v32 = vunpack.c.l.bf16 %v3386_v17  ;;  %v3418_v43 = vunpack.c.h.bf16 %v3386_v17  ;;  %v2400_v46 = vadd.f32 %v2368_v57, %v8071_v35  ;;  %v2401_v4 = vadd.f32 %v2369_v33, %v8073_v50 }
 0x844   : > { %v4078_v45 = vadd.f32 %v4077_v14, %v3933_v16  ;;  %4198 = vadd.xlane.f32.xlu2 %v8108_v63  ;;  %v3496_v24 = vunpack.c.h.bf16 %v3465_v9  ;;  %v2496_v17 = vpack.c.bf16 %v2479_v61, %v2478_v5  ;;  %5560 = vtanh.f32 %v3495_v6 }
 0x845   : > { %v3449_v47 = vmul.f32 0.796875, %v3417_v32  ;;  %v3450_v21 = vmul.f32 0.796875, %v3418_v43  ;;  %v2417_v3 = vpack.c.bf16 %v2401_v4, %v2400_v46  ;;  %v3080_v38 = vmul.f32 0.5, %v8039_v51 }
 0x846   : > { %v4127_v25 = vadd.f32 %v4126_v1, %v4078_v45  ;;  %5562 = vtanh.f32 %v3496_v24  ;;  %v2526_v54 = vunpack.c.l.bf16 %v2496_v17  ;;  %v2527_v48 = vunpack.c.h.bf16 %v2496_v17 }
 0x847   : > { %v3466_v42 = vpack.c.bf16 %v3450_v21, %v3449_v47  ;;  %v2448_v55 = vunpack.c.l.bf16 %v2417_v3  ;;  %v2449_v62 = vunpack.c.h.bf16 %v2417_v3  ;;  %v3081_v13 = vmul.f32 0.5, %v8061_v39 }
 0x848   : > { %v4163_v56 = vadd.f32 %v8086_v53, %v4127_v25  ;;  %v3886_v33 = vpop.f32.mrf.mxu2  ;;  %v3082_v26 = vmul.f32 0.5, %v8063_v52  ;;  %v3097_v49 = vpack.c.bf16 %v3080_v38, %v3079_v20  ;;  %v2112_v38 = vmul.f32 0.5, %v8071_v35 }
 0x849   : > { %v3497_v29 = vunpack.c.l.bf16 %v3466_v42  ;;  %v2480_v36 = vmul.f32 0.796875, %v2448_v55  ;;  %v2481_v2 = vmul.f32 0.796875, %v2449_v62  ;;  %v3498_v7 = vunpack.c.h.bf16 %v3466_v42  ;;  %v3935_v60 = vpop.f32.mrf.mxu3 }
 0x84a   : > { %v8113_v58 = vadd.f32 %v4163_v56, %v8613_v19  ;;  %v5561_v27 = vpop.eup %5560  ;;  %v3936_v32 = vadd.f32 %v3935_v60, %v3886_v33  ;;  %v3098_v59 = vpack.c.bf16 %v3082_v26, %v3081_v13  ;;  %v3655_v14 = vunpack.c.l.bf16 %v3097_v49 }
 0x84b   : > { %v2497_v57 = vpack.c.bf16 %v2481_v2, %v2480_v36  ;;  %5564 = vtanh.f32 %v3497_v29  ;;  %v3656_v42 = vunpack.c.h.bf16 %v3097_v49  ;;  %v2110_v56 = vmul.f32 0.5, %v8048_v44  ;;  %v8614_v29 = vld [vmem:[#allocation7_spill] sm:$0xff] }
 0x84c   : > { %4200 = vadd.xlane.f32.xlu0 %v8113_v58  ;;  %5566 = vtanh.f32 %v3498_v7  ;;  %v5563_v11 = vpop.eup %5562  ;;  %v3657_v45 = vunpack.c.l.bf16 %v3098_v59  ;;  %v3658_v61 = vunpack.c.h.bf16 %v3098_v59  ;;  %v2113_v13 = vmul.f32 0.5, %v8073_v50 }
 0x84d   : > { %v2528_v40 = vunpack.c.l.bf16 %v2497_v57  ;;  %v3545_v43 = vpack.c.bf16 %v5563_v11, %v5561_v27  ;;  %5568 = vtanh.f32 %v2526_v54  ;;  %v2529_v4 = vunpack.c.h.bf16 %v2497_v57 }
 0x84e   : > { %5570 = vtanh.f32 %v2527_v48  ;;  %v2111_v54 = vmul.f32 0.5, %v8050_v28  ;;  %v2129_v59 = vpack.c.bf16 %v2113_v13, %v2112_v38 }
 0x84f   : > { %v3575_v8 = vunpack.c.l.bf16 %v3545_v43  ;;  %v3576_v30 = vunpack.c.h.bf16 %v3545_v43  ;;  %5572 = vtanh.f32 %v2528_v40 }
 0x850   : > { %v3888_v52 = vpop.f32.mrf.mxu2  ;;  %5574 = vtanh.f32 %v2529_v4 }
 0x851   : > { %v5565_v31 = vpop.eup %5564  ;;  %v3607_v21 = vadd.f32 1.0, %v3575_v8  ;;  %v3937_v3 = vpop.f32.mrf.mxu3  ;;  %v3608_v37 = vadd.f32 1.0, %v3576_v30  ;;  %v2128_v8 = vpack.c.bf16 %v2111_v54, %v2110_v56  ;;  %v8617_v54 = vld [vmem:[#allocation2_spill] sm:$0xff] }
 0x852   : > { %v5567_v46 = vpop.eup %5566  ;;  %v3938_v55 = vadd.f32 %v3937_v3, %v3888_v52 }
 0x853   : > { %v3546_v34 = vpack.c.bf16 %v5567_v46, %v5565_v31  ;;  %v5569_v22 = vpop.eup %5568  ;;  %v3625_v18 = vpack.c.bf16 %v3608_v37, %v3607_v21  ;;  %v2686_v3 = vunpack.c.l.bf16 %v2128_v8  ;;  %v2687_v37 = vunpack.c.h.bf16 %v2128_v8 }
 0x854   : > { %v5571_v12 = vpop.eup %5570 }
 0x855   : > { %v3577_v47 = vunpack.c.l.bf16 %v3546_v34  ;;  %v3578_v39 = vunpack.c.h.bf16 %v3546_v34  ;;  %v2576_v25 = vpack.c.bf16 %v5571_v12, %v5569_v22  ;;  %v5573_v6 = vpop.eup %5572  ;;  %v3687_v5 = vunpack.c.l.bf16 %v3625_v18 }
 0x856   : > { %v3688_v24 = vunpack.c.h.bf16 %v3625_v18  ;;  %v5575_v17 = vpop.eup %5574  ;;  %v2688_v22 = vunpack.c.l.bf16 %v2129_v59 }
 0x857   : > { %v3609_v0 = vadd.f32 1.0, %v3577_v47  ;;  %v3610_v9 = vadd.f32 1.0, %v3578_v39  ;;  %v2606_v19 = vunpack.c.l.bf16 %v2576_v25  ;;  %v3719_v33 = vmul.f32 %v3687_v5, %v3655_v14 }
 0x858   : > { %v3720_v60 = vmul.f32 %v3688_v24, %v3656_v42  ;;  %v2607_v48 = vunpack.c.h.bf16 %v2576_v25  ;;  %v2577_v20 = vpack.c.bf16 %v5575_v17, %v5573_v6 }
 0x859   : > { %v3626_v1 = vpack.c.bf16 %v3610_v9, %v3609_v0  ;;  %v2638_v26 = vadd.f32 1.0, %v2606_v19  ;;  %v2689_v0 = vunpack.c.h.bf16 %v2129_v59 }
 0x85a   : > { %v4080_v41 = vpop.f32.mrf.mxu0  ;;  %v4129_v10 = vpop.f32.mrf.mxu1  ;;  %v2639_v31 = vadd.f32 1.0, %v2607_v48  ;;  %v2608_v4 = vunpack.c.l.bf16 %v2577_v20  ;;  %v2609_v34 = vunpack.c.h.bf16 %v2577_v20 }
 0x85b   : > { %v4081_v51 = vadd.f32 %v4080_v41, %v3936_v32  ;;  %v3689_v2 = vunpack.c.l.bf16 %v3626_v1  ;;  %v3690_v7 = vunpack.c.h.bf16 %v3626_v1 }
 0x85c   : > { %v2656_v28 = vpack.c.bf16 %v2639_v31, %v2638_v26  ;;  %v2640_v30 = vadd.f32 1.0, %v2608_v4  ;;  %v2641_v35 = vadd.f32 1.0, %v2609_v34 }
 0x85d   : > { %v4130_v16 = vadd.f32 %v4129_v10, %v4081_v51  ;;  %v3721_v40 = vmul.f32 %v3689_v2, %v3657_v45  ;;  %v3722_v11 = vmul.f32 %v3690_v7, %v3658_v61  ;;  %v8615_v51 = vld [vmem:[#allocation8_spill] sm:$0xff]  ;;  %v8616_v61 = vld [vmem:[#allocation9_spill] sm:$0xff] }
 0x85e   : > { %v2657_v47 = vpack.c.bf16 %v2641_v35, %v2640_v30  ;;  %v2718_v39 = vunpack.c.l.bf16 %v2656_v28  ;;  %v2719_v21 = vunpack.c.h.bf16 %v2656_v28 }
 0x85f   : > { %v4164_v62 = vadd.f32 %v8086_v53, %v4130_v16  ;;  %v3737_v43 = vpack.c.bf16 %v3721_v40, %v3719_v33  ;;  %v3738_v46 = vpack.c.bf16 %v3722_v11, %v3720_v60 }
 0x860   : > { %v2720_v16 = vunpack.c.l.bf16 %v2657_v47  ;;  %v2721_v9 = vunpack.c.h.bf16 %v2657_v47  ;;  %v2750_v18 = vmul.f32 %v2718_v39, %v2686_v3  ;;  %v2751_v45 = vmul.f32 %v2719_v21, %v2687_v37 }
 0x861   : > { %v8123_v36 = vadd.f32 %v4164_v62, %v8614_v29  ;;  %3910 = vmatmul.bf16.gmra.mxu2 %v3737_v43  ;;  %3959 = vmatmul.bf16.gmra.mxu3 %v3738_v46 }
 0x862   : > { %v4082_v57 = vpop.f32.mrf.mxu0  ;;  %v4131_v44 = vpop.f32.mrf.mxu1  ;;  %v2752_v14 = vmul.f32 %v2720_v16, %v2688_v22  ;;  %v2753_v42 = vmul.f32 %v2721_v9, %v2689_v0  ;;  %v8619_v16 = vld [vmem:[#allocation15_spill] sm:$0xff] }
 0x863   : > { %v4083_v27 = vadd.f32 %v4082_v57, %v3938_v55  ;;  %4202 = vadd.xlane.f32.xlu1 %v8123_v36 }
 0x864   : > { %v2768_v1 = vpack.c.bf16 %v2752_v14, %v2750_v18  ;;  %v2769_v25 = vpack.c.bf16 %v2753_v42, %v2751_v45 }
 0x865   : > { %v4132_v32 = vadd.f32 %v4131_v44, %v4083_v27 }
 0x866   : > { %4104 = vmatmul.bf16.gmra.mxu0 %v2768_v1  ;;  %4153 = vmatmul.bf16.gmra.mxu1 %v2769_v25 }
 0x867   : > { %v4165_v41 = vadd.f32 %v8086_v53, %v4132_v32  ;;  %v3940_v49 = vpop.f32.mrf.mxu3 }
 0x868   : > { %v3891_v10 = vpop.f32.mrf.mxu2 }
 0x869   : > { %v8131_v50 = vadd.f32 %v4165_v41, %v8615_v51  ;;  %v3941_v52 = vadd.f32 %v3940_v49, %v3891_v10  ;;  %v8618_v10 = vld [vmem:[#allocation10_spill] sm:$0xff] }
 0x86b   : > { %4204 = vadd.xlane.f32.xlu2 %v8131_v50 }
 0x86f   : > { %v4085_v12 = vpop.f32.mrf.mxu0  ;;  %v4134_v62 = vpop.f32.mrf.mxu1 }
 0x870   : > { %v4086_v55 = vadd.f32 %v4085_v12, %v3941_v52  ;;  %v3893_v56 = vpop.f32.mrf.mxu2  ;;  %v3942_v29 = vpop.f32.mrf.mxu3 }
 0x871   : > { %v3943_v57 = vadd.f32 %v3942_v29, %v3893_v56 }
 0x872   : > { %v4135_v6 = vadd.f32 %v4134_v62, %v4086_v55  ;;  %v8620_v55 = vld [vmem:[#allocation16_spill] sm:$0xff] }
 0x874   : > { %v4166_v5 = vadd.f32 %v8086_v53, %v4135_v6 }
 0x876   : > { %v8136_v24 = vadd.f32 %v4166_v5, %v8616_v61  ;;  %v8621_v61 = vld [vmem:[#allocation19_spill] sm:$0xff] }
 0x877   : > { %v4087_v2 = vpop.f32.mrf.mxu0  ;;  %v4136_v7 = vpop.f32.mrf.mxu1 }
 0x878   : > { %4206 = vadd.xlane.f32.xlu2 %v8136_v24  ;;  %v4088_v60 = vadd.f32 %v4087_v2, %v3943_v57 }
 0x87a   : > { %v4137_v11 = vadd.f32 %v4136_v7, %v4088_v60 }
 0x87c   : > { %v4167_v4 = vadd.f32 %v8086_v53, %v4137_v11 }
 0x87e   : > { %v8154_v49 = vadd.f32 %v4167_v4, %v8618_v10 }
 0x882   : > { %v3896_v19 = vpop.f32.mrf.mxu2  ;;  %v3945_v17 = vpop.f32.mrf.mxu3 }
 0x883   : > { %v3946_v44 = vadd.f32 %v3945_v17, %v3896_v19 }
 0x884   : > { %v4090_v27 = vpop.f32.mrf.mxu0  ;;  %v4139_v20 = vpop.f32.mrf.mxu1 }
 0x885   : > { %v4091_v43 = vadd.f32 %v4090_v27, %v3946_v44 }
 0x887   : > { %v4140_v41 = vadd.f32 %v4139_v20, %v4091_v43  ;;  %v8622_v43 = vld [vmem:[#allocation20_spill] sm:$0xff] }
 0x889   : > { %v4168_v21 = vadd.f32 %v8086_v53, %v4140_v41 }
 0x88a   : > { %v3898_v38 = vpop.f32.mrf.mxu2  ;;  %v3947_v26 = vpop.f32.mrf.mxu3 }
 0x88b   : > { %v3948_v34 = vadd.f32 %v3947_v26, %v3898_v38 }
 0x88c   : > { %v4092_v30 = vpop.f32.mrf.mxu0 }
 0x88d   : > { %v4093_v35 = vadd.f32 %v4092_v30, %v3948_v34 }
 0x896   : > { %v3901_v51 = vpop.f32.mrf.mxu2  ;;  %v3950_v47 = vpop.f32.mrf.mxu3 }
 0x897   : > { %v3951_v37 = vadd.f32 %v3950_v47, %v3901_v51 }
 0x899   : > { %v4095_v9 = vpop.f32.mrf.mxu0 }
 0x89a   : > { %v4096_v12 = vadd.f32 %v4095_v9, %v3951_v37 }
 0x89e   : > { %v3903_v1 = vpop.f32.mrf.mxu2  ;;  %v3952_v25 = vpop.f32.mrf.mxu3 }
 0x89f   : > { %v3953_v6 = vadd.f32 %v3952_v25, %v3903_v1  ;;  %v5284_v1 = vld [vmem:[%s8436_s6 + $0x38] sm:$0xff] }
 0x8a0   : > { %4619 = vmatpush.bf16.msrb.mxu2 %v5284_v1 }
 0x8a1   : > { %v4097_v5 = vpop.f32.mrf.mxu0 }
 0x8a2   : > { %v4098_v7 = vadd.f32 %v4097_v5, %v3953_v6  ;;  %v5283_v6 = vld [vmem:[%s8436_s6 + $0x30] sm:$0xff] }
 0x8a4   : > { %4620 = vmatpush.bf16.msrb.mxu2 %v5283_v6  ;;  %v8270_v6 = vld [vmem:[%s8437_s7 + $0x20] ss:$0 sm:$0xff] }
 0x8a6   : > { %v3906_v17 = vpop.f32.mrf.mxu2  ;;  %v3955_v57 = vpop.f32.mrf.mxu3 }
 0x8aa   : > { %v4100_v11 = vpop.f32.mrf.mxu0 }
 0x8ae   : > { %v4195_v33 = vpop.xlane.xlu0 %4194  ;;  %v3957_v34 = vpop.f32.mrf.mxu3 }
 0x8af   : > { %v4226_v48 = vmul.f32 %v4195_v33, %v8617_v54 }
 0x8b1   : > { %v8141_v40 = vsub.f32 %v8094_v15, %v4226_v48  ;;  %v3956_v48 = vadd.f32 %v3955_v57, %v3906_v17 }
 0x8b2   : > { %v4102_v30 = vpop.f32.mrf.mxu0 }
 0x8b3   : > { %v4258_v13 = vmul.f32 %v8141_v40, %v8141_v40  ;;  %v4197_v31 = vpop.xlane.xlu1 %4196  ;;  %v4101_v44 = vadd.f32 %v4100_v11, %v3956_v48 }
 0x8b4   : > { %v4227_v32 = vmul.f32 %v4197_v31, %v8617_v54 }
 0x8b5   : > { %4274 = vadd.xlane.f32.xlu0 %v4258_v13 }
 0x8b6   : > { %v8147_v46 = vsub.f32 %v8103_v23, %v4227_v32  ;;  %v4141_v23 = vpop.f32.mrf.mxu1 }
 0x8b7   : > { %v4199_v15 = vpop.xlane.xlu2 %4198  ;;  %v4142_v3 = vadd.f32 %v4141_v23, %v4093_v35  ;;  %v8623_v23 = vld [vmem:[#allocation22_spill] sm:$0xff] }
 0x8b8   : > { %v4259_v28 = vmul.f32 %v8147_v46, %v8147_v46  ;;  %v4228_v8 = vmul.f32 %v4199_v15, %v8617_v54  ;;  %v3908_v15 = vpop.f32.mrf.mxu2 }
 0x8b9   : > { %v4169_v14 = vadd.f32 %v8086_v53, %v4142_v3 }
 0x8ba   : > { %4276 = vadd.xlane.f32.xlu1 %v4259_v28  ;;  %v8157_v59 = vsub.f32 %v8108_v63, %v4228_v8  ;;  %v8165_v63 = vadd.f32 %v4168_v21, %v8619_v16  ;;  %v3958_v28 = vadd.f32 %v3957_v34, %v3908_v15 }
 0x8bb   : > { %v8175_v62 = vadd.f32 %v4169_v14, %v8620_v55  ;;  %v8624_v14 = vld [vmem:[#allocation23_spill] sm:$0xff] }
 0x8bc   : > { %v4260_v39 = vmul.f32 %v8157_v59, %v8157_v59 }
 0x8bd   : > { %4208 = vadd.xlane.f32.xlu0 %v8154_v49 }
 0x8be   : > { %v4144_v45 = vpop.f32.mrf.mxu1 }
 0x8bf   : > { %v4201_v52 = vpop.xlane.xlu0 %4200  ;;  %v4145_v42 = vadd.f32 %v4144_v45, %v4096_v12 }
 0x8c0   : > { %v4229_v22 = vmul.f32 %v4201_v52, %v8617_v54 }
 0x8c2   : > { %4278 = vadd.xlane.f32.xlu1 %v4260_v39  ;;  %v8168_v0 = vsub.f32 %v8113_v58, %v4229_v22  ;;  %v4170_v58 = vadd.f32 %v8086_v53, %v4145_v42  ;;  %v8625_v42 = vld [vmem:[#allocation27_spill] sm:$0xff] }
 0x8c4   : > { %v4261_v18 = vmul.f32 %v8168_v0, %v8168_v0  ;;  %v8180_v56 = vadd.f32 %v4170_v58, %v8621_v61  ;;  %v5282_v61 = vld [vmem:[%s8436_s6 + $0x28] sm:$0xff] }
 0x8c5   : > { %4210 = vadd.xlane.f32.xlu0 %v8165_v63  ;;  %4621 = vmatpush.bf16.msrb.mxu2 %v5282_v61 }
 0x8c6   : > { %4280 = vadd.xlane.f32.xlu2 %v4261_v18  ;;  %v4146_v2 = vpop.f32.mrf.mxu1 }
 0x8c7   : > { %v4147_v60 = vadd.f32 %v4146_v2, %v4098_v7  ;;  %v5281_v7 = vld [vmem:[%s8436_s6 + $0x20] sm:$0xff] }
 0x8c9   : > { %v4171_v13 = vadd.f32 %v8086_v53, %v4147_v60  ;;  %4622 = vmatpush.bf16.msrb.mxu2 %v5281_v7 }
 0x8ca   : > { %4212 = vadd.xlane.f32.xlu1 %v8175_v62 }
 0x8cb   : > { %v8197_v4 = vadd.f32 %v4171_v13, %v8622_v43 }
 0x8ce   : > { %v4149_v31 = vpop.f32.mrf.mxu1 }
 0x8cf   : > { %v4150_v32 = vadd.f32 %v4149_v31, %v4101_v44 }
 0x8d1   : > { %v4172_v8 = vadd.f32 %v8086_v53, %v4150_v32 }
 0x8d2   : > { %4214 = vadd.xlane.f32.xlu1 %v8180_v56 }
 0x8d3   : > { %v8203_v35 = vadd.f32 %v4172_v8, %v8623_v23 }
 0x8d6   : > { %v4203_v29 = vpop.xlane.xlu1 %4202  ;;  %v4151_v21 = vpop.f32.mrf.mxu1 }
 0x8d7   : > { %v4230_v19 = vmul.f32 %v4203_v29, %v8617_v54 }
 0x8d9   : > { %v8185_v33 = vsub.f32 %v8123_v36, %v4230_v19 }
 0x8db   : > { %v4262_v27 = vmul.f32 %v8185_v33, %v8185_v33 }
 0x8dd   : > { %4282 = vadd.xlane.f32.xlu2 %v4262_v27 }
 0x8de   : > { %v4205_v20 = vpop.xlane.xlu2 %4204 }
 0x8df   : > { %v4231_v38 = vmul.f32 %v4205_v20, %v8617_v54  ;;  %v5280_v20 = vld [vmem:[%s8436_s6 + $0x18] sm:$0xff] }
 0x8e0   : > { %4623 = vmatpush.bf16.msrb.mxu2 %v5280_v20 }
 0x8e1   : > { %v8192_v26 = vsub.f32 %v8131_v50, %v4231_v38  ;;  %v4103_v50 = vadd.f32 %v4102_v30, %v3958_v28 }
 0x8e3   : > { %v4263_v36 = vmul.f32 %v8192_v26, %v8192_v26  ;;  %v4152_v52 = vadd.f32 %v4151_v21, %v4103_v50  ;;  %v4105_v22 = vpop.f32.mrf.mxu0  ;;  %v4154_v12 = vpop.f32.mrf.mxu1  ;;  %v5278_v21 = vld [vmem:[%s8436_s6 + $0x8] sm:$0xff] }
 0x8e4   : > { %v3911_v51 = vpop.f32.mrf.mxu2  ;;  %v3960_v47 = vpop.f32.mrf.mxu3 }
 0x8e5   : > { %4284 = vadd.xlane.f32.xlu0 %v4263_v36  ;;  %4216 = vadd.xlane.f32.xlu2 %v8197_v4  ;;  %v3961_v3 = vadd.f32 %v3960_v47, %v3911_v51  ;;  %v4173_v9 = vadd.f32 %v8086_v53, %v4152_v52 }
 0x8e7   : > { %v4106_v16 = vadd.f32 %v4105_v22, %v3961_v3  ;;  %v8213_v45 = vadd.f32 %v4173_v9, %v8624_v14 }
 0x8e9   : > { %v4155_v18 = vadd.f32 %v4154_v12, %v4106_v16 }
 0x8eb   : > { %v4207_v41 = vpop.xlane.xlu2 %4206  ;;  %v4107_v43 = vpop.f32.mrf.mxu0 }
 0x8ec   : > { %v4232_v10 = vmul.f32 %v4207_v41, %v8617_v54  ;;  %v3913_v60 = vpop.f32.mrf.mxu2  ;;  %v3962_v48 = vpop.f32.mrf.mxu3 }
 0x8ed   : > { %4218 = vadd.xlane.f32.xlu2 %v8203_v35  ;;  %v3963_v38 = vadd.f32 %v3962_v48, %v3913_v60  ;;  %v4156_v52 = vpop.f32.mrf.mxu1  ;;  %v8286_v60 = vld [vmem:[%s8437_s7 + $0x21] ss:$0 sm:$0xff] }
 0x8ee   : > { %v8206_v39 = vsub.f32 %v8136_v24, %v4232_v10  ;;  %v4174_v24 = vadd.f32 %v8086_v53, %v4155_v18 }
 0x8ef   : > { %v4108_v8 = vadd.f32 %v4107_v43, %v3963_v38 }
 0x8f0   : > { %v4264_v37 = vmul.f32 %v8206_v39, %v8206_v39  ;;  %v8218_v55 = vadd.f32 %v4174_v24, %v8625_v42 }
 0x8f1   : > { %v4157_v22 = vadd.f32 %v4156_v52, %v4108_v8 }
 0x8f2   : > { %4286 = vadd.xlane.f32.xlu0 %v4264_v37 }
 0x8f3   : > { %v4175_v1 = vadd.f32 %v8086_v53, %v4157_v22 }
 0x8fa   : > { %4220 = vadd.xlane.f32.xlu0 %v8213_v45 }
 0x902   : > { %4222 = vadd.xlane.f32.xlu0 %v8218_v55 }
 0x928   : > { %v4275_v25 = vpop.xlane.xlu0 %4274 }
 0x929   : > { %v4306_v58 = vmul.f32 %v4275_v25, %v8617_v54 }
 0x92b   : > { %v4322_v5 = vadd.f32 1e-12, %v4306_v58 }
 0x92d   : > { %5576 = vrsqrt.f32 %v4322_v5  ;;  %v4277_v29 = vpop.xlane.xlu1 %4276  ;;  %vm4344_vm2 = vweird.f32 %v4322_v5 }
 0x92e   : > { %v4307_v2 = vmul.f32 %v4277_v29, %v8617_v54 }
 0x930   : > { %v4209_v19 = vpop.xlane.xlu0 %4208  ;;  %v4323_v17 = vadd.f32 1e-12, %v4307_v2 }
 0x931   : > { %v4233_v57 = vmul.f32 %v4209_v19, %v8617_v54 }
 0x932   : > { %5578 = vrsqrt.f32 %v4323_v17  ;;  %vm4354_vm5 = vweird.f32 %v4323_v17 }
 0x933   : > { %v5577_v27 = vpop.eup %5576  ;;  %v8237_v11 = vsub.f32 %v8154_v49, %v4233_v57  ;;  %v5279_v49 = vld [vmem:[%s8436_s6 + $0x10] sm:$0xff]  ;;  %v8626_v57 = vld [vmem:[#allocation29_spill] sm:$0xff] }
 0x934   : > { %v4339_v44 = vmul.f32 %v5577_v27, %v4322_v5  ;;  %vm4345_vm1 = vweird.f32 %v5577_v27  ;;  %4624 = vmatpush.bf16.msrb.mxu2 %v5279_v49 }
 0x935   : > { %v4265_v13 = vmul.f32 %v8237_v11, %v8237_v11  ;;  %v4279_v32 = vpop.xlane.xlu1 %4278  ;;  %vm4346_vm3 = vmor %vm4344_vm2, %vm4345_vm1 }
 0x936   : > { %v4340_v31 = vmul.f32 %v5577_v27, %v4339_v44  ;;  %v4308_v36 = vmul.f32 %v4279_v32, %v8617_v54 }
 0x937   : > { %4288 = vadd.xlane.f32.xlu1 %v4265_v13 }
 0x938   : > { %v4341_v15 = vmul.f32 0.5, %v4340_v31  ;;  %v4211_v34 = vpop.xlane.xlu0 %4210  ;;  %v5579_v28 = vpop.eup %5578  ;;  %v8248_v30 = vadd.f32 1e-12, %v4308_v36  ;;  %4625 = vmatpush.bf16.msrb.mxu2 %v5278_v21 }
 0x939   : > { %v4234_v41 = vmul.f32 %v4211_v34, %v8617_v54  ;;  %v4349_v10 = vmul.f32 %v5579_v28, %v4323_v17  ;;  %v4281_v23 = vpop.xlane.xlu2 %4280  ;;  %vm4355_vm4 = vweird.f32 %v5579_v28  ;;  %v8281_v17 = vadd.f32 %v4175_v1, %v8626_v57 }
 0x93a   : > { %v4342_v50 = vsub.f32 1.5, %v4341_v15  ;;  %5580 = vrsqrt.f32 %v8248_v30  ;;  %v4309_v47 = vmul.f32 %v4281_v23, %v8617_v54  ;;  %vm4356_vm6 = vmor %vm4354_vm5, %vm4355_vm4  ;;  %vm4364_vm9 = vweird.f32 %v8248_v30 }
 0x93b   : > { %v8253_v51 = vsub.f32 %v8165_v63, %v4234_v41  ;;  %v4350_v37 = vmul.f32 %v5579_v28, %v4349_v10 }
 0x93c   : > { %v4343_v3 = vmul.f32 %v5577_v27, %v4342_v50  ;;  %v4325_v9 = vadd.f32 1e-12, %v4309_v47 }
 0x93d   : > { %v4266_v16 = vmul.f32 %v8253_v51, %v8253_v51  ;;  %v4351_v63 = vmul.f32 0.5, %v4350_v37  ;;  %v4213_v18 = vpop.xlane.xlu1 %4212 }
 0x93e   : > { %v4347_v12 = vsel %vm4346_vm3, %v5577_v27, %v4343_v3  ;;  %5582 = vrsqrt.f32 %v4325_v9  ;;  %v4235_v14 = vmul.f32 %v4213_v18, %v8617_v54  ;;  %vm4374_vm11 = vweird.f32 %v4325_v9 }
 0x93f   : > { %4290 = vadd.xlane.f32.xlu1 %v4266_v16  ;;  %v4352_v24 = vsub.f32 1.5, %v4351_v63  ;;  %v4498_v25 = vmul.f32 %v4347_v12, %v8141_v40  ;;  %v5277_v40 = vld [vmem:[%s8436_s6] sm:$0xff] }
 0x940   : > { %v5581_v42 = vpop.eup %5580  ;;  %v8265_v58 = vsub.f32 %v8175_v62, %v4235_v14  ;;  %4626 = vmatpush.bf16.msrb.mxu2 %v5277_v40 }
 0x941   : > { %v4353_v5 = vmul.f32 %v5579_v28, %v4352_v24  ;;  %v4359_v61 = vmul.f32 %v5581_v42, %v8248_v30  ;;  %v4514_v7 = vmul.f32 %v4498_v25, %v8270_v6  ;;  %vm4365_vm7 = vweird.f32 %v5581_v42 }
 0x942   : > { %v4267_v29 = vmul.f32 %v8265_v58, %v8265_v58  ;;  %vm4366_vm10 = vmor %vm4364_vm9, %vm4365_vm7 }
 0x943   : > { %v4357_v2 = vsel %vm4356_vm6, %v5579_v28, %v4353_v5  ;;  %v4360_v53 = vmul.f32 %v5581_v42, %v4359_v61  ;;  %v4530_v13 = vadd.f32 %v4514_v7, %v8286_v60 }
 0x944   : > { %v5583_v62 = vpop.eup %5582  ;;  %v4499_v19 = vmul.f32 %v4357_v2, %v8147_v46  ;;  %4292 = vadd.xlane.f32.xlu2 %v4267_v29 }
 0x945   : > { %v4361_v48 = vmul.f32 0.5, %v4360_v53  ;;  %v4369_v27 = vmul.f32 %v5583_v62, %v4325_v9  ;;  %v4215_v20 = vpop.xlane.xlu1 %4214  ;;  %vm4375_vm8 = vweird.f32 %v5583_v62 }
 0x946   : > { %v4515_v44 = vmul.f32 %v4499_v19, %v8270_v6  ;;  %v4236_v38 = vmul.f32 %v4215_v20, %v8617_v54  ;;  %vm4376_vm12 = vmor %vm4374_vm11, %vm4375_vm8 }
 0x947   : > { %4224 = vadd.xlane.f32.xlu1 %v8281_v17  ;;  %v4370_v46 = vmul.f32 %v5583_v62, %v4369_v27  ;;  %v4362_v32 = vsub.f32 1.5, %v4361_v48 }
 0x948   : > { %v4531_v31 = vadd.f32 %v4515_v44, %v8286_v60  ;;  %v8294_v36 = vsub.f32 %v8180_v56, %v4236_v38 }
 0x949   : > { %v4371_v49 = vmul.f32 0.5, %v4370_v46  ;;  %v4363_v28 = vmul.f32 %v5581_v42, %v4362_v32 }
 0x94a   : > { %v4546_v43 = vpack.c.bf16 %v4531_v31, %v4530_v13  ;;  %v4268_v15 = vmul.f32 %v8294_v36, %v8294_v36 }
 0x94b   : > { %v4372_v34 = vsub.f32 1.5, %v4371_v49  ;;  %v4367_v10 = vsel %vm4366_vm10, %v5581_v42, %v4363_v28 }
 0x94c   : > { %4627 = vmatmul.bf16.vlgmr.msrb.gmra.mxu2 %v4546_v43  ;;  %4294 = vadd.xlane.f32.xlu2 %v4268_v15  ;;  %v4500_v47 = vmul.f32 %v4367_v10, %v8157_v59 }
 0x94d   : > { %v4373_v41 = vmul.f32 %v5583_v62, %v4372_v34 }
 0x94e   : > { %v4516_v9 = vmul.f32 %v4500_v47, %v8270_v6 }
 0x94f   : > { %v4377_v23 = vsel %vm4376_vm12, %v5583_v62, %v4373_v41 }
 0x950   : > { %v4283_v8 = vpop.xlane.xlu2 %4282  ;;  %v4501_v21 = vmul.f32 %v4377_v23, %v8168_v0  ;;  %v4532_v14 = vadd.f32 %v4516_v9, %v8286_v60 }
 0x951   : > { %v4310_v50 = vmul.f32 %v4283_v8, %v8617_v54 }
 0x952   : > { %v4517_v63 = vmul.f32 %v4501_v21, %v8270_v6 }
 0x953   : > { %v4326_v56 = vadd.f32 1e-12, %v4310_v50 }
 0x954   : > { %v4533_v24 = vadd.f32 %v4517_v63, %v8286_v60 }
 0x955   : > { %5584 = vrsqrt.f32 %v4326_v56  ;;  %vm4384_vm14 = vweird.f32 %v4326_v56 }
 0x956   : > { %v4547_v25 = vpack.c.bf16 %v4533_v24, %v4532_v14 }
 0x958   : > { %v4285_v52 = vpop.xlane.xlu0 %4284  ;;  %v4217_v3 = vpop.xlane.xlu2 %4216 }
 0x959   : > { %v4311_v37 = vmul.f32 %v4285_v52, %v8617_v54  ;;  %v4237_v30 = vmul.f32 %v4217_v3, %v8617_v54 }
 0x95b   : > { %v5585_v22 = vpop.eup %5584  ;;  %v4327_v16 = vadd.f32 1e-12, %v4311_v37  ;;  %v8305_v12 = vsub.f32 %v8197_v4, %v4237_v30 }
 0x95c   : > { %v4379_v18 = vmul.f32 %v5585_v22, %v4326_v56  ;;  %4632 = vmatmul.bf16.gmra.mxu2 %v4547_v25  ;;  %vm4385_vm13 = vweird.f32 %v5585_v22 }
 0x95d   : > { %5586 = vrsqrt.f32 %v4327_v16  ;;  %v4269_v59 = vmul.f32 %v8305_v12, %v8305_v12  ;;  %vm4386_vm15 = vmor %vm4384_vm14, %vm4385_vm13  ;;  %vm4394_vm1 = vweird.f32 %v4327_v16 }
 0x95e   : > { %v4380_v0 = vmul.f32 %v5585_v22, %v4379_v18 }
 0x95f   : > { %4296 = vadd.xlane.f32.xlu0 %v4269_v59 }
 0x960   : > { %v4381_v42 = vmul.f32 0.5, %v4380_v0  ;;  %v4219_v1 = vpop.xlane.xlu2 %4218 }
 0x961   : > { %v4238_v4 = vmul.f32 %v4219_v1, %v8617_v54 }
 0x962   : > { %v4382_v5 = vsub.f32 1.5, %v4381_v42 }
 0x963   : > { %v5587_v61 = vpop.eup %5586  ;;  %v8315_v29 = vsub.f32 %v8203_v35, %v4238_v4 }
 0x964   : > { %v4383_v2 = vmul.f32 %v5585_v22, %v4382_v5  ;;  %v4389_v53 = vmul.f32 %v5587_v61, %v4327_v16  ;;  %vm4395_vm0 = vweird.f32 %v5587_v61 }
 0x965   : > { %v4287_v40 = vpop.xlane.xlu0 %4286  ;;  %v4270_v62 = vmul.f32 %v8315_v29, %v8315_v29  ;;  %vm4396_vm2 = vmor %vm4394_vm1, %vm4395_vm0 }
 0x966   : > { %v4390_v7 = vmul.f32 %v5587_v61, %v4389_v53  ;;  %v4387_v19 = vsel %vm4386_vm15, %v5585_v22, %v4383_v2  ;;  %v4312_v8 = vmul.f32 %v4287_v40, %v8617_v54 }
 0x967   : > { %4298 = vadd.xlane.f32.xlu1 %v4270_v62  ;;  %v4502_v27 = vmul.f32 %v4387_v19, %v8185_v33 }
 0x968   : > { %v4391_v57 = vmul.f32 0.5, %v4390_v7  ;;  %v4328_v41 = vadd.f32 1e-12, %v4312_v8 }
 0x969   : > { %v4518_v31 = vmul.f32 %v4502_v27, %v8270_v6 }
 0x96a   : > { %v4392_v48 = vsub.f32 1.5, %v4391_v57  ;;  %5588 = vrsqrt.f32 %v4328_v41  ;;  %vm4404_vm4 = vweird.f32 %v4328_v41 }
 0x96b   : > { %v4534_v33 = vadd.f32 %v4518_v31, %v8286_v60 }
 0x96c   : > { %v4393_v20 = vmul.f32 %v5587_v61, %v4392_v48 }
 0x96d   : > { %v4221_v35 = vpop.xlane.xlu0 %4220 }
 0x96e   : > { %v4239_v44 = vmul.f32 %v4221_v35, %v8617_v54  ;;  %v4397_v38 = vsel %vm4396_vm2, %v5587_v61, %v4393_v20 }
 0x96f   : > { %v4503_v46 = vmul.f32 %v4397_v38, %v8192_v26 }
 0x970   : > { %v8323_v13 = vsub.f32 %v8213_v45, %v4239_v44  ;;  %v5589_v50 = vpop.eup %5588 }
 0x971   : > { %v4519_v49 = vmul.f32 %v4503_v46, %v8270_v6  ;;  %v4399_v56 = vmul.f32 %v5589_v50, %v4328_v41  ;;  %vm4405_vm3 = vweird.f32 %v5589_v50 }
 0x972   : > { %v4271_v32 = vmul.f32 %v8323_v13, %v8323_v13  ;;  %vm4406_vm5 = vmor %vm4404_vm4, %vm4405_vm3 }
 0x973   : > { %v4535_v43 = vadd.f32 %v4519_v49, %v8286_v60  ;;  %v4400_v10 = vmul.f32 %v5589_v50, %v4399_v56 }
 0x974   : > { %4300 = vadd.xlane.f32.xlu2 %v4271_v32 }
 0x975   : > { %v4223_v15 = vpop.xlane.xlu0 %4222  ;;  %v4548_v28 = vpack.c.bf16 %v4535_v43, %v4534_v33  ;;  %v4401_v52 = vmul.f32 0.5, %v4400_v10 }
 0x976   : > { %v4240_v34 = vmul.f32 %v4223_v15, %v8617_v54 }
 0x977   : > { %4637 = vmatmul.bf16.gmra.mxu2 %v4548_v28 }
 0x978   : > { %v8333_v26 = vsub.f32 %v8218_v55, %v4240_v34  ;;  %v4402_v55 = vsub.f32 1.5, %v4401_v52 }
 0x97a   : > { %v4272_v45 = vmul.f32 %v8333_v26, %v8333_v26  ;;  %v4403_v16 = vmul.f32 %v5589_v50, %v4402_v55 }
 0x97c   : > { %4302 = vadd.xlane.f32.xlu0 %v4272_v45  ;;  %v4407_v0 = vsel %vm4406_vm5, %v5589_v50, %v4403_v16  ;;  %v8358_v50 = vld [vmem:[%s8437_s7 + $0x22] ss:$0 sm:$0xff] }
 0x97d   : > { %v4504_v5 = vmul.f32 %v4407_v0, %v8206_v39 }
 0x97f   : > { %v4520_v39 = vmul.f32 %v4504_v5, %v8270_v6 }
 0x981   : > { %v4536_v46 = vadd.f32 %v4520_v39, %v8286_v60 }
 0x9aa   : > { %v4289_v23 = vpop.xlane.xlu1 %4288 }
 0x9ab   : > { %v4313_v47 = vmul.f32 %v4289_v23, %v8617_v54 }
 0x9ad   : > { %v4329_v21 = vadd.f32 1e-12, %v4313_v47 }
 0x9af   : > { %5590 = vrsqrt.f32 %v4329_v21  ;;  %vm4414_vm7 = vweird.f32 %v4329_v21 }
 0x9b2   : > { %v4291_v3 = vpop.xlane.xlu1 %4290 }
 0x9b3   : > { %v4314_v37 = vmul.f32 %v4291_v3, %v8617_v54 }
 0x9b5   : > { %v5591_v30 = vpop.eup %5590  ;;  %v4330_v22 = vadd.f32 1e-12, %v4314_v37 }
 0x9b6   : > { %v4409_v9 = vmul.f32 %v5591_v30, %v4329_v21  ;;  %vm4415_vm6 = vweird.f32 %v5591_v30 }
 0x9b7   : > { %5592 = vrsqrt.f32 %v4330_v22  ;;  %v4293_v18 = vpop.xlane.xlu2 %4292  ;;  %vm4416_vm8 = vmor %vm4414_vm7, %vm4415_vm6  ;;  %vm4424_vm10 = vweird.f32 %v4330_v22 }
 0x9b8   : > { %v4410_v63 = vmul.f32 %v5591_v30, %v4409_v9  ;;  %v4315_v59 = vmul.f32 %v4293_v18, %v8617_v54 }
 0x9ba   : > { %v4411_v14 = vmul.f32 0.5, %v4410_v63  ;;  %v4225_v24 = vpop.xlane.xlu1 %4224  ;;  %v4331_v42 = vadd.f32 1e-12, %v4315_v59 }
 0x9bb   : > { %v4241_v1 = vmul.f32 %v4225_v24, %v8617_v54 }
 0x9bc   : > { %v4412_v25 = vsub.f32 1.5, %v4411_v14  ;;  %5594 = vrsqrt.f32 %v4331_v42  ;;  %vm4434_vm13 = vweird.f32 %v4331_v42 }
 0x9bd   : > { %v5593_v4 = vpop.eup %5592  ;;  %v8344_v61 = vsub.f32 %v8281_v17, %v4241_v1 }
 0x9be   : > { %v4413_v2 = vmul.f32 %v5591_v30, %v4412_v25  ;;  %v4419_v53 = vmul.f32 %v5593_v4, %v4330_v22  ;;  %vm4425_vm9 = vweird.f32 %v5593_v4 }
 0x9bf   : > { %v4273_v40 = vmul.f32 %v8344_v61, %v8344_v61  ;;  %v4295_v19 = vpop.xlane.xlu2 %4294  ;;  %vm4426_vm11 = vmor %vm4424_vm10, %vm4425_vm9 }
 0x9c0   : > { %v4417_v62 = vsel %vm4416_vm8, %v5591_v30, %v4413_v2  ;;  %v4420_v7 = vmul.f32 %v5593_v4, %v4419_v53  ;;  %v4316_v48 = vmul.f32 %v4295_v19, %v8617_v54 }
 0x9c1   : > { %v4505_v57 = vmul.f32 %v4417_v62, %v8237_v11  ;;  %4304 = vadd.xlane.f32.xlu1 %v4273_v40 }
 0x9c2   : > { %v4421_v27 = vmul.f32 0.5, %v4420_v7  ;;  %v5595_v17 = vpop.eup %5594  ;;  %v4332_v20 = vadd.f32 1e-12, %v4316_v48 }
 0x9c3   : > { %v4521_v35 = vmul.f32 %v4505_v57, %v8270_v6  ;;  %v4429_v38 = vmul.f32 %v5595_v17, %v4331_v42  ;;  %vm4435_vm12 = vweird.f32 %v5595_v17 }
 0x9c4   : > { %v4422_v44 = vsub.f32 1.5, %v4421_v27  ;;  %5596 = vrsqrt.f32 %v4332_v20  ;;  %vm4436_vm14 = vmor %vm4434_vm13, %vm4435_vm12  ;;  %vm4444_vm0 = vweird.f32 %v4332_v20 }
 0x9c5   : > { %v4537_v31 = vadd.f32 %v4521_v35, %v8286_v60  ;;  %v4430_v11 = vmul.f32 %v5595_v17, %v4429_v38 }
 0x9c6   : > { %v4423_v32 = vmul.f32 %v5593_v4, %v4422_v44 }
 0x9c7   : > { %v4549_v49 = vpack.c.bf16 %v4537_v31, %v4536_v46  ;;  %v4431_v43 = vmul.f32 0.5, %v4430_v11 }
 0x9c8   : > { %v4427_v33 = vsel %vm4426_vm11, %v5593_v4, %v4423_v32 }
 0x9c9   : > { %4642 = vmatmul.bf16.gmra.mxu2 %v4549_v49  ;;  %v4432_v15 = vsub.f32 1.5, %v4431_v43  ;;  %v4506_v28 = vmul.f32 %v4427_v33, %v8253_v51 }
 0x9ca   : > { %v5597_v34 = vpop.eup %5596 }
 0x9cb   : > { %v4433_v45 = vmul.f32 %v5595_v17, %v4432_v15  ;;  %v4439_v8 = vmul.f32 %v5597_v34, %v4332_v20  ;;  %v4522_v47 = vmul.f32 %v4506_v28, %v8270_v6  ;;  %vm4445_vm15 = vweird.f32 %v5597_v34 }
 0x9cc   : > { %vm4446_vm1 = vmor %vm4444_vm0, %vm4445_vm15 }
 0x9cd   : > { %v4437_v41 = vsel %vm4436_vm14, %v5595_v17, %v4433_v45  ;;  %v4440_v10 = vmul.f32 %v5597_v34, %v4439_v8  ;;  %v4538_v37 = vadd.f32 %v4522_v47, %v8286_v60 }
 0x9ce   : > { %v4507_v56 = vmul.f32 %v4437_v41, %v8265_v58 }
 0x9cf   : > { %v4628_v51 = vpop.f32.mrf.mxu2  ;;  %v4441_v58 = vmul.f32 0.5, %v4440_v10 }
 0x9d0   : > { %v4629_v52 = vadd.f32 %v4628_v51, %v8358_v50  ;;  %v4523_v55 = vmul.f32 %v4507_v56, %v8270_v6 }
 0x9d1   : > { %v4442_v16 = vsub.f32 1.5, %v4441_v58 }
 0x9d2   : > { %v4297_v23 = vpop.xlane.xlu0 %4296  ;;  %4668 = vst [vmem:[%s8368_s22] sm:$0xff] %v4629_v52  ;;  %v4539_v30 = vadd.f32 %v4523_v55, %v8286_v60 }
 0x9d3   : > { %v4317_v21 = vmul.f32 %v4297_v23, %v8617_v54  ;;  %v4443_v14 = vmul.f32 %v5597_v34, %v4442_v16 }
 0x9d4   : > { %v4550_v22 = vpack.c.bf16 %v4539_v30, %v4538_v37 }
 0x9d5   : > { %v4333_v3 = vadd.f32 1e-12, %v4317_v21  ;;  %v4447_v25 = vsel %vm4446_vm1, %v5597_v34, %v4443_v14 }
 0x9d6   : > { %v4508_v53 = vmul.f32 %v4447_v25, %v8294_v36 }
 0x9d7   : > { %5598 = vrsqrt.f32 %v4333_v3  ;;  %v4630_v0 = vpop.f32.mrf.mxu2  ;;  %vm4454_vm3 = vweird.f32 %v4333_v3 }
 0x9d8   : > { %v4631_v42 = vadd.f32 %v4630_v0, %v8358_v50  ;;  %v4524_v35 = vmul.f32 %v4508_v53, %v8270_v6 }
 0x9d9   : > { %4647 = vmatmul.bf16.gmra.mxu2 %v4550_v22 }
 0x9da   : > { %v4299_v9 = vpop.xlane.xlu1 %4298  ;;  %4669 = vst [vmem:[%s8368_s22 + $0x8] sm:$0xff] %v4631_v42  ;;  %v4540_v38 = vadd.f32 %v4524_v35, %v8286_v60 }
 0x9db   : > { %v4318_v63 = vmul.f32 %v4299_v9, %v8617_v54 }
 0x9dd   : > { %v5599_v18 = vpop.eup %5598  ;;  %v4334_v59 = vadd.f32 1e-12, %v4318_v63 }
 0x9de   : > { %v4449_v24 = vmul.f32 %v5599_v18, %v4333_v3  ;;  %vm4455_vm2 = vweird.f32 %v5599_v18 }
 0x9df   : > { %5600 = vrsqrt.f32 %v4334_v59  ;;  %v4633_v40 = vpop.f32.mrf.mxu2  ;;  %vm4456_vm4 = vmor %vm4454_vm3, %vm4455_vm2  ;;  %vm4464_vm6 = vweird.f32 %v4334_v59 }
 0x9e0   : > { %v4450_v1 = vmul.f32 %v5599_v18, %v4449_v24  ;;  %v4634_v57 = vadd.f32 %v4633_v40, %v8358_v50 }
 0x9e2   : > { %v4451_v4 = vmul.f32 0.5, %v4450_v1  ;;  %4670 = vst [vmem:[%s8368_s22 + $0x10] sm:$0xff] %v4634_v57 }
 0x9e4   : > { %v4452_v5 = vsub.f32 1.5, %v4451_v4 }
 0x9e5   : > { %v5601_v2 = vpop.eup %5600 }
 0x9e6   : > { %v4453_v62 = vmul.f32 %v5599_v18, %v4452_v5  ;;  %v4459_v7 = vmul.f32 %v5601_v2, %v4334_v59  ;;  %vm4465_vm5 = vweird.f32 %v5601_v2 }
 0x9e7   : > { %v4301_v19 = vpop.xlane.xlu2 %4300  ;;  %v4635_v31 = vpop.f32.mrf.mxu2  ;;  %vm4466_vm7 = vmor %vm4464_vm6, %vm4465_vm5 }
 0x9e8   : > { %v4319_v48 = vmul.f32 %v4301_v19, %v8617_v54  ;;  %v4457_v39 = vsel %vm4456_vm4, %v5599_v18, %v4453_v62  ;;  %v4460_v27 = vmul.f32 %v5601_v2, %v4459_v7  ;;  %v4636_v11 = vadd.f32 %v4635_v31, %v8358_v50 }
 0x9e9   : > { %v4509_v17 = vmul.f32 %v4457_v39, %v8305_v12 }
 0x9ea   : > { %v4335_v20 = vadd.f32 1e-12, %v4319_v48  ;;  %v4461_v36 = vmul.f32 0.5, %v4460_v27  ;;  %4671 = vst [vmem:[%s8368_s22 + $0x18] sm:$0xff] %v4636_v11 }
 0x9eb   : > { %v4525_v44 = vmul.f32 %v4509_v17, %v8270_v6 }
 0x9ec   : > { %5602 = vrsqrt.f32 %v4335_v20  ;;  %v4462_v32 = vsub.f32 1.5, %v4461_v36  ;;  %vm4474_vm9 = vweird.f32 %v4335_v20 }
 0x9ed   : > { %v4541_v46 = vadd.f32 %v4525_v44, %v8286_v60 }
 0x9ee   : > { %v4463_v12 = vmul.f32 %v5601_v2, %v4462_v32 }
 0x9ef   : > { %v4551_v49 = vpack.c.bf16 %v4541_v46, %v4540_v38  ;;  %v4303_v37 = vpop.xlane.xlu0 %4302 }
 0x9f0   : > { %v4467_v34 = vsel %vm4466_vm7, %v5601_v2, %v4463_v12  ;;  %v4320_v30 = vmul.f32 %v4303_v37, %v8617_v54 }
 0x9f1   : > { %4652 = vmatmul.bf16.gmra.mxu2 %v4551_v49  ;;  %v4510_v8 = vmul.f32 %v4467_v34, %v8315_v29 }
 0x9f2   : > { %v5603_v33 = vpop.eup %5602  ;;  %v4336_v22 = vadd.f32 1e-12, %v4320_v30 }
 0x9f3   : > { %v4469_v43 = vmul.f32 %v5603_v33, %v4335_v20  ;;  %vm4475_vm8 = vweird.f32 %v5603_v33  ;;  %v4526_v21 = vmul.f32 %v4510_v8, %v8270_v6 }
 0x9f4   : > { %vm4476_vm10 = vmor %vm4474_vm9, %vm4475_vm8  ;;  %5604 = vrsqrt.f32 %v4336_v22  ;;  %vm4484_vm12 = vweird.f32 %v4336_v22 }
 0x9f5   : > { %v4470_v15 = vmul.f32 %v5603_v33, %v4469_v43  ;;  %v4542_v52 = vadd.f32 %v4526_v21, %v8286_v60 }
 0x9f7   : > { %v4471_v28 = vmul.f32 0.5, %v4470_v15 }
 0x9f9   : > { %v4472_v45 = vsub.f32 1.5, %v4471_v28 }
 0x9fa   : > { %v4638_v56 = vpop.f32.mrf.mxu2 }
 0x9fb   : > { %v4473_v41 = vmul.f32 %v5603_v33, %v4472_v45  ;;  %v4639_v10 = vadd.f32 %v4638_v56, %v8358_v50 }
 0x9fd   : > { %v4477_v23 = vsel %vm4476_vm10, %v5603_v33, %v4473_v41  ;;  %4672 = vst [vmem:[%s8368_s22 + $0x20] sm:$0xff] %v4639_v10 }
 0x9fe   : > { %v4511_v47 = vmul.f32 %v4477_v23, %v8323_v13  ;;  %v5605_v13 = vpop.eup %5604 }
 0x9ff   : > { %v4479_v16 = vmul.f32 %v5605_v13, %v4336_v22  ;;  %vm4485_vm11 = vweird.f32 %v5605_v13 }
 0xa00   : > { %v4527_v51 = vmul.f32 %v4511_v47, %v8270_v6  ;;  %vm4486_vm13 = vmor %vm4484_vm12, %vm4485_vm11 }
 0xa01   : > { %v4480_v9 = vmul.f32 %v5605_v13, %v4479_v16 }
 0xa02   : > { %v4543_v55 = vadd.f32 %v4527_v51, %v8286_v60  ;;  %v4640_v29 = vpop.f32.mrf.mxu2 }
 0xa03   : > { %v4641_v58 = vadd.f32 %v4640_v29, %v8358_v50  ;;  %v4481_v0 = vmul.f32 0.5, %v4480_v9 }
 0xa04   : > { %v4552_v3 = vpack.c.bf16 %v4543_v55, %v4542_v52 }
 0xa05   : > { %4673 = vst [vmem:[%s8368_s22 + $0x28] sm:$0xff] %v4641_v58  ;;  %v4482_v14 = vsub.f32 1.5, %v4481_v0 }
 0xa06   : > { %4657 = vmatmul.bf16.gmra.mxu2 %v4552_v3 }
 0xa07   : > { %v4483_v42 = vmul.f32 %v5605_v13, %v4482_v14 }
 0xa09   : > { %v4487_v4 = vsel %vm4486_vm13, %v5605_v13, %v4483_v42 }
 0xa0a   : > { %v4512_v53 = vmul.f32 %v4487_v4, %v8333_v26 }
 0xa0c   : > { %v4528_v7 = vmul.f32 %v4512_v53, %v8270_v6 }
 0xa0e   : > { %v4544_v26 = vadd.f32 %v4528_v7, %v8286_v60 }
 0xa34   : > { %v4305_v63 = vpop.xlane.xlu1 %4304 }
 0xa35   : > { %v4321_v18 = vmul.f32 %v4305_v63, %v8617_v54 }
 0xa37   : > { %v4337_v59 = vadd.f32 1e-12, %v4321_v18 }
 0xa39   : > { %5606 = vrsqrt.f32 %v4337_v59  ;;  %vm4494_vm15 = vweird.f32 %v4337_v59 }
 0xa3f   : > { %v5607_v24 = vpop.eup %5606 }
 0xa40   : > { %v4489_v1 = vmul.f32 %v5607_v24, %v4337_v59  ;;  %vm4495_vm14 = vweird.f32 %v5607_v24 }
 0xa41   : > { %vm4496_vm0 = vmor %vm4494_vm15, %vm4495_vm14 }
 0xa42   : > { %v4490_v25 = vmul.f32 %v5607_v24, %v4489_v1 }
 0xa44   : > { %v4491_v5 = vmul.f32 0.5, %v4490_v25 }
 0xa46   : > { %v4492_v2 = vsub.f32 1.5, %v4491_v5 }
 0xa48   : > { %v4493_v40 = vmul.f32 %v5607_v24, %v4492_v2 }
 0xa4a   : > { %v4497_v54 = vsel %vm4496_vm0, %v5607_v24, %v4493_v40 }
 0xa4b   : > { %v4513_v62 = vmul.f32 %v4497_v54, %v8344_v61 }
 0xa4c   : > { %v4643_v19 = vpop.f32.mrf.mxu2 }
 0xa4d   : > { %v4644_v57 = vadd.f32 %v4643_v19, %v8358_v50  ;;  %v4529_v48 = vmul.f32 %v4513_v62, %v8270_v6 }
 0xa4f   : > { %4674 = vst [vmem:[%s8368_s22 + $0x30] sm:$0xff] %v4644_v57  ;;  %v4545_v39 = vadd.f32 %v4529_v48, %v8286_v60 }
 0xa51   : > { %v4553_v27 = vpack.c.bf16 %v4545_v39, %v4544_v26 }
 0xa53   : > { %4662 = vmatmul.bf16.gmra.mxu2 %v4553_v27 }
 0xa54   : > { %v4645_v17 = vpop.f32.mrf.mxu2 }
 0xa55   : > { %v4646_v61 = vadd.f32 %v4645_v17, %v8358_v50 }
 0xa57   : > { %4675 = vst [vmem:[%s8368_s22 + $0x38] sm:$0xff] %v4646_v61 }
 0xa5c   : > { %v4648_v20 = vpop.f32.mrf.mxu2 }
 0xa5d   : > { %v4649_v35 = vadd.f32 %v4648_v20, %v8358_v50 }
 0xa5f   : > { %4676 = vst [vmem:[%s8368_s22 + $0x40] sm:$0xff] %v4649_v35 }
 0xa64   : > { %v4650_v6 = vpop.f32.mrf.mxu2 }
 0xa65   : > { %v4651_v36 = vadd.f32 %v4650_v6, %v8358_v50 }
 0xa67   : > { %4677 = vst [vmem:[%s8368_s22 + $0x48] sm:$0xff] %v4651_v36 }
 0xa74   : > { %v4653_v44 = vpop.f32.mrf.mxu2 }
 0xa75   : > { %v4654_v60 = vadd.f32 %v4653_v44, %v8358_v50 }
 0xa77   : > { %4678 = vst [vmem:[%s8368_s22 + $0x50] sm:$0xff] %v4654_v60 }
 0xa7c   : > { %v4655_v38 = vpop.f32.mrf.mxu2 }
 0xa7d   : > { %v4656_v46 = vadd.f32 %v4655_v38, %v8358_v50 }
 0xa7f   : > { %4679 = vst [vmem:[%s8368_s22 + $0x58] sm:$0xff] %v4656_v46 }
 0xa89   : > { %v4658_v31 = vpop.f32.mrf.mxu2 }
 0xa8a   : > { %v4659_v32 = vadd.f32 %v4658_v31, %v8358_v50 }
 0xa8c   : > { %4680 = vst [vmem:[%s8368_s22 + $0x60] sm:$0xff] %v4659_v32 }
 0xa91   : > { %v4660_v11 = vpop.f32.mrf.mxu2 }
 0xa92   : > { %v4661_v49 = vadd.f32 %v4660_v11, %v8358_v50 }
 0xa94   : > { %4681 = vst [vmem:[%s8368_s22 + $0x68] sm:$0xff] %v4661_v49 }
 0xad6   : > { %v4663_v33 = vpop.f32.mrf.mxu2 }
 0xad7   : > { %v4664_v12 = vadd.f32 %v4663_v33, %v8358_v50 }
 0xad9   : > { %4682 = vst [vmem:[%s8368_s22 + $0x70] sm:$0xff] %v4664_v12 }
 0xade   : > { %v4665_v43 = vpop.f32.mrf.mxu2 }
 0xadf   : > { %v4666_v15 = vadd.f32 %v4665_v43, %v8358_v50 }
 0xae1   : > { %4683 = vst [vmem:[%s8368_s22 + $0x78] sm:$0xff] %v4666_v15 }
 0xae2 PF: > { %s18_s27 = sadd.s32 1, %s5616_s27  }
 0xae3   : > { %p15_p4 = scmp.ge.s32.totalorder %s18_s27, 4  }
 0xae5   :  { %17 = sbr.rel (!%p15_p4) target bundleno = 1 (0x1), region = 88 }

</bundles_post_ra>
